<compile_context>
chip_gen: v7x
topology: tpu7x:2x2x1
jax: 0.10.0
libtpu: 0.0.40
codegen_flags: <defaults>
</compile_context>

<pallas_src>
import math

import numpy as np
import jax
import jax.numpy as jnp
from jax import lax
from jax.experimental import pallas as pl
from jax.experimental.pallas import tpu as pltpu


# ----------------------------------------------------------------------------
# Glue: positional encoding (matches positional_encoding_1d in the module)
# ----------------------------------------------------------------------------
def positional_encoding_1d(d_model, length):
    if d_model % 2 != 0:
        raise ValueError("d_model must be even")
    position = jnp.arange(length, dtype=jnp.float32)[:, None]
    div_term = jnp.exp(
        jnp.arange(0, d_model, 2, dtype=jnp.float32) * -(math.log(10000.0) / d_model)
    )
    pe = jnp.zeros((length, d_model), dtype=jnp.float32)
    pe = pe.at[:, 0::2].set(jnp.sin(position * div_term))
    pe = pe.at[:, 1::2].set(jnp.cos(position * div_term))
    return pe


# ----------------------------------------------------------------------------
# Kernel 1: fused bidirectional GRU over masked PEs + score + softmax weights
# ----------------------------------------------------------------------------
def gru_score_kernel(pes_ref, mfwd_ref, mbwd_ref, mseq_ref,
                     wih_ref, whh_ref, bih_ref, bhh_ref, wlin_ref,
                     weights_out_ref,
                     gi_f_s, gi_b_s, hf_s, hb_s):
    # pes_ref:  (L*BP, P)    time-major masked positional encodings (zero padded)
    # mfwd_ref: (L, BP, 1)   validity mask in forward time order
    # mbwd_ref: (L, BP, 1)   validity mask in reversed time order
    # mseq_ref: (L, BP)      validity mask for the score/softmax epilogue
    # wih_ref:  (P, 2*G3)    fused input weights  [fwd r|z|n  |  bwd r|z|n]
    # whh_ref:  (2*HP, G3)   vstack(whh_fwd, whh_bwd), gates r/z/n at 0/HP/2HP
    # bih_ref:  (1, 2*G3)
    # bhh_ref:  (2*BP, G3)   rows 0:BP broadcast b_hh_fwd, rows BP:2BP b_hh_bwd
    # wlin_ref: (1, HP)
    # weights_out_ref: (L, BP) softmax pooling weights
    L, BP, _ = mfwd_ref.shape
    HP = hf_s.shape[2]
    G3 = 3 * HP

    # ---- fused input projection: ONE MXU matmul for both GRU directions ------
    gi = jnp.dot(pes_ref[...], wih_ref[...],
                 preferred_element_type=jnp.float32) + bih_ref[...]   # (L*BP, 2*G3)
    gi_f_s[...] = gi[:, 0:G3].reshape(L, BP, G3)
    gi_b_s[...] = gi[:, G3:2 * G3].reshape(L, BP, G3)

    whh = whh_ref[...]                      # (2*HP, G3)  stationary across steps
    bhh = bhh_ref[...]                      # (2*BP, G3)  hoisted, already broadcast
    zHP = jnp.zeros((BP, HP), jnp.float32)  # hoisted block-diag padding

    def step(i, carry):
        # Interleaved recurrence: forward processes t=i, backward t=L-1-i.
        h_f, h_b = carry
        t_f = i
        t_b = L - 1 - i

        # block-diagonal LHS -> one matmul yields gh for both directions
        h_cat = jnp.concatenate(
            [jnp.concatenate([h_f, zHP], axis=1),
             jnp.concatenate([zHP, h_b], axis=1)], axis=0)            # (2BP, 2HP)
        gh = jnp.dot(h_cat, whh, preferred_element_type=jnp.float32) + bhh  # (2BP, G3)

        gi_step = jnp.concatenate([gi_f_s[t_f], gi_b_s[t_b]], axis=0)  # (2BP, G3)
        m_step = jnp.concatenate([mfwd_ref[t_f], mbwd_ref[i]], axis=0)  # (2BP, 1)

        # PyTorch GRU: r,z,n gate order; b_hh sits inside the r*(.) term for n.
        r = jax.nn.sigmoid(gi_step[:, 0:HP] + gh[:, 0:HP])
        z = jax.nn.sigmoid(gi_step[:, HP:2 * HP] + gh[:, HP:2 * HP])
        n = jnp.tanh(gi_step[:, 2 * HP:3 * HP] + r * gh[:, 2 * HP:3 * HP])

        h_prev = jnp.concatenate([h_f, h_b], axis=0)                  # (2BP, HP)
        # packed-sequence semantics: hidden (and per-step output) zero at pads
        h_new = ((1.0 - z) * n + z * h_prev) * m_step

        h_f_new = h_new[0:BP]
        h_b_new = h_new[BP:2 * BP]
        hf_s[t_f] = h_f_new
        hb_s[t_b] = h_b_new
        return (h_f_new, h_b_new)

    h0 = jnp.zeros((BP, HP), dtype=jnp.float32)
    unroll = True if L <= 16 else 8        # bounded unroll for long sequences
    lax.fori_loop(0, L, step, (h0, h0), unroll=unroll)

    # ---- score projection + masking + softmax, off the recurrent path --------
    h_out = 0.5 * (hf_s[...] + hb_s[...])                  # (L, BP, HP)
    wlin = wlin_ref[...]                                   # (1, HP), zero padded
    s = jnp.sum(h_out * wlin[None, :, :], axis=2)          # (L, BP) lane reduce
    s = jnp.where(mseq_ref[...] > 0.0, s, jnp.float32(-10000.0))
    s = s * jnp.float32(10.0)                              # temperature 0.1
    s_max = jnp.max(s, axis=0, keepdims=True)
    e = jnp.exp(s - s_max)
    denom = jnp.sum(e, axis=0, keepdims=True)
    weights_out_ref[...] = e * pl.reciprocal(denom, approx=True)


# ----------------------------------------------------------------------------
# Kernel 2: weighted pooling — batched grid, VPU multiply + sublane reduction
# ----------------------------------------------------------------------------
def pool_kernel(w_ref, feat_ref, out_ref):
    # w_ref:    (TB, L, 1)  mask-folded pooling weights
    # feat_ref: (TB, L, D)  sorted (descending) features
    # out_ref:  (TB, D)
    out_ref[...] = jnp.sum(feat_ref[...] * w_ref[...], axis=1)


# ----------------------------------------------------------------------------
# Parameter initialization (PyTorch-style shapes/uniform init)
# ----------------------------------------------------------------------------
def init_gpo_params(key, d_pe, d_hidden):
    H, P = d_hidden, d_pe
    scale = 1.0 / math.sqrt(H)
    ks = jax.random.split(key, 9)

    def u(k, shape):
        return jax.random.uniform(k, shape, jnp.float32, minval=-scale, maxval=scale)

    return {
        "w_ih_f": u(ks[0], (3 * H, P)),
        "w_hh_f": u(ks[1], (3 * H, H)),
        "b_ih_f": u(ks[2], (3 * H,)),
        "b_hh_f": u(ks[3], (3 * H,)),
        "w_ih_b": u(ks[4], (3 * H, P)),
        "w_hh_b": u(ks[5], (3 * H, H)),
        "b_ih_b": u(ks[6], (3 * H,)),
        "b_hh_b": u(ks[7], (3 * H,)),
        "w_lin":  u(ks[8], (1, H)),      # nn.Linear(d_hidden, 1, bias=False)
    }


# ----------------------------------------------------------------------------
# Weight packing: gates padded to 128-lane blocks (r/z/n at offsets 0/HP/2HP)
# ----------------------------------------------------------------------------
def _round_up(x, m):
    return ((x + m - 1) // m) * m


def _pack_gate_weight(w, in_dim, in_pad, H, HP):
    # w: (3H, in_dim) PyTorch layout  ->  (in_pad, 3*HP), zero padded
    wt = w.T.astype(jnp.float32)
    out = jnp.zeros((in_pad, 3 * HP), jnp.float32)
    for g in range(3):
        out = out.at[:in_dim, g * HP:g * HP + H].set(wt[:, g * H:(g + 1) * H])
    return out


def _pack_gate_bias(b, H, HP):
    out = jnp.zeros((1, 3 * HP), jnp.float32)
    for g in range(3):
        out = out.at[0, g * HP:g * HP + H].set(b[g * H:(g + 1) * H])
    return out


# ----------------------------------------------------------------------------
# Forward wrapper (mirrors GPO.forward)
# ----------------------------------------------------------------------------
def gpo_forward(features, lengths_np, params, d_pe, d_hidden):
    B, K, D = features.shape
    H, P = d_hidden, d_pe
    lengths_np = np.asarray(lengths_np).reshape(-1)
    # Guard: zero-length sequences would make the softmax 0/0 (NaN).
    assert np.all(lengths_np >= 1), "GPO requires every sequence length >= 1"
    L = int(np.max(lengths_np))
    lengths = jnp.asarray(lengths_np, dtype=jnp.int32)

    BP = _round_up(max(B, 8), 8)     # pad batch to a sublane multiple
    HP = _round_up(H, 128)           # pad d_hidden to 128 lanes
    G3 = 3 * HP

    # --- masked positional encodings (glue), padded + time-major ---------------
    pe = positional_encoding_1d(P, L)                                     # (L, P)
    mask = (jnp.arange(L, dtype=jnp.int32)[None, :] < lengths[:, None])   # (B, L)
    mask_f = mask.astype(jnp.float32)
    pes = pe[None, :, :] * mask_f[:, :, None]                             # (B, L, P)

    pes_t = jnp.transpose(pes, (1, 0, 2))                                 # (L, B, P)
    # NOTE: d_pe kept at its native 32 lanes (no 128-lane zero pad of the DMA).
    pes_pad = jnp.zeros((L, BP, P), jnp.float32).at[:, :B, :].set(pes_t)
    pes_2d = pes_pad.reshape(L * BP, P)                                   # (L*BP, P)

    mask_lb = jnp.zeros((L, BP), jnp.float32).at[:, :B].set(mask_f.T)     # (L, BP)
    mask_fwd = mask_lb[:, :, None]                                        # (L, BP, 1)
    mask_bwd = mask_fwd[::-1]                                             # reversed time

    # --- fused / stacked GRU weights -------------------------------------------
    wih_f = _pack_gate_weight(params["w_ih_f"], P, P, H, HP)              # (P, G3)
    wih_b = _pack_gate_weight(params["w_ih_b"], P, P, H, HP)
    whh_f = _pack_gate_weight(params["w_hh_f"], H, HP, H, HP)             # (HP, G3)
    whh_b = _pack_gate_weight(params["w_hh_b"], H, HP, H, HP)
    bih_f = _pack_gate_bias(params["b_ih_f"], H, HP)                      # (1, G3)
    bih_b = _pack_gate_bias(params["b_ih_b"], H, HP)
    bhh_f = _pack_gate_bias(params["b_hh_f"], H, HP)
    bhh_b = _pack_gate_bias(params["b_hh_b"], H, HP)

    wih_cat = jnp.concatenate([wih_f, wih_b], axis=1)                     # (P, 2*G3)
    bih_cat = jnp.concatenate([bih_f, bih_b], axis=1)                     # (1, 2*G3)
    whh_stack = jnp.concatenate([whh_f, whh_b], axis=0)                   # (2*HP, G3)
    bhh_stack = jnp.concatenate([jnp.broadcast_to(bhh_f, (BP, G3)),
                                 jnp.broadcast_to(bhh_b, (BP, G3))], axis=0)  # (2*BP, G3)
    wlin_pad = jnp.zeros((1, HP), jnp.float32).at[:, :H].set(params["w_lin"])

    vmem = pl.BlockSpec(memory_space=pltpu.MemorySpace.VMEM)

    # Size the scoped VMEM limit from the actual scratch + IO footprint.
    def _bytes(*shapes):
        return sum(int(np.prod(s)) * 4 for s in shapes)
    scratch_bytes = _bytes((L, BP, G3), (L, BP, G3), (L, BP, HP), (L, BP, HP))
    io_bytes = _bytes((L * BP, P), (L, BP, 1), (L, BP, 1), (L, BP),
                      (P, 2 * G3), (2 * HP, G3), (1, 2 * G3), (2 * BP, G3),
                      (1, HP), (L, BP))
    vmem_limit = int(min(100 * 1024 * 1024,
                         max(32 * 1024 * 1024, 2 * (scratch_bytes + io_bytes))))

    # TODO(synk): at production L*B (e.g. L=196, B=128) the gi/h scratches reach
    # tens of MB — add a batch-tiled grid (parallel, TB~8-16, lane-dense (TB, L)
    # weights output) and/or bf16 gi storage to bound per-step VMEM on v7x and
    # use its second TensorCore; at this demo size such a grid degenerates to (1,).
    gru_call = pl.pallas_call(
        gru_score_kernel,
        out_shape=jax.ShapeDtypeStruct((L, BP), jnp.float32),
        in_specs=[vmem] * 9,
        out_specs=vmem,
        scratch_shapes=[
            pltpu.VMEM((L, BP, G3), jnp.float32),   # fused input proj (forward gates)
            pltpu.VMEM((L, BP, G3), jnp.float32),   # fused input proj (backward gates)
            pltpu.VMEM((L, BP, HP), jnp.float32),   # forward hidden states
            pltpu.VMEM((L, BP, HP), jnp.float32),   # backward hidden states
        ],
        compiler_params=pltpu.CompilerParams(vmem_limit_bytes=vmem_limit),
    )
    weights_lb = gru_call(pes_2d, mask_fwd, mask_bwd, mask_lb,
                          wih_cat, whh_stack, bih_cat, bhh_stack, wlin_pad)  # (L, BP)
    weights_bl = jnp.transpose(weights_lb)[:B, :]                            # (B, L)
    pool_weights = weights_bl[:, :, None]                                    # (B, L, 1)

    # --- feature side -----------------------------------------------------------
    feats = features[:, :L, :]                                          # (B, L, D)
    masked_feats = jnp.where(mask_f[:, :, None] > 0, feats, jnp.float32(-10000.0))
    # TODO(synk): per-channel descending sort has no clean Pallas/Mosaic lowering;
    # done with jnp.sort in plain JAX glue.
    sorted_feats = jnp.flip(jnp.sort(masked_feats, axis=1), axis=1)

    # Fold the (prefix) mask into the weights: equivalent to PyTorch's
    # masked_fill(sorted == pad, 0) because valid positions form a prefix and the
    # -10000 fill sorts to the tail.
    w_masked = (weights_bl * mask_f)[:, :, None]                        # (B, L, 1)

    TB = 8
    BP2 = _round_up(max(B, TB), TB)
    w_pad = jnp.zeros((BP2, L, 1), jnp.float32).at[:B].set(w_masked)
    feat_pad = jnp.zeros((BP2, L, D), jnp.float32).at[:B].set(sorted_feats)

    pool_call = pl.pallas_call(
        pool_kernel,
        out_shape=jax.ShapeDtypeStruct((BP2, D), jnp.float32),
        grid=(BP2 // TB,),
        in_specs=[pl.BlockSpec((TB, L, 1), lambda b: (b, 0, 0)),
                  pl.BlockSpec((TB, L, D), lambda b: (b, 0, 0))],
        out_specs=pl.BlockSpec((TB, D), lambda b: (b, 0)),
        compiler_params=pltpu.CompilerParams(dimension_semantics=("parallel",)),
    )
    pooled = pool_call(w_pad, feat_pad)[:B, :]                          # (B, D)
    return pooled, pool_weights


# ----------------------------------------------------------------------------
if __name__ == "__main__":
    d_pe = 32       # GPO d_pe
    d_hidden = 32   # GPO d_hidden
    B, K, D = 2, 10, 32

    key = jax.random.PRNGKey(0)
    k_feat, k_params = jax.random.split(key)

    features = jax.random.normal(k_feat, (B, K, D), dtype=jnp.float32)
    lengths_np = np.array([8, 5], dtype=np.int32)   # B lengths

    params = init_gpo_params(k_params, d_pe, d_hidden)

    pooled, pool_weights = gpo_forward(features, lengths_np, params, d_pe, d_hidden)
    pooled = jax.block_until_ready(pooled)
    pool_weights = jax.block_until_ready(pool_weights)

    assert pooled.shape == (B, D)
    assert pool_weights.shape == (B, int(np.max(lengths_np)), 1)
    assert bool(jnp.all(jnp.isfinite(pooled)))
    wsum = jnp.sum(pool_weights[:, :, 0], axis=1)
    assert bool(jnp.all(jnp.abs(wsum - 1.0) < 1e-2))   # softmax weights ~ sum to 1

    print("KERNEL_OK")
</pallas_src>

<mosaic_0001>
module attributes {stable_mosaic.version = 11 : i64} {
  func.func @gru_score_kernel(%arg0: memref<64x32xf32, #tpu.memory_space<vmem>>, %arg1: memref<8x8x1xf32, #tpu.memory_space<vmem>>, %arg2: memref<8x8x1xf32, #tpu.memory_space<vmem>>, %arg3: memref<8x8xf32, #tpu.memory_space<vmem>>, %arg4: memref<32x768xf32, #tpu.memory_space<vmem>>, %arg5: memref<256x384xf32, #tpu.memory_space<vmem>>, %arg6: memref<1x768xf32, #tpu.memory_space<vmem>>, %arg7: memref<16x384xf32, #tpu.memory_space<vmem>>, %arg8: memref<1x128xf32, #tpu.memory_space<vmem>>, %arg9: memref<8x8xf32, #tpu.memory_space<vmem>>, %arg10: memref<8x8x384xf32, #tpu.memory_space<vmem>>, %arg11: memref<8x8x384xf32, #tpu.memory_space<vmem>>, %arg12: memref<8x8x128xf32, #tpu.memory_space<vmem>>, %arg13: memref<8x8x128xf32, #tpu.memory_space<vmem>>) attributes {dimension_semantics = [], scalar_prefetch = 0 : i64, scratch_operands = 4 : i64, tpu.core_type = #tpu.core_type<tc>} {
    %c0 = arith.constant 0 : index
    %c0_0 = arith.constant 0 : index
    %0 = vector.load %arg0[%c0, %c0_0] : memref<64x32xf32, #tpu.memory_space<vmem>>, vector<64x32xf32>
    %c0_1 = arith.constant 0 : index
    %c0_2 = arith.constant 0 : index
    %1 = vector.load %arg4[%c0_1, %c0_2] : memref<32x768xf32, #tpu.memory_space<vmem>>, vector<32x768xf32>
    %cst = arith.constant dense<0.000000e+00> : vector<64x768xf32>
    %2 = tpu.matmul %0, %1, %cst {dimension_numbers = #tpu.dot_dimension_numbers<[1], [0], [0], [1], [0, 0, 1, 1], [], []>} : vector<64x32xf32>, vector<32x768xf32>, vector<64x768xf32> -> vector<64x768xf32>
    %c0_3 = arith.constant 0 : index
    %c0_4 = arith.constant 0 : index
    %3 = vector.load %arg6[%c0_3, %c0_4] : memref<1x768xf32, #tpu.memory_space<vmem>>, vector<1x768xf32>
    %4 = vector.broadcast %3 : vector<1x768xf32> to vector<64x768xf32>
    %5 = arith.addf %2, %4 : vector<64x768xf32>
    %6 = vector.extract_strided_slice %5 {offsets = [0, 0], sizes = [64, 384], strides = [1, 1]} : vector<64x768xf32> to vector<64x384xf32>
    %7 = vector.shape_cast %6 : vector<64x384xf32> to vector<8x8x384xf32>
    %c0_5 = arith.constant 0 : index
    %c0_6 = arith.constant 0 : index
    %c0_7 = arith.constant 0 : index
    %8 = vector.load %arg10[%c0_5, %c0_6, %c0_7] : memref<8x8x384xf32, #tpu.memory_space<vmem>>, vector<8x8x384xf32>
    tpu.vector_store %arg10[%c0_5, %c0_6, %c0_7], %7 {strides = array<i32>} : memref<8x8x384xf32, #tpu.memory_space<vmem>>, vector<8x8x384xf32>,
    %9 = vector.extract_strided_slice %5 {offsets = [0, 384], sizes = [64, 384], strides = [1, 1]} : vector<64x768xf32> to vector<64x384xf32>
    %10 = vector.shape_cast %9 : vector<64x384xf32> to vector<8x8x384xf32>
    %c0_8 = arith.constant 0 : index
    %c0_9 = arith.constant 0 : index
    %c0_10 = arith.constant 0 : index
    %11 = vector.load %arg11[%c0_8, %c0_9, %c0_10] : memref<8x8x384xf32, #tpu.memory_space<vmem>>, vector<8x8x384xf32>
    tpu.vector_store %arg11[%c0_8, %c0_9, %c0_10], %10 {strides = array<i32>} : memref<8x8x384xf32, #tpu.memory_space<vmem>>, vector<8x8x384xf32>,
    %c0_11 = arith.constant 0 : index
    %c0_12 = arith.constant 0 : index
    %12 = vector.load %arg5[%c0_11, %c0_12] : memref<256x384xf32, #tpu.memory_space<vmem>>, vector<256x384xf32>
    %c0_13 = arith.constant 0 : index
    %c0_14 = arith.constant 0 : index
    %13 = vector.load %arg7[%c0_13, %c0_14] : memref<16x384xf32, #tpu.memory_space<vmem>>, vector<16x384xf32>
    %cst_15 = arith.constant 0.000000e+00 : f32
    %14 = vector.broadcast %cst_15 : f32 to vector<8x128xf32>
    %cst_16 = arith.constant 0.000000e+00 : f32
    %15 = vector.broadcast %cst_16 : f32 to vector<8x128xf32>
    %c0_i32 = arith.constant 0 : i32
    %c7_i32 = arith.constant 7 : i32
    %16 = arith.subi %c7_i32, %c0_i32 : i32
    %17 = tpu.concatenate %15, %14 in 1 : vector<8x128xf32>, vector<8x128xf32> -> vector<8x256xf32>
    %18 = tpu.concatenate %14, %15 in 1 : vector<8x128xf32>, vector<8x128xf32> -> vector<8x256xf32>
    %19 = tpu.concatenate %17, %18 in 0 : vector<8x256xf32>, vector<8x256xf32> -> vector<16x256xf32>
    %cst_17 = arith.constant dense<0.000000e+00> : vector<16x384xf32>
    %20 = tpu.matmul %19, %12, %cst_17 {dimension_numbers = #tpu.dot_dimension_numbers<[1], [0], [0], [1], [0, 0, 1, 1], [], []>} : vector<16x256xf32>, vector<256x384xf32>, vector<16x384xf32> -> vector<16x384xf32>
    %21 = arith.addf %20, %13 : vector<16x384xf32>
    %22 = arith.index_cast %c0_i32 : i32 to index
    %c0_18 = arith.constant 0 : index
    %c0_19 = arith.constant 0 : index
    %23 = vector.load %arg10[%22, %c0_18, %c0_19] : memref<8x8x384xf32, #tpu.memory_space<vmem>>, vector<1x8x384xf32>
    %24 = vector.shape_cast %23 : vector<1x8x384xf32> to vector<8x384xf32>
    %25 = arith.index_cast %16 : i32 to index
    %c0_20 = arith.constant 0 : index
    %c0_21 = arith.constant 0 : index
    %26 = vector.load %arg11[%25, %c0_20, %c0_21] : memref<8x8x384xf32, #tpu.memory_space<vmem>>, vector<1x8x384xf32>
    %27 = vector.shape_cast %26 : vector<1x8x384xf32> to vector<8x384xf32>
    %28 = tpu.concatenate %24, %27 in 0 : vector<8x384xf32>, vector<8x384xf32> -> vector<16x384xf32>
    %29 = arith.index_cast %c0_i32 : i32 to index
    %c0_22 = arith.constant 0 : index
    %c0_23 = arith.constant 0 : index
    %30 = vector.load %arg1[%29, %c0_22, %c0_23] : memref<8x8x1xf32, #tpu.memory_space<vmem>>, vector<1x8x1xf32>
    %31 = vector.shape_cast %30 : vector<1x8x1xf32> to vector<8x1xf32>
    %32 = arith.index_cast %c0_i32 : i32 to index
    %c0_24 = arith.constant 0 : index
    %c0_25 = arith.constant 0 : index
    %33 = vector.load %arg2[%32, %c0_24, %c0_25] : memref<8x8x1xf32, #tpu.memory_space<vmem>>, vector<1x8x1xf32>
    %34 = vector.shape_cast %33 : vector<1x8x1xf32> to vector<8x1xf32>
    %35 = tpu.concatenate %31, %34 in 0 : vector<8x1xf32>, vector<8x1xf32> -> vector<16x1xf32>
    %36 = vector.extract_strided_slice %28 {offsets = [0, 0], sizes = [16, 128], strides = [1, 1]} : vector<16x384xf32> to vector<16x128xf32>
    %37 = vector.extract_strided_slice %21 {offsets = [0, 0], sizes = [16, 128], strides = [1, 1]} : vector<16x384xf32> to vector<16x128xf32>
    %38 = arith.addf %36, %37 : vector<16x128xf32>
    %39 = arith.negf %38 : vector<16x128xf32>
    %40 = math.exp %39 : vector<16x128xf32>
    %cst_26 = arith.constant 1.000000e+00 : f32
    %41 = vector.broadcast %cst_26 : f32 to vector<16x128xf32>
    %42 = arith.addf %41, %40 : vector<16x128xf32>
    %43 = arith.divf %41, %42 : vector<16x128xf32>
    %44 = vector.extract_strided_slice %28 {offsets = [0, 128], sizes = [16, 128], strides = [1, 1]} : vector<16x384xf32> to vector<16x128xf32>
    %45 = vector.extract_strided_slice %21 {offsets = [0, 128], sizes = [16, 128], strides = [1, 1]} : vector<16x384xf32> to vector<16x128xf32>
    %46 = arith.addf %44, %45 : vector<16x128xf32>
    %47 = arith.negf %46 : vector<16x128xf32>
    %48 = math.exp %47 : vector<16x128xf32>
    %cst_27 = arith.constant 1.000000e+00 : f32
    %49 = vector.broadcast %cst_27 : f32 to vector<16x128xf32>
    %50 = arith.addf %49, %48 : vector<16x128xf32>
    %51 = arith.divf %49, %50 : vector<16x128xf32>
    %52 = vector.extract_strided_slice %28 {offsets = [0, 256], sizes = [16, 128], strides = [1, 1]} : vector<16x384xf32> to vector<16x128xf32>
    %53 = vector.extract_strided_slice %21 {offsets = [0, 256], sizes = [16, 128], strides = [1, 1]} : vector<16x384xf32> to vector<16x128xf32>
    %54 = arith.mulf %43, %53 : vector<16x128xf32>
    %55 = arith.addf %52, %54 : vector<16x128xf32>
    %56 = math.tanh %55 : vector<16x128xf32>
    %57 = tpu.concatenate %15, %15 in 0 : vector<8x128xf32>, vector<8x128xf32> -> vector<16x128xf32>
    %cst_28 = arith.constant 1.000000e+00 : f32
    %58 = vector.broadcast %cst_28 : f32 to vector<16x128xf32>
    %59 = arith.subf %58, %51 : vector<16x128xf32>
    %60 = arith.mulf %59, %56 : vector<16x128xf32>
    %61 = arith.mulf %51, %57 : vector<16x128xf32>
    %62 = arith.addf %60, %61 : vector<16x128xf32>
    %63 = vector.broadcast %35 : vector<16x1xf32> to vector<16x128xf32>
    %64 = arith.mulf %62, %63 : vector<16x128xf32>
    %65 = vector.extract_strided_slice %64 {offsets = [0, 0], sizes = [8, 128], strides = [1, 1]} : vector<16x128xf32> to vector<8x128xf32>
    %66 = vector.extract_strided_slice %64 {offsets = [8, 0], sizes = [8, 128], strides = [1, 1]} : vector<16x128xf32> to vector<8x128xf32>
    %67 = arith.index_cast %c0_i32 : i32 to index
    %c0_29 = arith.constant 0 : index
    %c0_30 = arith.constant 0 : index
    %68 = vector.load %arg12[%67, %c0_29, %c0_30] : memref<8x8x128xf32, #tpu.memory_space<vmem>>, vector<1x8x128xf32>
    %69 = vector.shape_cast %68 : vector<1x8x128xf32> to vector<8x128xf32>
    %70 = vector.shape_cast %65 : vector<8x128xf32> to vector<1x8x128xf32>
    tpu.vector_store %arg12[%67, %c0_29, %c0_30], %70 {strides = array<i32>} : memref<8x8x128xf32, #tpu.memory_space<vmem>>, vector<1x8x128xf32>,
    %71 = arith.index_cast %16 : i32 to index
    %c0_31 = arith.constant 0 : index
    %c0_32 = arith.constant 0 : index
    %72 = vector.load %arg13[%71, %c0_31, %c0_32] : memref<8x8x128xf32, #tpu.memory_space<vmem>>, vector<1x8x128xf32>
    %73 = vector.shape_cast %72 : vector<1x8x128xf32> to vector<8x128xf32>
    %74 = vector.shape_cast %66 : vector<8x128xf32> to vector<1x8x128xf32>
    tpu.vector_store %arg13[%71, %c0_31, %c0_32], %74 {strides = array<i32>} : memref<8x8x128xf32, #tpu.memory_space<vmem>>, vector<1x8x128xf32>,
    %c1_i32 = arith.constant 1 : i32
    %c7_i32_33 = arith.constant 7 : i32
    %75 = arith.subi %c7_i32_33, %c1_i32 : i32
    %76 = tpu.concatenate %65, %14 in 1 : vector<8x128xf32>, vector<8x128xf32> -> vector<8x256xf32>
    %77 = tpu.concatenate %14, %66 in 1 : vector<8x128xf32>, vector<8x128xf32> -> vector<8x256xf32>
    %78 = tpu.concatenate %76, %77 in 0 : vector<8x256xf32>, vector<8x256xf32> -> vector<16x256xf32>
    %cst_34 = arith.constant dense<0.000000e+00> : vector<16x384xf32>
    %79 = tpu.matmul %78, %12, %cst_34 {dimension_numbers = #tpu.dot_dimension_numbers<[1], [0], [0], [1], [0, 0, 1, 1], [], []>} : vector<16x256xf32>, vector<256x384xf32>, vector<16x384xf32> -> vector<16x384xf32>
    %80 = arith.addf %79, %13 : vector<16x384xf32>
    %81 = arith.index_cast %c1_i32 : i32 to index
    %c0_35 = arith.constant 0 : index
    %c0_36 = arith.constant 0 : index
    %82 = vector.load %arg10[%81, %c0_35, %c0_36] : memref<8x8x384xf32, #tpu.memory_space<vmem>>, vector<1x8x384xf32>
    %83 = vector.shape_cast %82 : vector<1x8x384xf32> to vector<8x384xf32>
    %84 = arith.index_cast %75 : i32 to index
    %c0_37 = arith.constant 0 : index
    %c0_38 = arith.constant 0 : index
    %85 = vector.load %arg11[%84, %c0_37, %c0_38] : memref<8x8x384xf32, #tpu.memory_space<vmem>>, vector<1x8x384xf32>
    %86 = vector.shape_cast %85 : vector<1x8x384xf32> to vector<8x384xf32>
    %87 = tpu.concatenate %83, %86 in 0 : vector<8x384xf32>, vector<8x384xf32> -> vector<16x384xf32>
    %88 = arith.index_cast %c1_i32 : i32 to index
    %c0_39 = arith.constant 0 : index
    %c0_40 = arith.constant 0 : index
    %89 = vector.load %arg1[%88, %c0_39, %c0_40] : memref<8x8x1xf32, #tpu.memory_space<vmem>>, vector<1x8x1xf32>
    %90 = vector.shape_cast %89 : vector<1x8x1xf32> to vector<8x1xf32>
    %91 = arith.index_cast %c1_i32 : i32 to index
    %c0_41 = arith.constant 0 : index
    %c0_42 = arith.constant 0 : index
    %92 = vector.load %arg2[%91, %c0_41, %c0_42] : memref<8x8x1xf32, #tpu.memory_space<vmem>>, vector<1x8x1xf32>
    %93 = vector.shape_cast %92 : vector<1x8x1xf32> to vector<8x1xf32>
    %94 = tpu.concatenate %90, %93 in 0 : vector<8x1xf32>, vector<8x1xf32> -> vector<16x1xf32>
    %95 = vector.extract_strided_slice %87 {offsets = [0, 0], sizes = [16, 128], strides = [1, 1]} : vector<16x384xf32> to vector<16x128xf32>
    %96 = vector.extract_strided_slice %80 {offsets = [0, 0], sizes = [16, 128], strides = [1, 1]} : vector<16x384xf32> to vector<16x128xf32>
    %97 = arith.addf %95, %96 : vector<16x128xf32>
    %98 = arith.negf %97 : vector<16x128xf32>
    %99 = math.exp %98 : vector<16x128xf32>
    %cst_43 = arith.constant 1.000000e+00 : f32
    %100 = vector.broadcast %cst_43 : f32 to vector<16x128xf32>
    %101 = arith.addf %100, %99 : vector<16x128xf32>
    %102 = arith.divf %100, %101 : vector<16x128xf32>
    %103 = vector.extract_strided_slice %87 {offsets = [0, 128], sizes = [16, 128], strides = [1, 1]} : vector<16x384xf32> to vector<16x128xf32>
    %104 = vector.extract_strided_slice %80 {offsets = [0, 128], sizes = [16, 128], strides = [1, 1]} : vector<16x384xf32> to vector<16x128xf32>
    %105 = arith.addf %103, %104 : vector<16x128xf32>
    %106 = arith.negf %105 : vector<16x128xf32>
    %107 = math.exp %106 : vector<16x128xf32>
    %cst_44 = arith.constant 1.000000e+00 : f32
    %108 = vector.broadcast %cst_44 : f32 to vector<16x128xf32>
    %109 = arith.addf %108, %107 : vector<16x128xf32>
    %110 = arith.divf %108, %109 : vector<16x128xf32>
    %111 = vector.extract_strided_slice %87 {offsets = [0, 256], sizes = [16, 128], strides = [1, 1]} : vector<16x384xf32> to vector<16x128xf32>
    %112 = vector.extract_strided_slice %80 {offsets = [0, 256], sizes = [16, 128], strides = [1, 1]} : vector<16x384xf32> to vector<16x128xf32>
    %113 = arith.mulf %102, %112 : vector<16x128xf32>
    %114 = arith.addf %111, %113 : vector<16x128xf32>
    %115 = math.tanh %114 : vector<16x128xf32>
    %116 = tpu.concatenate %65, %66 in 0 : vector<8x128xf32>, vector<8x128xf32> -> vector<16x128xf32>
    %cst_45 = arith.constant 1.000000e+00 : f32
    %117 = vector.broadcast %cst_45 : f32 to vector<16x128xf32>
    %118 = arith.subf %117, %110 : vector<16x128xf32>
    %119 = arith.mulf %118, %115 : vector<16x128xf32>
    %120 = arith.mulf %110, %116 : vector<16x128xf32>
    %121 = arith.addf %119, %120 : vector<16x128xf32>
    %122 = vector.broadcast %94 : vector<16x1xf32> to vector<16x128xf32>
    %123 = arith.mulf %121, %122 : vector<16x128xf32>
    %124 = vector.extract_strided_slice %123 {offsets = [0, 0], sizes = [8, 128], strides = [1, 1]} : vector<16x128xf32> to vector<8x128xf32>
    %125 = vector.extract_strided_slice %123 {offsets = [8, 0], sizes = [8, 128], strides = [1, 1]} : vector<16x128xf32> to vector<8x128xf32>
    %126 = arith.index_cast %c1_i32 : i32 to index
    %c0_46 = arith.constant 0 : index
    %c0_47 = arith.constant 0 : index
    %127 = vector.load %arg12[%126, %c0_46, %c0_47] : memref<8x8x128xf32, #tpu.memory_space<vmem>>, vector<1x8x128xf32>
    %128 = vector.shape_cast %127 : vector<1x8x128xf32> to vector<8x128xf32>
    %129 = vector.shape_cast %124 : vector<8x128xf32> to vector<1x8x128xf32>
    tpu.vector_store %arg12[%126, %c0_46, %c0_47], %129 {strides = array<i32>} : memref<8x8x128xf32, #tpu.memory_space<vmem>>, vector<1x8x128xf32>,
    %130 = arith.index_cast %75 : i32 to index
    %c0_48 = arith.constant 0 : index
    %c0_49 = arith.constant 0 : index
    %131 = vector.load %arg13[%130, %c0_48, %c0_49] : memref<8x8x128xf32, #tpu.memory_space<vmem>>, vector<1x8x128xf32>
    %132 = vector.shape_cast %131 : vector<1x8x128xf32> to vector<8x128xf32>
    %133 = vector.shape_cast %125 : vector<8x128xf32> to vector<1x8x128xf32>
    tpu.vector_store %arg13[%130, %c0_48, %c0_49], %133 {strides = array<i32>} : memref<8x8x128xf32, #tpu.memory_space<vmem>>, vector<1x8x128xf32>,
    %c2_i32 = arith.constant 2 : i32
    %c7_i32_50 = arith.constant 7 : i32
    %134 = arith.subi %c7_i32_50, %c2_i32 : i32
    %135 = tpu.concatenate %124, %14 in 1 : vector<8x128xf32>, vector<8x128xf32> -> vector<8x256xf32>
    %136 = tpu.concatenate %14, %125 in 1 : vector<8x128xf32>, vector<8x128xf32> -> vector<8x256xf32>
    %137 = tpu.concatenate %135, %136 in 0 : vector<8x256xf32>, vector<8x256xf32> -> vector<16x256xf32>
    %cst_51 = arith.constant dense<0.000000e+00> : vector<16x384xf32>
    %138 = tpu.matmul %137, %12, %cst_51 {dimension_numbers = #tpu.dot_dimension_numbers<[1], [0], [0], [1], [0, 0, 1, 1], [], []>} : vector<16x256xf32>, vector<256x384xf32>, vector<16x384xf32> -> vector<16x384xf32>
    %139 = arith.addf %138, %13 : vector<16x384xf32>
    %140 = arith.index_cast %c2_i32 : i32 to index
    %c0_52 = arith.constant 0 : index
    %c0_53 = arith.constant 0 : index
    %141 = vector.load %arg10[%140, %c0_52, %c0_53] : memref<8x8x384xf32, #tpu.memory_space<vmem>>, vector<1x8x384xf32>
    %142 = vector.shape_cast %141 : vector<1x8x384xf32> to vector<8x384xf32>
    %143 = arith.index_cast %134 : i32 to index
    %c0_54 = arith.constant 0 : index
    %c0_55 = arith.constant 0 : index
    %144 = vector.load %arg11[%143, %c0_54, %c0_55] : memref<8x8x384xf32, #tpu.memory_space<vmem>>, vector<1x8x384xf32>
    %145 = vector.shape_cast %144 : vector<1x8x384xf32> to vector<8x384xf32>
    %146 = tpu.concatenate %142, %145 in 0 : vector<8x384xf32>, vector<8x384xf32> -> vector<16x384xf32>
    %147 = arith.index_cast %c2_i32 : i32 to index
    %c0_56 = arith.constant 0 : index
    %c0_57 = arith.constant 0 : index
    %148 = vector.load %arg1[%147, %c0_56, %c0_57] : memref<8x8x1xf32, #tpu.memory_space<vmem>>, vector<1x8x1xf32>
    %149 = vector.shape_cast %148 : vector<1x8x1xf32> to vector<8x1xf32>
    %150 = arith.index_cast %c2_i32 : i32 to index
    %c0_58 = arith.constant 0 : index
    %c0_59 = arith.constant 0 : index
    %151 = vector.load %arg2[%150, %c0_58, %c0_59] : memref<8x8x1xf32, #tpu.memory_space<vmem>>, vector<1x8x1xf32>
    %152 = vector.shape_cast %151 : vector<1x8x1xf32> to vector<8x1xf32>
    %153 = tpu.concatenate %149, %152 in 0 : vector<8x1xf32>, vector<8x1xf32> -> vector<16x1xf32>
    %154 = vector.extract_strided_slice %146 {offsets = [0, 0], sizes = [16, 128], strides = [1, 1]} : vector<16x384xf32> to vector<16x128xf32>
    %155 = vector.extract_strided_slice %139 {offsets = [0, 0], sizes = [16, 128], strides = [1, 1]} : vector<16x384xf32> to vector<16x128xf32>
    %156 = arith.addf %154, %155 : vector<16x128xf32>
    %157 = arith.negf %156 : vector<16x128xf32>
    %158 = math.exp %157 : vector<16x128xf32>
    %cst_60 = arith.constant 1.000000e+00 : f32
    %159 = vector.broadcast %cst_60 : f32 to vector<16x128xf32>
    %160 = arith.addf %159, %158 : vector<16x128xf32>
    %161 = arith.divf %159, %160 : vector<16x128xf32>
    %162 = vector.extract_strided_slice %146 {offsets = [0, 128], sizes = [16, 128], strides = [1, 1]} : vector<16x384xf32> to vector<16x128xf32>
    %163 = vector.extract_strided_slice %139 {offsets = [0, 128], sizes = [16, 128], strides = [1, 1]} : vector<16x384xf32> to vector<16x128xf32>
    %164 = arith.addf %162, %163 : vector<16x128xf32>
    %165 = arith.negf %164 : vector<16x128xf32>
    %166 = math.exp %165 : vector<16x128xf32>
    %cst_61 = arith.constant 1.000000e+00 : f32
    %167 = vector.broadcast %cst_61 : f32 to vector<16x128xf32>
    %168 = arith.addf %167, %166 : vector<16x128xf32>
    %169 = arith.divf %167, %168 : vector<16x128xf32>
    %170 = vector.extract_strided_slice %146 {offsets = [0, 256], sizes = [16, 128], strides = [1, 1]} : vector<16x384xf32> to vector<16x128xf32>
    %171 = vector.extract_strided_slice %139 {offsets = [0, 256], sizes = [16, 128], strides = [1, 1]} : vector<16x384xf32> to vector<16x128xf32>
    %172 = arith.mulf %161, %171 : vector<16x128xf32>
    %173 = arith.addf %170, %172 : vector<16x128xf32>
    %174 = math.tanh %173 : vector<16x128xf32>
    %175 = tpu.concatenate %124, %125 in 0 : vector<8x128xf32>, vector<8x128xf32> -> vector<16x128xf32>
    %cst_62 = arith.constant 1.000000e+00 : f32
    %176 = vector.broadcast %cst_62 : f32 to vector<16x128xf32>
    %177 = arith.subf %176, %169 : vector<16x128xf32>
    %178 = arith.mulf %177, %174 : vector<16x128xf32>
    %179 = arith.mulf %169, %175 : vector<16x128xf32>
    %180 = arith.addf %178, %179 : vector<16x128xf32>
    %181 = vector.broadcast %153 : vector<16x1xf32> to vector<16x128xf32>
    %182 = arith.mulf %180, %181 : vector<16x128xf32>
    %183 = vector.extract_strided_slice %182 {offsets = [0, 0], sizes = [8, 128], strides = [1, 1]} : vector<16x128xf32> to vector<8x128xf32>
    %184 = vector.extract_strided_slice %182 {offsets = [8, 0], sizes = [8, 128], strides = [1, 1]} : vector<16x128xf32> to vector<8x128xf32>
    %185 = arith.index_cast %c2_i32 : i32 to index
    %c0_63 = arith.constant 0 : index
    %c0_64 = arith.constant 0 : index
    %186 = vector.load %arg12[%185, %c0_63, %c0_64] : memref<8x8x128xf32, #tpu.memory_space<vmem>>, vector<1x8x128xf32>
    %187 = vector.shape_cast %186 : vector<1x8x128xf32> to vector<8x128xf32>
    %188 = vector.shape_cast %183 : vector<8x128xf32> to vector<1x8x128xf32>
    tpu.vector_store %arg12[%185, %c0_63, %c0_64], %188 {strides = array<i32>} : memref<8x8x128xf32, #tpu.memory_space<vmem>>, vector<1x8x128xf32>,
    %189 = arith.index_cast %134 : i32 to index
    %c0_65 = arith.constant 0 : index
    %c0_66 = arith.constant 0 : index
    %190 = vector.load %arg13[%189, %c0_65, %c0_66] : memref<8x8x128xf32, #tpu.memory_space<vmem>>, vector<1x8x128xf32>
    %191 = vector.shape_cast %190 : vector<1x8x128xf32> to vector<8x128xf32>
    %192 = vector.shape_cast %184 : vector<8x128xf32> to vector<1x8x128xf32>
    tpu.vector_store %arg13[%189, %c0_65, %c0_66], %192 {strides = array<i32>} : memref<8x8x128xf32, #tpu.memory_space<vmem>>, vector<1x8x128xf32>,
    %c3_i32 = arith.constant 3 : i32
    %c7_i32_67 = arith.constant 7 : i32
    %193 = arith.subi %c7_i32_67, %c3_i32 : i32
    %194 = tpu.concatenate %183, %14 in 1 : vector<8x128xf32>, vector<8x128xf32> -> vector<8x256xf32>
    %195 = tpu.concatenate %14, %184 in 1 : vector<8x128xf32>, vector<8x128xf32> -> vector<8x256xf32>
    %196 = tpu.concatenate %194, %195 in 0 : vector<8x256xf32>, vector<8x256xf32> -> vector<16x256xf32>
    %cst_68 = arith.constant dense<0.000000e+00> : vector<16x384xf32>
    %197 = tpu.matmul %196, %12, %cst_68 {dimension_numbers = #tpu.dot_dimension_numbers<[1], [0], [0], [1], [0, 0, 1, 1], [], []>} : vector<16x256xf32>, vector<256x384xf32>, vector<16x384xf32> -> vector<16x384xf32>
    %198 = arith.addf %197, %13 : vector<16x384xf32>
    %199 = arith.index_cast %c3_i32 : i32 to index
    %c0_69 = arith.constant 0 : index
    %c0_70 = arith.constant 0 : index
    %200 = vector.load %arg10[%199, %c0_69, %c0_70] : memref<8x8x384xf32, #tpu.memory_space<vmem>>, vector<1x8x384xf32>
    %201 = vector.shape_cast %200 : vector<1x8x384xf32> to vector<8x384xf32>
    %202 = arith.index_cast %193 : i32 to index
    %c0_71 = arith.constant 0 : index
    %c0_72 = arith.constant 0 : index
    %203 = vector.load %arg11[%202, %c0_71, %c0_72] : memref<8x8x384xf32, #tpu.memory_space<vmem>>, vector<1x8x384xf32>
    %204 = vector.shape_cast %203 : vector<1x8x384xf32> to vector<8x384xf32>
    %205 = tpu.concatenate %201, %204 in 0 : vector<8x384xf32>, vector<8x384xf32> -> vector<16x384xf32>
    %206 = arith.index_cast %c3_i32 : i32 to index
    %c0_73 = arith.constant 0 : index
    %c0_74 = arith.constant 0 : index
    %207 = vector.load %arg1[%206, %c0_73, %c0_74] : memref<8x8x1xf32, #tpu.memory_space<vmem>>, vector<1x8x1xf32>
    %208 = vector.shape_cast %207 : vector<1x8x1xf32> to vector<8x1xf32>
    %209 = arith.index_cast %c3_i32 : i32 to index
    %c0_75 = arith.constant 0 : index
    %c0_76 = arith.constant 0 : index
    %210 = vector.load %arg2[%209, %c0_75, %c0_76] : memref<8x8x1xf32, #tpu.memory_space<vmem>>, vector<1x8x1xf32>
    %211 = vector.shape_cast %210 : vector<1x8x1xf32> to vector<8x1xf32>
    %212 = tpu.concatenate %208, %211 in 0 : vector<8x1xf32>, vector<8x1xf32> -> vector<16x1xf32>
    %213 = vector.extract_strided_slice %205 {offsets = [0, 0], sizes = [16, 128], strides = [1, 1]} : vector<16x384xf32> to vector<16x128xf32>
    %214 = vector.extract_strided_slice %198 {offsets = [0, 0], sizes = [16, 128], strides = [1, 1]} : vector<16x384xf32> to vector<16x128xf32>
    %215 = arith.addf %213, %214 : vector<16x128xf32>
    %216 = arith.negf %215 : vector<16x128xf32>
    %217 = math.exp %216 : vector<16x128xf32>
    %cst_77 = arith.constant 1.000000e+00 : f32
    %218 = vector.broadcast %cst_77 : f32 to vector<16x128xf32>
    %219 = arith.addf %218, %217 : vector<16x128xf32>
    %220 = arith.divf %218, %219 : vector<16x128xf32>
    %221 = vector.extract_strided_slice %205 {offsets = [0, 128], sizes = [16, 128], strides = [1, 1]} : vector<16x384xf32> to vector<16x128xf32>
    %222 = vector.extract_strided_slice %198 {offsets = [0, 128], sizes = [16, 128], strides = [1, 1]} : vector<16x384xf32> to vector<16x128xf32>
    %223 = arith.addf %221, %222 : vector<16x128xf32>
    %224 = arith.negf %223 : vector<16x128xf32>
    %225 = math.exp %224 : vector<16x128xf32>
    %cst_78 = arith.constant 1.000000e+00 : f32
    %226 = vector.broadcast %cst_78 : f32 to vector<16x128xf32>
    %227 = arith.addf %226, %225 : vector<16x128xf32>
    %228 = arith.divf %226, %227 : vector<16x128xf32>
    %229 = vector.extract_strided_slice %205 {offsets = [0, 256], sizes = [16, 128], strides = [1, 1]} : vector<16x384xf32> to vector<16x128xf32>
    %230 = vector.extract_strided_slice %198 {offsets = [0, 256], sizes = [16, 128], strides = [1, 1]} : vector<16x384xf32> to vector<16x128xf32>
    %231 = arith.mulf %220, %230 : vector<16x128xf32>
    %232 = arith.addf %229, %231 : vector<16x128xf32>
    %233 = math.tanh %232 : vector<16x128xf32>
    %234 = tpu.concatenate %183, %184 in 0 : vector<8x128xf32>, vector<8x128xf32> -> vector<16x128xf32>
    %cst_79 = arith.constant 1.000000e+00 : f32
    %235 = vector.broadcast %cst_79 : f32 to vector<16x128xf32>
    %236 = arith.subf %235, %228 : vector<16x128xf32>
    %237 = arith.mulf %236, %233 : vector<16x128xf32>
    %238 = arith.mulf %228, %234 : vector<16x128xf32>
    %239 = arith.addf %237, %238 : vector<16x128xf32>
    %240 = vector.broadcast %212 : vector<16x1xf32> to vector<16x128xf32>
    %241 = arith.mulf %239, %240 : vector<16x128xf32>
    %242 = vector.extract_strided_slice %241 {offsets = [0, 0], sizes = [8, 128], strides = [1, 1]} : vector<16x128xf32> to vector<8x128xf32>
    %243 = vector.extract_strided_slice %241 {offsets = [8, 0], sizes = [8, 128], strides = [1, 1]} : vector<16x128xf32> to vector<8x128xf32>
    %244 = arith.index_cast %c3_i32 : i32 to index
    %c0_80 = arith.constant 0 : index
    %c0_81 = arith.constant 0 : index
    %245 = vector.load %arg12[%244, %c0_80, %c0_81] : memref<8x8x128xf32, #tpu.memory_space<vmem>>, vector<1x8x128xf32>
    %246 = vector.shape_cast %245 : vector<1x8x128xf32> to vector<8x128xf32>
    %247 = vector.shape_cast %242 : vector<8x128xf32> to vector<1x8x128xf32>
    tpu.vector_store %arg12[%244, %c0_80, %c0_81], %247 {strides = array<i32>} : memref<8x8x128xf32, #tpu.memory_space<vmem>>, vector<1x8x128xf32>,
    %248 = arith.index_cast %193 : i32 to index
    %c0_82 = arith.constant 0 : index
    %c0_83 = arith.constant 0 : index
    %249 = vector.load %arg13[%248, %c0_82, %c0_83] : memref<8x8x128xf32, #tpu.memory_space<vmem>>, vector<1x8x128xf32>
    %250 = vector.shape_cast %249 : vector<1x8x128xf32> to vector<8x128xf32>
    %251 = vector.shape_cast %243 : vector<8x128xf32> to vector<1x8x128xf32>
    tpu.vector_store %arg13[%248, %c0_82, %c0_83], %251 {strides = array<i32>} : memref<8x8x128xf32, #tpu.memory_space<vmem>>, vector<1x8x128xf32>,
    %c4_i32 = arith.constant 4 : i32
    %c7_i32_84 = arith.constant 7 : i32
    %252 = arith.subi %c7_i32_84, %c4_i32 : i32
    %253 = tpu.concatenate %242, %14 in 1 : vector<8x128xf32>, vector<8x128xf32> -> vector<8x256xf32>
    %254 = tpu.concatenate %14, %243 in 1 : vector<8x128xf32>, vector<8x128xf32> -> vector<8x256xf32>
    %255 = tpu.concatenate %253, %254 in 0 : vector<8x256xf32>, vector<8x256xf32> -> vector<16x256xf32>
    %cst_85 = arith.constant dense<0.000000e+00> : vector<16x384xf32>
    %256 = tpu.matmul %255, %12, %cst_85 {dimension_numbers = #tpu.dot_dimension_numbers<[1], [0], [0], [1], [0, 0, 1, 1], [], []>} : vector<16x256xf32>, vector<256x384xf32>, vector<16x384xf32> -> vector<16x384xf32>
    %257 = arith.addf %256, %13 : vector<16x384xf32>
    %258 = arith.index_cast %c4_i32 : i32 to index
    %c0_86 = arith.constant 0 : index
    %c0_87 = arith.constant 0 : index
    %259 = vector.load %arg10[%258, %c0_86, %c0_87] : memref<8x8x384xf32, #tpu.memory_space<vmem>>, vector<1x8x384xf32>
    %260 = vector.shape_cast %259 : vector<1x8x384xf32> to vector<8x384xf32>
    %261 = arith.index_cast %252 : i32 to index
    %c0_88 = arith.constant 0 : index
    %c0_89 = arith.constant 0 : index
    %262 = vector.load %arg11[%261, %c0_88, %c0_89] : memref<8x8x384xf32, #tpu.memory_space<vmem>>, vector<1x8x384xf32>
    %263 = vector.shape_cast %262 : vector<1x8x384xf32> to vector<8x384xf32>
    %264 = tpu.concatenate %260, %263 in 0 : vector<8x384xf32>, vector<8x384xf32> -> vector<16x384xf32>
    %265 = arith.index_cast %c4_i32 : i32 to index
    %c0_90 = arith.constant 0 : index
    %c0_91 = arith.constant 0 : index
    %266 = vector.load %arg1[%265, %c0_90, %c0_91] : memref<8x8x1xf32, #tpu.memory_space<vmem>>, vector<1x8x1xf32>
    %267 = vector.shape_cast %266 : vector<1x8x1xf32> to vector<8x1xf32>
    %268 = arith.index_cast %c4_i32 : i32 to index
    %c0_92 = arith.constant 0 : index
    %c0_93 = arith.constant 0 : index
    %269 = vector.load %arg2[%268, %c0_92, %c0_93] : memref<8x8x1xf32, #tpu.memory_space<vmem>>, vector<1x8x1xf32>
    %270 = vector.shape_cast %269 : vector<1x8x1xf32> to vector<8x1xf32>
    %271 = tpu.concatenate %267, %270 in 0 : vector<8x1xf32>, vector<8x1xf32> -> vector<16x1xf32>
    %272 = vector.extract_strided_slice %264 {offsets = [0, 0], sizes = [16, 128], strides = [1, 1]} : vector<16x384xf32> to vector<16x128xf32>
    %273 = vector.extract_strided_slice %257 {offsets = [0, 0], sizes = [16, 128], strides = [1, 1]} : vector<16x384xf32> to vector<16x128xf32>
    %274 = arith.addf %272, %273 : vector<16x128xf32>
    %275 = arith.negf %274 : vector<16x128xf32>
    %276 = math.exp %275 : vector<16x128xf32>
    %cst_94 = arith.constant 1.000000e+00 : f32
    %277 = vector.broadcast %cst_94 : f32 to vector<16x128xf32>
    %278 = arith.addf %277, %276 : vector<16x128xf32>
    %279 = arith.divf %277, %278 : vector<16x128xf32>
    %280 = vector.extract_strided_slice %264 {offsets = [0, 128], sizes = [16, 128], strides = [1, 1]} : vector<16x384xf32> to vector<16x128xf32>
    %281 = vector.extract_strided_slice %257 {offsets = [0, 128], sizes = [16, 128], strides = [1, 1]} : vector<16x384xf32> to vector<16x128xf32>
    %282 = arith.addf %280, %281 : vector<16x128xf32>
    %283 = arith.negf %282 : vector<16x128xf32>
    %284 = math.exp %283 : vector<16x128xf32>
    %cst_95 = arith.constant 1.000000e+00 : f32
    %285 = vector.broadcast %cst_95 : f32 to vector<16x128xf32>
    %286 = arith.addf %285, %284 : vector<16x128xf32>
    %287 = arith.divf %285, %286 : vector<16x128xf32>
    %288 = vector.extract_strided_slice %264 {offsets = [0, 256], sizes = [16, 128], strides = [1, 1]} : vector<16x384xf32> to vector<16x128xf32>
    %289 = vector.extract_strided_slice %257 {offsets = [0, 256], sizes = [16, 128], strides = [1, 1]} : vector<16x384xf32> to vector<16x128xf32>
    %290 = arith.mulf %279, %289 : vector<16x128xf32>
    %291 = arith.addf %288, %290 : vector<16x128xf32>
    %292 = math.tanh %291 : vector<16x128xf32>
    %293 = tpu.concatenate %242, %243 in 0 : vector<8x128xf32>, vector<8x128xf32> -> vector<16x128xf32>
    %cst_96 = arith.constant 1.000000e+00 : f32
    %294 = vector.broadcast %cst_96 : f32 to vector<16x128xf32>
    %295 = arith.subf %294, %287 : vector<16x128xf32>
    %296 = arith.mulf %295, %292 : vector<16x128xf32>
    %297 = arith.mulf %287, %293 : vector<16x128xf32>
    %298 = arith.addf %296, %297 : vector<16x128xf32>
    %299 = vector.broadcast %271 : vector<16x1xf32> to vector<16x128xf32>
    %300 = arith.mulf %298, %299 : vector<16x128xf32>
    %301 = vector.extract_strided_slice %300 {offsets = [0, 0], sizes = [8, 128], strides = [1, 1]} : vector<16x128xf32> to vector<8x128xf32>
    %302 = vector.extract_strided_slice %300 {offsets = [8, 0], sizes = [8, 128], strides = [1, 1]} : vector<16x128xf32> to vector<8x128xf32>
    %303 = arith.index_cast %c4_i32 : i32 to index
    %c0_97 = arith.constant 0 : index
    %c0_98 = arith.constant 0 : index
    %304 = vector.load %arg12[%303, %c0_97, %c0_98] : memref<8x8x128xf32, #tpu.memory_space<vmem>>, vector<1x8x128xf32>
    %305 = vector.shape_cast %304 : vector<1x8x128xf32> to vector<8x128xf32>
    %306 = vector.shape_cast %301 : vector<8x128xf32> to vector<1x8x128xf32>
    tpu.vector_store %arg12[%303, %c0_97, %c0_98], %306 {strides = array<i32>} : memref<8x8x128xf32, #tpu.memory_space<vmem>>, vector<1x8x128xf32>,
    %307 = arith.index_cast %252 : i32 to index
    %c0_99 = arith.constant 0 : index
    %c0_100 = arith.constant 0 : index
    %308 = vector.load %arg13[%307, %c0_99, %c0_100] : memref<8x8x128xf32, #tpu.memory_space<vmem>>, vector<1x8x128xf32>
    %309 = vector.shape_cast %308 : vector<1x8x128xf32> to vector<8x128xf32>
    %310 = vector.shape_cast %302 : vector<8x128xf32> to vector<1x8x128xf32>
    tpu.vector_store %arg13[%307, %c0_99, %c0_100], %310 {strides = array<i32>} : memref<8x8x128xf32, #tpu.memory_space<vmem>>, vector<1x8x128xf32>,
    %c5_i32 = arith.constant 5 : i32
    %c7_i32_101 = arith.constant 7 : i32
    %311 = arith.subi %c7_i32_101, %c5_i32 : i32
    %312 = tpu.concatenate %301, %14 in 1 : vector<8x128xf32>, vector<8x128xf32> -> vector<8x256xf32>
    %313 = tpu.concatenate %14, %302 in 1 : vector<8x128xf32>, vector<8x128xf32> -> vector<8x256xf32>
    %314 = tpu.concatenate %312, %313 in 0 : vector<8x256xf32>, vector<8x256xf32> -> vector<16x256xf32>
    %cst_102 = arith.constant dense<0.000000e+00> : vector<16x384xf32>
    %315 = tpu.matmul %314, %12, %cst_102 {dimension_numbers = #tpu.dot_dimension_numbers<[1], [0], [0], [1], [0, 0, 1, 1], [], []>} : vector<16x256xf32>, vector<256x384xf32>, vector<16x384xf32> -> vector<16x384xf32>
    %316 = arith.addf %315, %13 : vector<16x384xf32>
    %317 = arith.index_cast %c5_i32 : i32 to index
    %c0_103 = arith.constant 0 : index
    %c0_104 = arith.constant 0 : index
    %318 = vector.load %arg10[%317, %c0_103, %c0_104] : memref<8x8x384xf32, #tpu.memory_space<vmem>>, vector<1x8x384xf32>
    %319 = vector.shape_cast %318 : vector<1x8x384xf32> to vector<8x384xf32>
    %320 = arith.index_cast %311 : i32 to index
    %c0_105 = arith.constant 0 : index
    %c0_106 = arith.constant 0 : index
    %321 = vector.load %arg11[%320, %c0_105, %c0_106] : memref<8x8x384xf32, #tpu.memory_space<vmem>>, vector<1x8x384xf32>
    %322 = vector.shape_cast %321 : vector<1x8x384xf32> to vector<8x384xf32>
    %323 = tpu.concatenate %319, %322 in 0 : vector<8x384xf32>, vector<8x384xf32> -> vector<16x384xf32>
    %324 = arith.index_cast %c5_i32 : i32 to index
    %c0_107 = arith.constant 0 : index
    %c0_108 = arith.constant 0 : index
    %325 = vector.load %arg1[%324, %c0_107, %c0_108] : memref<8x8x1xf32, #tpu.memory_space<vmem>>, vector<1x8x1xf32>
    %326 = vector.shape_cast %325 : vector<1x8x1xf32> to vector<8x1xf32>
    %327 = arith.index_cast %c5_i32 : i32 to index
    %c0_109 = arith.constant 0 : index
    %c0_110 = arith.constant 0 : index
    %328 = vector.load %arg2[%327, %c0_109, %c0_110] : memref<8x8x1xf32, #tpu.memory_space<vmem>>, vector<1x8x1xf32>
    %329 = vector.shape_cast %328 : vector<1x8x1xf32> to vector<8x1xf32>
    %330 = tpu.concatenate %326, %329 in 0 : vector<8x1xf32>, vector<8x1xf32> -> vector<16x1xf32>
    %331 = vector.extract_strided_slice %323 {offsets = [0, 0], sizes = [16, 128], strides = [1, 1]} : vector<16x384xf32> to vector<16x128xf32>
    %332 = vector.extract_strided_slice %316 {offsets = [0, 0], sizes = [16, 128], strides = [1, 1]} : vector<16x384xf32> to vector<16x128xf32>
    %333 = arith.addf %331, %332 : vector<16x128xf32>
    %334 = arith.negf %333 : vector<16x128xf32>
    %335 = math.exp %334 : vector<16x128xf32>
    %cst_111 = arith.constant 1.000000e+00 : f32
    %336 = vector.broadcast %cst_111 : f32 to vector<16x128xf32>
    %337 = arith.addf %336, %335 : vector<16x128xf32>
    %338 = arith.divf %336, %337 : vector<16x128xf32>
    %339 = vector.extract_strided_slice %323 {offsets = [0, 128], sizes = [16, 128], strides = [1, 1]} : vector<16x384xf32> to vector<16x128xf32>
    %340 = vector.extract_strided_slice %316 {offsets = [0, 128], sizes = [16, 128], strides = [1, 1]} : vector<16x384xf32> to vector<16x128xf32>
    %341 = arith.addf %339, %340 : vector<16x128xf32>
    %342 = arith.negf %341 : vector<16x128xf32>
    %343 = math.exp %342 : vector<16x128xf32>
    %cst_112 = arith.constant 1.000000e+00 : f32
    %344 = vector.broadcast %cst_112 : f32 to vector<16x128xf32>
    %345 = arith.addf %344, %343 : vector<16x128xf32>
    %346 = arith.divf %344, %345 : vector<16x128xf32>
    %347 = vector.extract_strided_slice %323 {offsets = [0, 256], sizes = [16, 128], strides = [1, 1]} : vector<16x384xf32> to vector<16x128xf32>
    %348 = vector.extract_strided_slice %316 {offsets = [0, 256], sizes = [16, 128], strides = [1, 1]} : vector<16x384xf32> to vector<16x128xf32>
    %349 = arith.mulf %338, %348 : vector<16x128xf32>
    %350 = arith.addf %347, %349 : vector<16x128xf32>
    %351 = math.tanh %350 : vector<16x128xf32>
    %352 = tpu.concatenate %301, %302 in 0 : vector<8x128xf32>, vector<8x128xf32> -> vector<16x128xf32>
    %cst_113 = arith.constant 1.000000e+00 : f32
    %353 = vector.broadcast %cst_113 : f32 to vector<16x128xf32>
    %354 = arith.subf %353, %346 : vector<16x128xf32>
    %355 = arith.mulf %354, %351 : vector<16x128xf32>
    %356 = arith.mulf %346, %352 : vector<16x128xf32>
    %357 = arith.addf %355, %356 : vector<16x128xf32>
    %358 = vector.broadcast %330 : vector<16x1xf32> to vector<16x128xf32>
    %359 = arith.mulf %357, %358 : vector<16x128xf32>
    %360 = vector.extract_strided_slice %359 {offsets = [0, 0], sizes = [8, 128], strides = [1, 1]} : vector<16x128xf32> to vector<8x128xf32>
    %361 = vector.extract_strided_slice %359 {offsets = [8, 0], sizes = [8, 128], strides = [1, 1]} : vector<16x128xf32> to vector<8x128xf32>
    %362 = arith.index_cast %c5_i32 : i32 to index
    %c0_114 = arith.constant 0 : index
    %c0_115 = arith.constant 0 : index
    %363 = vector.load %arg12[%362, %c0_114, %c0_115] : memref<8x8x128xf32, #tpu.memory_space<vmem>>, vector<1x8x128xf32>
    %364 = vector.shape_cast %363 : vector<1x8x128xf32> to vector<8x128xf32>
    %365 = vector.shape_cast %360 : vector<8x128xf32> to vector<1x8x128xf32>
    tpu.vector_store %arg12[%362, %c0_114, %c0_115], %365 {strides = array<i32>} : memref<8x8x128xf32, #tpu.memory_space<vmem>>, vector<1x8x128xf32>,
    %366 = arith.index_cast %311 : i32 to index
    %c0_116 = arith.constant 0 : index
    %c0_117 = arith.constant 0 : index
    %367 = vector.load %arg13[%366, %c0_116, %c0_117] : memref<8x8x128xf32, #tpu.memory_space<vmem>>, vector<1x8x128xf32>
    %368 = vector.shape_cast %367 : vector<1x8x128xf32> to vector<8x128xf32>
    %369 = vector.shape_cast %361 : vector<8x128xf32> to vector<1x8x128xf32>
    tpu.vector_store %arg13[%366, %c0_116, %c0_117], %369 {strides = array<i32>} : memref<8x8x128xf32, #tpu.memory_space<vmem>>, vector<1x8x128xf32>,
    %c6_i32 = arith.constant 6 : i32
    %c7_i32_118 = arith.constant 7 : i32
    %370 = arith.subi %c7_i32_118, %c6_i32 : i32
    %371 = tpu.concatenate %360, %14 in 1 : vector<8x128xf32>, vector<8x128xf32> -> vector<8x256xf32>
    %372 = tpu.concatenate %14, %361 in 1 : vector<8x128xf32>, vector<8x128xf32> -> vector<8x256xf32>
    %373 = tpu.concatenate %371, %372 in 0 : vector<8x256xf32>, vector<8x256xf32> -> vector<16x256xf32>
    %cst_119 = arith.constant dense<0.000000e+00> : vector<16x384xf32>
    %374 = tpu.matmul %373, %12, %cst_119 {dimension_numbers = #tpu.dot_dimension_numbers<[1], [0], [0], [1], [0, 0, 1, 1], [], []>} : vector<16x256xf32>, vector<256x384xf32>, vector<16x384xf32> -> vector<16x384xf32>
    %375 = arith.addf %374, %13 : vector<16x384xf32>
    %376 = arith.index_cast %c6_i32 : i32 to index
    %c0_120 = arith.constant 0 : index
    %c0_121 = arith.constant 0 : index
    %377 = vector.load %arg10[%376, %c0_120, %c0_121] : memref<8x8x384xf32, #tpu.memory_space<vmem>>, vector<1x8x384xf32>
    %378 = vector.shape_cast %377 : vector<1x8x384xf32> to vector<8x384xf32>
    %379 = arith.index_cast %370 : i32 to index
    %c0_122 = arith.constant 0 : index
    %c0_123 = arith.constant 0 : index
    %380 = vector.load %arg11[%379, %c0_122, %c0_123] : memref<8x8x384xf32, #tpu.memory_space<vmem>>, vector<1x8x384xf32>
    %381 = vector.shape_cast %380 : vector<1x8x384xf32> to vector<8x384xf32>
    %382 = tpu.concatenate %378, %381 in 0 : vector<8x384xf32>, vector<8x384xf32> -> vector<16x384xf32>
    %383 = arith.index_cast %c6_i32 : i32 to index
    %c0_124 = arith.constant 0 : index
    %c0_125 = arith.constant 0 : index
    %384 = vector.load %arg1[%383, %c0_124, %c0_125] : memref<8x8x1xf32, #tpu.memory_space<vmem>>, vector<1x8x1xf32>
    %385 = vector.shape_cast %384 : vector<1x8x1xf32> to vector<8x1xf32>
    %386 = arith.index_cast %c6_i32 : i32 to index
    %c0_126 = arith.constant 0 : index
    %c0_127 = arith.constant 0 : index
    %387 = vector.load %arg2[%386, %c0_126, %c0_127] : memref<8x8x1xf32, #tpu.memory_space<vmem>>, vector<1x8x1xf32>
    %388 = vector.shape_cast %387 : vector<1x8x1xf32> to vector<8x1xf32>
    %389 = tpu.concatenate %385, %388 in 0 : vector<8x1xf32>, vector<8x1xf32> -> vector<16x1xf32>
    %390 = vector.extract_strided_slice %382 {offsets = [0, 0], sizes = [16, 128], strides = [1, 1]} : vector<16x384xf32> to vector<16x128xf32>
    %391 = vector.extract_strided_slice %375 {offsets = [0, 0], sizes = [16, 128], strides = [1, 1]} : vector<16x384xf32> to vector<16x128xf32>
    %392 = arith.addf %390, %391 : vector<16x128xf32>
    %393 = arith.negf %392 : vector<16x128xf32>
    %394 = math.exp %393 : vector<16x128xf32>
    %cst_128 = arith.constant 1.000000e+00 : f32
    %395 = vector.broadcast %cst_128 : f32 to vector<16x128xf32>
    %396 = arith.addf %395, %394 : vector<16x128xf32>
    %397 = arith.divf %395, %396 : vector<16x128xf32>
    %398 = vector.extract_strided_slice %382 {offsets = [0, 128], sizes = [16, 128], strides = [1, 1]} : vector<16x384xf32> to vector<16x128xf32>
    %399 = vector.extract_strided_slice %375 {offsets = [0, 128], sizes = [16, 128], strides = [1, 1]} : vector<16x384xf32> to vector<16x128xf32>
    %400 = arith.addf %398, %399 : vector<16x128xf32>
    %401 = arith.negf %400 : vector<16x128xf32>
    %402 = math.exp %401 : vector<16x128xf32>
    %cst_129 = arith.constant 1.000000e+00 : f32
    %403 = vector.broadcast %cst_129 : f32 to vector<16x128xf32>
    %404 = arith.addf %403, %402 : vector<16x128xf32>
    %405 = arith.divf %403, %404 : vector<16x128xf32>
    %406 = vector.extract_strided_slice %382 {offsets = [0, 256], sizes = [16, 128], strides = [1, 1]} : vector<16x384xf32> to vector<16x128xf32>
    %407 = vector.extract_strided_slice %375 {offsets = [0, 256], sizes = [16, 128], strides = [1, 1]} : vector<16x384xf32> to vector<16x128xf32>
    %408 = arith.mulf %397, %407 : vector<16x128xf32>
    %409 = arith.addf %406, %408 : vector<16x128xf32>
    %410 = math.tanh %409 : vector<16x128xf32>
    %411 = tpu.concatenate %360, %361 in 0 : vector<8x128xf32>, vector<8x128xf32> -> vector<16x128xf32>
    %cst_130 = arith.constant 1.000000e+00 : f32
    %412 = vector.broadcast %cst_130 : f32 to vector<16x128xf32>
    %413 = arith.subf %412, %405 : vector<16x128xf32>
    %414 = arith.mulf %413, %410 : vector<16x128xf32>
    %415 = arith.mulf %405, %411 : vector<16x128xf32>
    %416 = arith.addf %414, %415 : vector<16x128xf32>
    %417 = vector.broadcast %389 : vector<16x1xf32> to vector<16x128xf32>
    %418 = arith.mulf %416, %417 : vector<16x128xf32>
    %419 = vector.extract_strided_slice %418 {offsets = [0, 0], sizes = [8, 128], strides = [1, 1]} : vector<16x128xf32> to vector<8x128xf32>
    %420 = vector.extract_strided_slice %418 {offsets = [8, 0], sizes = [8, 128], strides = [1, 1]} : vector<16x128xf32> to vector<8x128xf32>
    %421 = arith.index_cast %c6_i32 : i32 to index
    %c0_131 = arith.constant 0 : index
    %c0_132 = arith.constant 0 : index
    %422 = vector.load %arg12[%421, %c0_131, %c0_132] : memref<8x8x128xf32, #tpu.memory_space<vmem>>, vector<1x8x128xf32>
    %423 = vector.shape_cast %422 : vector<1x8x128xf32> to vector<8x128xf32>
    %424 = vector.shape_cast %419 : vector<8x128xf32> to vector<1x8x128xf32>
    tpu.vector_store %arg12[%421, %c0_131, %c0_132], %424 {strides = array<i32>} : memref<8x8x128xf32, #tpu.memory_space<vmem>>, vector<1x8x128xf32>,
    %425 = arith.index_cast %370 : i32 to index
    %c0_133 = arith.constant 0 : index
    %c0_134 = arith.constant 0 : index
    %426 = vector.load %arg13[%425, %c0_133, %c0_134] : memref<8x8x128xf32, #tpu.memory_space<vmem>>, vector<1x8x128xf32>
    %427 = vector.shape_cast %426 : vector<1x8x128xf32> to vector<8x128xf32>
    %428 = vector.shape_cast %420 : vector<8x128xf32> to vector<1x8x128xf32>
    tpu.vector_store %arg13[%425, %c0_133, %c0_134], %428 {strides = array<i32>} : memref<8x8x128xf32, #tpu.memory_space<vmem>>, vector<1x8x128xf32>,
    %c7_i32_135 = arith.constant 7 : i32
    %c7_i32_136 = arith.constant 7 : i32
    %429 = arith.subi %c7_i32_136, %c7_i32_135 : i32
    %430 = tpu.concatenate %419, %14 in 1 : vector<8x128xf32>, vector<8x128xf32> -> vector<8x256xf32>
    %431 = tpu.concatenate %14, %420 in 1 : vector<8x128xf32>, vector<8x128xf32> -> vector<8x256xf32>
    %432 = tpu.concatenate %430, %431 in 0 : vector<8x256xf32>, vector<8x256xf32> -> vector<16x256xf32>
    %cst_137 = arith.constant dense<0.000000e+00> : vector<16x384xf32>
    %433 = tpu.matmul %432, %12, %cst_137 {dimension_numbers = #tpu.dot_dimension_numbers<[1], [0], [0], [1], [0, 0, 1, 1], [], []>} : vector<16x256xf32>, vector<256x384xf32>, vector<16x384xf32> -> vector<16x384xf32>
    %434 = arith.addf %433, %13 : vector<16x384xf32>
    %435 = arith.index_cast %c7_i32_135 : i32 to index
    %c0_138 = arith.constant 0 : index
    %c0_139 = arith.constant 0 : index
    %436 = vector.load %arg10[%435, %c0_138, %c0_139] : memref<8x8x384xf32, #tpu.memory_space<vmem>>, vector<1x8x384xf32>
    %437 = vector.shape_cast %436 : vector<1x8x384xf32> to vector<8x384xf32>
    %438 = arith.index_cast %429 : i32 to index
    %c0_140 = arith.constant 0 : index
    %c0_141 = arith.constant 0 : index
    %439 = vector.load %arg11[%438, %c0_140, %c0_141] : memref<8x8x384xf32, #tpu.memory_space<vmem>>, vector<1x8x384xf32>
    %440 = vector.shape_cast %439 : vector<1x8x384xf32> to vector<8x384xf32>
    %441 = tpu.concatenate %437, %440 in 0 : vector<8x384xf32>, vector<8x384xf32> -> vector<16x384xf32>
    %442 = arith.index_cast %c7_i32_135 : i32 to index
    %c0_142 = arith.constant 0 : index
    %c0_143 = arith.constant 0 : index
    %443 = vector.load %arg1[%442, %c0_142, %c0_143] : memref<8x8x1xf32, #tpu.memory_space<vmem>>, vector<1x8x1xf32>
    %444 = vector.shape_cast %443 : vector<1x8x1xf32> to vector<8x1xf32>
    %445 = arith.index_cast %c7_i32_135 : i32 to index
    %c0_144 = arith.constant 0 : index
    %c0_145 = arith.constant 0 : index
    %446 = vector.load %arg2[%445, %c0_144, %c0_145] : memref<8x8x1xf32, #tpu.memory_space<vmem>>, vector<1x8x1xf32>
    %447 = vector.shape_cast %446 : vector<1x8x1xf32> to vector<8x1xf32>
    %448 = tpu.concatenate %444, %447 in 0 : vector<8x1xf32>, vector<8x1xf32> -> vector<16x1xf32>
    %449 = vector.extract_strided_slice %441 {offsets = [0, 0], sizes = [16, 128], strides = [1, 1]} : vector<16x384xf32> to vector<16x128xf32>
    %450 = vector.extract_strided_slice %434 {offsets = [0, 0], sizes = [16, 128], strides = [1, 1]} : vector<16x384xf32> to vector<16x128xf32>
    %451 = arith.addf %449, %450 : vector<16x128xf32>
    %452 = arith.negf %451 : vector<16x128xf32>
    %453 = math.exp %452 : vector<16x128xf32>
    %cst_146 = arith.constant 1.000000e+00 : f32
    %454 = vector.broadcast %cst_146 : f32 to vector<16x128xf32>
    %455 = arith.addf %454, %453 : vector<16x128xf32>
    %456 = arith.divf %454, %455 : vector<16x128xf32>
    %457 = vector.extract_strided_slice %441 {offsets = [0, 128], sizes = [16, 128], strides = [1, 1]} : vector<16x384xf32> to vector<16x128xf32>
    %458 = vector.extract_strided_slice %434 {offsets = [0, 128], sizes = [16, 128], strides = [1, 1]} : vector<16x384xf32> to vector<16x128xf32>
    %459 = arith.addf %457, %458 : vector<16x128xf32>
    %460 = arith.negf %459 : vector<16x128xf32>
    %461 = math.exp %460 : vector<16x128xf32>
    %cst_147 = arith.constant 1.000000e+00 : f32
    %462 = vector.broadcast %cst_147 : f32 to vector<16x128xf32>
    %463 = arith.addf %462, %461 : vector<16x128xf32>
    %464 = arith.divf %462, %463 : vector<16x128xf32>
    %465 = vector.extract_strided_slice %441 {offsets = [0, 256], sizes = [16, 128], strides = [1, 1]} : vector<16x384xf32> to vector<16x128xf32>
    %466 = vector.extract_strided_slice %434 {offsets = [0, 256], sizes = [16, 128], strides = [1, 1]} : vector<16x384xf32> to vector<16x128xf32>
    %467 = arith.mulf %456, %466 : vector<16x128xf32>
    %468 = arith.addf %465, %467 : vector<16x128xf32>
    %469 = math.tanh %468 : vector<16x128xf32>
    %470 = tpu.concatenate %419, %420 in 0 : vector<8x128xf32>, vector<8x128xf32> -> vector<16x128xf32>
    %cst_148 = arith.constant 1.000000e+00 : f32
    %471 = vector.broadcast %cst_148 : f32 to vector<16x128xf32>
    %472 = arith.subf %471, %464 : vector<16x128xf32>
    %473 = arith.mulf %472, %469 : vector<16x128xf32>
    %474 = arith.mulf %464, %470 : vector<16x128xf32>
    %475 = arith.addf %473, %474 : vector<16x128xf32>
    %476 = vector.broadcast %448 : vector<16x1xf32> to vector<16x128xf32>
    %477 = arith.mulf %475, %476 : vector<16x128xf32>
    %478 = vector.extract_strided_slice %477 {offsets = [0, 0], sizes = [8, 128], strides = [1, 1]} : vector<16x128xf32> to vector<8x128xf32>
    %479 = vector.extract_strided_slice %477 {offsets = [8, 0], sizes = [8, 128], strides = [1, 1]} : vector<16x128xf32> to vector<8x128xf32>
    %480 = arith.index_cast %c7_i32_135 : i32 to index
    %c0_149 = arith.constant 0 : index
    %c0_150 = arith.constant 0 : index
    %481 = vector.load %arg12[%480, %c0_149, %c0_150] : memref<8x8x128xf32, #tpu.memory_space<vmem>>, vector<1x8x128xf32>
    %482 = vector.shape_cast %481 : vector<1x8x128xf32> to vector<8x128xf32>
    %483 = vector.shape_cast %478 : vector<8x128xf32> to vector<1x8x128xf32>
    tpu.vector_store %arg12[%480, %c0_149, %c0_150], %483 {strides = array<i32>} : memref<8x8x128xf32, #tpu.memory_space<vmem>>, vector<1x8x128xf32>,
    %484 = arith.index_cast %429 : i32 to index
    %c0_151 = arith.constant 0 : index
    %c0_152 = arith.constant 0 : index
    %485 = vector.load %arg13[%484, %c0_151, %c0_152] : memref<8x8x128xf32, #tpu.memory_space<vmem>>, vector<1x8x128xf32>
    %486 = vector.shape_cast %485 : vector<1x8x128xf32> to vector<8x128xf32>
    %487 = vector.shape_cast %479 : vector<8x128xf32> to vector<1x8x128xf32>
    tpu.vector_store %arg13[%484, %c0_151, %c0_152], %487 {strides = array<i32>} : memref<8x8x128xf32, #tpu.memory_space<vmem>>, vector<1x8x128xf32>,
    %c8_i32 = arith.constant 8 : i32
    %c0_153 = arith.constant 0 : index
    %c0_154 = arith.constant 0 : index
    %c0_155 = arith.constant 0 : index
    %488 = vector.load %arg12[%c0_153, %c0_154, %c0_155] : memref<8x8x128xf32, #tpu.memory_space<vmem>>, vector<8x8x128xf32>
    %c0_156 = arith.constant 0 : index
    %c0_157 = arith.constant 0 : index
    %c0_158 = arith.constant 0 : index
    %489 = vector.load %arg13[%c0_156, %c0_157, %c0_158] : memref<8x8x128xf32, #tpu.memory_space<vmem>>, vector<8x8x128xf32>
    %490 = arith.addf %488, %489 : vector<8x8x128xf32>
    %cst_159 = arith.constant 5.000000e-01 : f32
    %491 = vector.broadcast %cst_159 : f32 to vector<8x8x128xf32>
    %492 = arith.mulf %491, %490 : vector<8x8x128xf32>
    %c0_160 = arith.constant 0 : index
    %c0_161 = arith.constant 0 : index
    %493 = vector.load %arg8[%c0_160, %c0_161] : memref<1x128xf32, #tpu.memory_space<vmem>>, vector<1x128xf32>
    %494 = vector.shape_cast %493 : vector<1x128xf32> to vector<1x1x128xf32>
    %495 = vector.broadcast %494 : vector<1x1x128xf32> to vector<8x8x128xf32>
    %496 = arith.mulf %492, %495 : vector<8x8x128xf32>
    %cst_162 = arith.constant dense<0.000000e+00> : vector<8x8xf32>
    %497 = vector.multi_reduction <add>, %496, %cst_162 [2] : vector<8x8x128xf32> to vector<8x8xf32>
    %c0_163 = arith.constant 0 : index
    %c0_164 = arith.constant 0 : index
    %498 = vector.load %arg3[%c0_163, %c0_164] : memref<8x8xf32, #tpu.memory_space<vmem>>, vector<8x8xf32>
    %cst_165 = arith.constant 0.000000e+00 : f32
    %499 = vector.broadcast %cst_165 : f32 to vector<8x8xf32>
    %500 = arith.cmpf ogt, %498, %499 : vector<8x8xf32>
    %cst_166 = arith.constant -1.000000e+04 : f32
    %501 = vector.broadcast %cst_166 : f32 to vector<8x8xf32>
    %502 = arith.select %500, %497, %501 : vector<8x8xi1>, vector<8x8xf32>
    %cst_167 = arith.constant 1.000000e+01 : f32
    %503 = vector.broadcast %cst_167 : f32 to vector<8x8xf32>
    %504 = arith.mulf %502, %503 : vector<8x8xf32>
    %cst_168 = arith.constant dense<0xFF800000> : vector<8xf32>
    %505 = vector.multi_reduction <maximumf>, %504, %cst_168 [0] : vector<8x8xf32> to vector<8xf32>
    %506 = vector.shape_cast %505 : vector<8xf32> to vector<1x8xf32>
    %507 = vector.broadcast %506 : vector<1x8xf32> to vector<8x8xf32>
    %508 = arith.subf %504, %507 : vector<8x8xf32>
    %509 = math.exp %508 : vector<8x8xf32>
    %cst_169 = arith.constant dense<0.000000e+00> : vector<8xf32>
    %510 = vector.multi_reduction <add>, %509, %cst_169 [0] : vector<8x8xf32> to vector<8xf32>
    %511 = vector.shape_cast %510 : vector<8xf32> to vector<1x8xf32>
    %512 = tpu.reciprocal %511 {approx = true} : vector<1x8xf32> -> vector<1x8xf32>
    %513 = vector.broadcast %512 : vector<1x8xf32> to vector<8x8xf32>
    %514 = arith.mulf %509, %513 : vector<8x8xf32>
    %c0_170 = arith.constant 0 : index
    %c0_171 = arith.constant 0 : index
    %515 = vector.load %arg9[%c0_170, %c0_171] : memref<8x8xf32, #tpu.memory_space<vmem>>, vector<8x8xf32>
    tpu.vector_store %arg9[%c0_170, %c0_171], %514 {strides = array<i32>} : memref<8x8xf32, #tpu.memory_space<vmem>>, vector<8x8xf32>,
    return
  }
}

</mosaic_0001>

<bundles_post_ra>
// kernel: tpu_custom_call.1
= control target key start
LH: loop header
LB: loop body
LE: loop exit
PB: predicated region body
PF: predicated region fallthrough
CT: control target
= control target key end

     0   :  { %14 = vsyncpa [#allocation7], 0  ;;  %s5251_s0 = inlined_call_operand.vmem [shape: f32[64,32], index: 0, kind: input, shape index: {}]   ;;  %s5252_s1 = inlined_call_operand.vmem [shape: f32[8,8,1], index: 1, kind: input, shape index: {}]   ;;  %s5253_s2 = inlined_call_operand.vmem [shape: f32[8,8,1], index: 2, kind: input, shape index: {}]   ;;  %s5254_s3 = inlined_call_operand.vmem [shape: f32[8,8], index: 3, kind: input, shape index: {}]   ;;  %s5255_s4 = inlined_call_operand.vmem [shape: f32[32,768], index: 4, kind: input, shape index: {}]   ;;  %s5256_s5 = inlined_call_operand.hbm [shape: f32[256,384], index: 5, kind: input, shape index: {}]   ;;  %s5257_s6 = inlined_call_operand.vmem [shape: f32[1,768], index: 6, kind: input, shape index: {}]   ;;  %s5258_s7 = inlined_call_operand.vmem [shape: f32[16,384], index: 7, kind: input, shape index: {}]   ;;  %s5259_s8 = inlined_call_operand.vmem [shape: f32[1,128], index: 8, kind: input, shape index: {}]   ;;  %s5260_s9 = inlined_call_operand.hbm [shape: f32[8,8], index: 9, kind: output, shape index: {}]  }
   0x1   :  { %15 = vsyncpa [#allocation8], 0  ;;  %s4000_s30 = smov [#allocation6]   ;;  %s3952_s13 = scalar_lea.hbm %s5256_s5, 12288 }
   0x2   :  { %s31_s10 = sshll.u32 %s4000_s30, 4  ;;  %p3953_p0 = scmp.ne.s32.totalorder %s5256_s5, %s3952_s13  ;;  %s32_s10 = int_to_ptr.vmem [resolvable:$true] %s31_s10 }
   0x3   :  { %p3956_p1 = scmp.lt.u32.totalorder %s3952_s13, %s5256_s5 }
   0x5   :  { %p3958_p2 = pnand %p3956_p1, %p3953_p0 }
   0x7   :  { %3961 = shalt.err (!%p3958_p2)
}
   0x8   :  { %s3962_s18 = scalar_lea.vmem %s32_s10, 12288  ;;  %p3967_p4 = scmp.lt.s32.totalorder %s32_s10, %s32_s10 }
   0x9   :  { %p3963_p3 = scmp.ne.s32.totalorder %s32_s10, %s3962_s18  ;;  %p3968_p5 = scmp.lt.s32.totalorder %s3962_s18, %s3962_s18 }
   0xb   :  { %p3969_p6 = por %p3968_p5, %p3967_p4 }
   0xd   :  { %p3970_p7 = pnand %p3969_p6, %p3963_p3 }
   0xf   :  { %3973 = shalt.err (!%p3970_p7)
}
  0x10   :  { %s4001_s19 = smov 384   ;;  %s4002_s20 = smov 24  }
  0x11   :  { %37 = dma.hbm_to_vmem [thread:$0]  %s5256_s5, 12288, %s32_s10, [#allocation7], %s4001_s19, %s4001_s19, %s4002_s20  }
  0x12   :  { %3996 = dma.done.wait [#allocation7], 12288  }
  0x13   :  { %3997 = vsyncadd [#allocation7], 4294955008  ;;  %v5261_v0 = vmov 0.0   ;;  %v56_v1 = vld [vmem:[%s5255_s4 + $0x8] sm:$0xff]  ;;  %v62_v2 = vld [vmem:[%s5255_s4 + $0x38] sm:$0xff]  ;;  %v4004_v4 = vmov 0  }
  0x14   :  { %224 = vmatprep.mubr.f32.mxu1 %v5261_v0  ;;  %200 = vmatprep.mubr.f32.mxu0 %v5261_v0  ;;  %v55_v3 = vld [vmem:[%s5255_s4] sm:$0xff]  ;;  %v2930_v5 = vpack.c.bf16 %v62_v2, %v56_v1  ;;  %v61_v6 = vld [vmem:[%s5255_s4 + $0x30] sm:$0xff]  ;;  %v68_v7 = vld [vmem:[%s5255_s4 + $0x68] sm:$0xff]  ;;  %vm111_vm0 = vcmask 261120   ;;  %vm2502_vm1 = vcmask 1041409   ;;  %vm2504_vm2 = vcmask 1042434  }
  0x15   :  { %3780 = vset.pattern.permute.xlu0 %v4004_v4  ;;  %3781 = vset.pattern.permute.xlu1 %v4004_v4  ;;  %v74_v8 = vld [vmem:[%s5255_s4 + $0x98] sm:$0xff]  ;;  %v2932_v9 = vpack.c.bf16 %v61_v6, %v55_v3  ;;  %v67_v11 = vld [vmem:[%s5255_s4 + $0x60] sm:$0xff]  ;;  %v73_v12 = vld [vmem:[%s5255_s4 + $0x90] sm:$0xff]  ;;  %vm2506_vm3 = vcmask 1043459   ;;  %vm2508_vm4 = vcmask 1044484   ;;  %vm2510_vm5 = vcmask 1045509  }
  0x16   :  { %v2934_v10 = vpack.c.bf16 %v74_v8, %v68_v7  ;;  %3722 = vmatprep.subr.bf16.mxu1 %v2930_v5  ;;  %v58_v13 = vld [vmem:[%s5255_s4 + $0x18] sm:$0xff]  ;;  %v64_v14 = vld [vmem:[%s5255_s4 + $0x48] sm:$0xff]  ;;  %2931 = vmatprep.subr.bf16.mxu0 %v2930_v5  ;;  %v2936_v15 = vpack.c.bf16 %v73_v12, %v67_v11  ;;  %v57_v17 = vld [vmem:[%s5255_s4 + $0x10] sm:$0xff]  ;;  %vm2512_vm6 = vcmask 1046534   ;;  %vm2514_vm7 = vcmask 1047559  }
  0x17   :  { %3724 = vmatpush1.bf16.msra.mxu1 %v2932_v9  ;;  %2933 = vmatpush1.bf16.msra.mxu0 %v2932_v9  ;;  %v2938_v16 = vpack.c.bf16 %v64_v14, %v58_v13  ;;  %v63_v18 = vld [vmem:[%s5255_s4 + $0x40] sm:$0xff]  ;;  %v70_v19 = vld [vmem:[%s5255_s4 + $0x78] sm:$0xff]  ;;  %v76_v20 = vld [vmem:[%s5255_s4 + $0xa8] sm:$0xff]  ;;  %vm2519_vm9 = vcmask 64512  }
  0x18   :  { %3723 = vmatprep.subr.bf16.mxu1 %v2934_v10  ;;  %2935 = vmatprep.subr.bf16.mxu0 %v2934_v10  ;;  %v4115_v21 = vld [vmem:[%s5251_s0 + $0x20] sm:$0xff]  ;;  %v2940_v22 = vpack.c.bf16 %v63_v18, %v57_v17  ;;  %v2942_v23 = vpack.c.bf16 %v76_v20, %v70_v19  ;;  %v69_v24 = vld [vmem:[%s5255_s4 + $0x70] sm:$0xff]  ;;  %v524_v26 = vld [vmem:[#allocation6 + $0x8] sm:$0xff] }
  0x19   :  { %v75_v25 = vld [vmem:[%s5255_s4 + $0xa0] sm:$0xff]  ;;  %v4136_v29 = vld [vmem:[%s5251_s0 + $0x28] sm:$0xff]  ;;  %v4147_v32 = vld [vmem:[%s5251_s0 + $0x30] sm:$0xff] }
  0x1a   :  { %v527_v27 = vld [vmem:[#allocation6 + $0x20] sm:$0xff]  ;;  %v2944_v30 = vpack.c.bf16 %v75_v25, %v69_v24  ;;  %v4155_v33 = vld [vmem:[%s5251_s0 + $0x8] sm:$0xff]  ;;  %v4161_v34 = vld [vmem:[%s5251_s0 + $0x38] sm:$0xff] }
  0x1b   :  { %3725 = vmatpush1.bf16.msra.mxu1 %v2936_v15  ;;  %2937 = vmatpush1.bf16.msra.mxu0 %v2936_v15  ;;  %v4126_v28 = vld [vmem:[%s5251_s0] sm:$0xff]  ;;  %v4138_v31 = vpack.c.bf16 %v527_v27, %v524_v26  ;;  %v526_v36 = vld [vmem:[#allocation6 + $0x18] sm:$0xff]  ;;  %v533_v38 = vld [vmem:[#allocation6 + $0x50] sm:$0xff] }
  0x1c   :  { %2939 = vmatprep.subr.bf16.mxu1 %v2938_v16  ;;  %v523_v35 = vld [vmem:[#allocation6] sm:$0xff]  ;;  %v530_v37 = vld [vmem:[#allocation6 + $0x38] sm:$0xff]  ;;  %v4171_v39 = vld [vmem:[%s5251_s0 + $0x10] sm:$0xff] }
  0x1d   :  { %5332 = vst [vmem:[#allocation12_spill] sm:$0xff] %v4138_v31  ;;  %v60_v40 = vld [vmem:[%s5255_s4 + $0x28] sm:$0xff]  ;;  %v66_v41 = vld [vmem:[%s5255_s4 + $0x58] sm:$0xff]  ;;  %v4180_v42 = vpack.c.bf16 %v526_v36, %v523_v35  ;;  %v529_v43 = vld [vmem:[#allocation6 + $0x30] sm:$0xff]  ;;  %v4187_v46 = vpack.c.bf16 %v533_v38, %v530_v37 }
  0x1e   :  { %2559 = vmatmul.mubr.msk.f32.vlgmr.msra.gmra.mrb[0].mxu1 %vm111_vm0, %v4115_v21  ;;  %2555 = vmatmul.mubr.msk.f32.vlgmr.msra.gmra.mrb[0].mxu0 %vm111_vm0, %v4126_v28  ;;  %v2946_v44 = vpack.c.bf16 %v66_v41, %v60_v40  ;;  %v59_v45 = vld [vmem:[%s5255_s4 + $0x20] sm:$0xff]  ;;  %v532_v47 = vld [vmem:[#allocation6 + $0x48] sm:$0xff]  ;;  %v65_v49 = vld [vmem:[%s5255_s4 + $0x50] sm:$0xff] }
  0x1f   :  { %2941 = vmatpush1.bf16.msra.mxu1 %v2940_v22  ;;  %230 = vmatprep.mubr.f32.mxu1 %v5261_v0  ;;  %v536_v48 = vld [vmem:[#allocation6 + $0x68] sm:$0xff]  ;;  %v539_v50 = vld [vmem:[#allocation6 + $0x80] sm:$0xff]  ;;  %v2948_v51 = vpack.c.bf16 %v65_v49, %v59_v45  ;;  %v78_v53 = vld [vmem:[%s5255_s4 + $0xb8] sm:$0xff]  ;;  %v4208_v57 = vpack.c.bf16 %v532_v47, %v529_v43 }
  0x20   :  { %2943 = vmatprep.subr.bf16.mxu1 %v2942_v23  ;;  %206 = vmatprep.mubr.f32.mxu0 %v5261_v0  ;;  %v72_v52 = vld [vmem:[%s5255_s4 + $0x88] sm:$0xff]  ;;  %v71_v55 = vld [vmem:[%s5255_s4 + $0x80] sm:$0xff]  ;;  %v77_v56 = vld [vmem:[%s5255_s4 + $0xb0] sm:$0xff]  ;;  %v4212_v58 = vpack.c.bf16 %v539_v50, %v536_v48 }
  0x21   :  { %2947 = vmatprep.subr.bf16.mxu0 %v2946_v44  ;;  %v2950_v54 = vpack.c.bf16 %v78_v53, %v72_v52  ;;  %v535_v59 = vld [vmem:[#allocation6 + $0x60] sm:$0xff]  ;;  %v538_v60 = vld [vmem:[#allocation6 + $0x78] sm:$0xff]  ;;  %v2952_v62 = vpack.c.bf16 %v77_v56, %v71_v55  ;;  %v545_v1 = vld [vmem:[#allocation6 + $0xb0] sm:$0xff] }
  0x22   :  { %2560 = vmatmul.mubr.msk.f32.gmra.mrb[2].mxu1 %vm111_vm0, %v4136_v29  ;;  %2556 = vmatmul.mubr.msk.f32.gmra.mrb[2].mxu0 %vm111_vm0, %v4155_v33  ;;  %v4217_v61 = vld [vmem:[%s5251_s0 + $0x18] sm:$0xff]  ;;  %v4225_v2 = vpack.c.bf16 %v538_v60, %v535_v59  ;;  %v541_v4 = vld [vmem:[#allocation6 + $0x90] sm:$0xff]  ;;  %v544_v5 = vld [vmem:[#allocation6 + $0xa8] sm:$0xff] }
  0x23   :  { %236 = vmatprep.mubr.f32.mxu1 %v5261_v0  ;;  %2945 = vmatpush1.bf16.msra.mxu1 %v2944_v30  ;;  %v542_v63 = vld [vmem:[#allocation6 + $0x98] sm:$0xff]  ;;  %v548_v6 = vld [vmem:[#allocation6 + $0xc8] sm:$0xff]  ;;  %v551_v7 = vld [vmem:[#allocation6 + $0xe0] sm:$0xff]  ;;  %v4235_v8 = vpack.c.bf16 %v544_v5, %v541_v4 }
  0x24   :  { %2955 = vmatprep.subr.bf16.mxu1 %v4138_v31  ;;  %212 = vmatprep.mubr.f32.mxu0 %v5261_v0  ;;  %v4229_v3 = vpack.c.bf16 %v545_v1, %v542_v63  ;;  %v4239_v9 = vpack.c.bf16 %v551_v7, %v548_v6  ;;  %v547_v10 = vld [vmem:[#allocation6 + $0xc0] sm:$0xff]  ;;  %v550_v11 = vld [vmem:[#allocation6 + $0xd8] sm:$0xff]  ;;  %v557_v13 = vld [vmem:[#allocation6 + $0x110] sm:$0xff] }
  0x25   :  { %2949 = vmatpush1.bf16.msra.mxu0 %v2948_v51  ;;  %v554_v12 = vld [vmem:[#allocation6 + $0xf8] sm:$0xff]  ;;  %v4249_v14 = vpack.c.bf16 %v550_v11, %v547_v10  ;;  %v553_v16 = vld [vmem:[#allocation6 + $0xf0] sm:$0xff]  ;;  %v556_v17 = vld [vmem:[#allocation6 + $0x108] sm:$0xff] }
  0x26   :  { %2561 = vmatmul.mubr.msk.f32.gmra.mrb[4].mxu1 %vm111_vm0, %v4147_v32  ;;  %2557 = vmatmul.mubr.msk.f32.gmra.mrb[4].mxu0 %vm111_vm0, %v4171_v39  ;;  %v4253_v15 = vpack.c.bf16 %v557_v13, %v554_v12  ;;  %v560_v18 = vld [vmem:[#allocation6 + $0x128] sm:$0xff]  ;;  %v563_v19 = vld [vmem:[#allocation6 + $0x140] sm:$0xff]  ;;  %v4265_v22 = vpack.c.bf16 %v556_v17, %v553_v16  ;;  %v562_v26 = vld [vmem:[#allocation6 + $0x138] sm:$0xff] }
  0x27   :  { %242 = vmatprep.mubr.f32.mxu1 %v5261_v0  ;;  %218 = vmatprep.mubr.f32.mxu0 %v5261_v0  ;;  %v784_v20 = vld [vmem:[%s5252_s1] sm:$0xff]  ;;  %v4272_v24 = vpack.c.bf16 %v563_v19, %v560_v18  ;;  %v566_v27 = vld [vmem:[#allocation6 + $0x158] sm:$0xff]  ;;  %v565_v36 = vld [vmem:[#allocation6 + $0x150] sm:$0xff] }
  0x28   :  { %2951 = vmatprep.subr.bf16.mxu0 %v2950_v54  ;;  %830 = vperm.xlu0 %3780, %v784_v20   ;;  %v785_v23 = vld [vmem:[%s5253_s2] sm:$0xff]  ;;  %v568_v37 = vld [vmem:[#allocation6 + $0x168] sm:$0xff]  ;;  %v2595_v41 = vld [vmem:[%s5252_s1 + $0x18] sm:$0xff] }
  0x29   :  { %2953 = vmatpush1.bf16.msra.mxu0 %v2952_v62  ;;  %5333 = vst [vmem:[#allocation13_spill] sm:$0xff] %v4272_v24  ;;  %v559_v25 = vld [vmem:[#allocation6 + $0x120] sm:$0xff]  ;;  %v572_v38 = vld [vmem:[#allocation6 + $0x188] sm:$0xff]  ;;  %v4297_v40 = vpack.c.bf16 %v568_v37, %v565_v36  ;;  %v574_v45 = vld [vmem:[#allocation6 + $0x198] sm:$0xff] }
  0x2a   :  { %2562 = vmatmul.mubr.msk.f32.gmra.mrb[6].mxu1 %vm111_vm0, %v4161_v34  ;;  %2558 = vmatmul.mubr.msk.f32.gmra.mrb[6].mxu0 %vm111_vm0, %v4217_v61  ;;  %v4281_v30 = vpack.c.bf16 %v562_v26, %v559_v25  ;;  %v571_v44 = vld [vmem:[#allocation6 + $0x180] sm:$0xff]  ;;  %v578_v47 = vld [vmem:[#allocation6 + $0x1b8] sm:$0xff]  ;;  %v581_v48 = vld [vmem:[#allocation6 + $0x1d0] sm:$0xff] }
  0x2b   :  { %313 = vmatprep.mubr.f32.mxu1 %v5261_v0  ;;  %426 = vmatprep.mubr.f32.mxu0 %v5261_v0  ;;  %5336 = vst [vmem:[#allocation16_spill] sm:$0xff] %v4297_v40  ;;  %v4313_v49 = vpack.c.bf16 %v574_v45, %v571_v44  ;;  %v4320_v50 = vpack.c.bf16 %v581_v48, %v578_v47  ;;  %v577_v51 = vld [vmem:[#allocation6 + $0x1b0] sm:$0xff]  ;;  %v580_v52 = vld [vmem:[#allocation6 + $0x1c8] sm:$0xff]  ;;  %v587_v54 = vld [vmem:[#allocation6 + $0x200] sm:$0xff] }
  0x2c   :  { %3147 = vmatprep.subr.bf16.mxu0 %v4138_v31  ;;  %835 = vperm.xlu0 %3780, %v785_v23   ;;  %5334 = vst [vmem:[#allocation14_spill] sm:$0xff] %v4281_v30  ;;  %v584_v53 = vld [vmem:[#allocation6 + $0x1e8] sm:$0xff]  ;;  %v4328_v55 = vpack.c.bf16 %v580_v52, %v577_v51  ;;  %v583_v59 = vld [vmem:[#allocation6 + $0x1e0] sm:$0xff]  ;;  %v586_v60 = vld [vmem:[#allocation6 + $0x1f8] sm:$0xff] }
  0x2d   :  { %5338 = vst [vmem:[#allocation18_spill] sm:$0xff] %v4313_v49  ;;  %5339 = vst [vmem:[#allocation19_spill] sm:$0xff] %v4320_v50  ;;  %v4331_v56 = vpack.c.bf16 %v587_v54, %v584_v53  ;;  %v4339_v62 = vpack.c.bf16 %v586_v60, %v583_v59  ;;  %v589_v1 = vld [vmem:[#allocation6 + $0x210] sm:$0xff]  ;;  %v592_v4 = vld [vmem:[#allocation6 + $0x228] sm:$0xff] }
  0x2e   :  { %2563 = vmatmul.mubr.msk.f32.vlgmr.msra.gmra.mrb[8].mxu1 %vm111_vm0, %v4126_v28  ;;  %2571 = vmatmul.mubr.msk.f32.vlgmr.msra.gmra.mrb[8].mxu0 %vm111_vm0, %v4126_v28  ;;  %v569_v28 = vld [vmem:[#allocation6 + $0x170] sm:$0xff]  ;;  %5340 = vst [vmem:[#allocation20_spill] sm:$0xff] %v4328_v55  ;;  %v599_v5 = vld [vmem:[#allocation6 + $0x260] sm:$0xff]  ;;  %v4350_v6 = vpack.c.bf16 %v592_v4, %v589_v1  ;;  %v598_v11 = vld [vmem:[#allocation6 + $0x258] sm:$0xff] }
  0x2f   :  { %2957 = vmatpush1.bf16.msra.mxu1 %v4180_v42  ;;  %319 = vmatprep.mubr.f32.mxu1 %v5261_v0  ;;  %v4288_v35 = vpack.c.bf16 %v569_v28, %v566_v27  ;;  %5341 = vst [vmem:[#allocation21_spill] sm:$0xff] %v4331_v56  ;;  %5342 = vst [vmem:[#allocation22_spill] sm:$0xff] %v4339_v62  ;;  %v595_v10 = vld [vmem:[#allocation6 + $0x240] sm:$0xff]  ;;  %v602_v12 = vld [vmem:[#allocation6 + $0x278] sm:$0xff] }
  0x30   :  { %2959 = vmatprep.subr.bf16.mxu1 %v4187_v46  ;;  %432 = vmatprep.mubr.f32.mxu0 %v5261_v0  ;;  %5344 = vst [vmem:[#allocation24_spill] sm:$0xff] %v4350_v6  ;;  %v4358_v13 = vpack.c.bf16 %v598_v11, %v595_v10  ;;  %v601_v17 = vld [vmem:[#allocation6 + $0x270] sm:$0xff]  ;;  %v604_v18 = vld [vmem:[#allocation6 + $0x288] sm:$0xff]  ;;  %v611_v20 = vld [vmem:[#allocation6 + $0x2c0] sm:$0xff] }
  0x31   :  { %3149 = vmatpush1.bf16.msra.mxu0 %v4180_v42  ;;  %5335 = vst [vmem:[#allocation15_spill] sm:$0xff] %v4288_v35  ;;  %v608_v19 = vld [vmem:[#allocation6 + $0x2a8] sm:$0xff]  ;;  %v4366_v23 = vpack.c.bf16 %v604_v18, %v601_v17  ;;  %v607_v26 = vld [vmem:[#allocation6 + $0x2a0] sm:$0xff]  ;;  %v610_v27 = vld [vmem:[#allocation6 + $0x2b8] sm:$0xff] }
  0x32   :  { %2564 = vmatmul.mubr.msk.f32.gmra.mrb[10].mxu1 %vm111_vm0, %v4155_v33  ;;  %3151 = vmatprep.subr.bf16.mxu0 %v4187_v46  ;;  %5346 = vst [vmem:[#allocation26_spill] sm:$0xff] %v4358_v13  ;;  %v4369_v25 = vpack.c.bf16 %v611_v20, %v608_v19  ;;  %v614_v28 = vld [vmem:[#allocation6 + $0x2d8] sm:$0xff]  ;;  %v4374_v36 = vpack.c.bf16 %v610_v27, %v607_v26  ;;  %v576_v44 = vld [vmem:[#allocation6 + $0x1a8] sm:$0xff]  ;;  %v525_v48 = vld [vmem:[#allocation6 + $0x10] sm:$0xff] }
  0x33   :  { %2961 = vmatpush1.bf16.msra.mxu1 %v4208_v57  ;;  %325 = vmatprep.mubr.f32.mxu1 %v5261_v0  ;;  %5348 = vst [vmem:[#allocation28_spill] sm:$0xff] %v4366_v23  ;;  %v579_v51 = vld [vmem:[#allocation6 + $0x1c0] sm:$0xff]  ;;  %v582_v52 = vld [vmem:[#allocation6 + $0x1d8] sm:$0xff]  ;;  %v597_v20 = vld [vmem:[#allocation6 + $0x250] sm:$0xff] }
  0x34   :  { %2963 = vmatprep.subr.bf16.mxu1 %v4212_v58  ;;  %2572 = vmatmul.mubr.msk.f32.gmra.mrb[10].mxu0 %vm111_vm0, %v4155_v33  ;;  %v2589_v33 = vld [vmem:[%s5252_s1 + $0x10] sm:$0xff]  ;;  %5349 = vst [vmem:[#allocation29_spill] sm:$0xff] %v4369_v25  ;;  %5350 = vst [vmem:[#allocation30_spill] sm:$0xff] %v4374_v36  ;;  %v4393_v54 = vpack.c.bf16 %v582_v52, %v579_v51  ;;  %v531_v59 = vld [vmem:[#allocation6 + $0x40] sm:$0xff] }
  0x35   :  { %438 = vmatprep.mubr.f32.mxu0 %v5261_v0  ;;  %3153 = vmatpush1.bf16.msra.mxu0 %v4208_v57  ;;  %v534_v60 = vld [vmem:[#allocation6 + $0x58] sm:$0xff]  ;;  %v591_v10 = vld [vmem:[#allocation6 + $0x220] sm:$0xff]  ;;  %v600_v26 = vld [vmem:[#allocation6 + $0x268] sm:$0xff] }
  0x36   :  { %2565 = vmatmul.mubr.msk.f32.gmra.mrb[12].mxu1 %vm111_vm0, %v4171_v39  ;;  %3155 = vmatprep.subr.bf16.mxu0 %v4212_v58  ;;  %v4400_v1 = vpack.c.bf16 %v534_v60, %v531_v59  ;;  %v594_v11 = vld [vmem:[#allocation6 + $0x238] sm:$0xff]  ;;  %v543_v18 = vld [vmem:[#allocation6 + $0xa0] sm:$0xff]  ;;  %v2613_v27 = vld [vmem:[%s5252_s1 + $0x30] sm:$0xff] }
  0x37   :  { %2965 = vmatpush1.bf16.msra.mxu1 %v4225_v2  ;;  %331 = vmatprep.mubr.f32.mxu1 %v5261_v0  ;;  %v4415_v17 = vpack.c.bf16 %v594_v11, %v591_v10  ;;  %v546_v19 = vld [vmem:[#allocation6 + $0xb8] sm:$0xff]  ;;  %v555_v52 = vld [vmem:[#allocation6 + $0x100] sm:$0xff]  ;;  %v609_v60 = vld [vmem:[#allocation6 + $0x2b0] sm:$0xff] }
  0x38   :  { %2967 = vmatprep.subr.bf16.mxu1 %v4229_v3  ;;  %2573 = vmatmul.mubr.msk.f32.gmra.mrb[12].mxu0 %vm111_vm0, %v4171_v39  ;;  %v575_v39 = vld [vmem:[#allocation6 + $0x1a0] sm:$0xff]  ;;  %v558_v59 = vld [vmem:[#allocation6 + $0x118] sm:$0xff]  ;;  %v564_v10 = vld [vmem:[#allocation6 + $0x148] sm:$0xff] }
  0x39   :  { %444 = vmatprep.mubr.f32.mxu0 %v5261_v0  ;;  %3157 = vmatpush1.bf16.msra.mxu0 %v4225_v2  ;;  %v4304_v43 = vpack.c.bf16 %v575_v39, %v572_v38  ;;  %v613_v38 = vld [vmem:[#allocation6 + $0x2d0] sm:$0xff]  ;;  %v616_v39 = vld [vmem:[#allocation6 + $0x2e8] sm:$0xff]  ;;  %v615_v11 = vld [vmem:[#allocation6 + $0x2e0] sm:$0xff] }
  0x3a   :  { %2566 = vmatmul.mubr.msk.f32.gmra.mrb[14].mxu1 %vm111_vm0, %v4217_v61  ;;  %1273 = vperm.xlu0 %3780, %v2589_v33   ;;  %v617_v33 = vld [vmem:[#allocation6 + $0x2f0] sm:$0xff]  ;;  %v4382_v45 = vpack.c.bf16 %v616_v39, %v613_v38  ;;  %v552_v39 = vld [vmem:[#allocation6 + $0xe8] sm:$0xff] }
  0x3b   :  { %2969 = vmatpush1.bf16.msra.mxu1 %v4235_v8  ;;  %337 = vmatprep.mubr.f32.mxu1 %v5261_v0  ;;  %5337 = vst [vmem:[#allocation17_spill] sm:$0xff] %v4304_v43  ;;  %v4377_v37 = vpack.c.bf16 %v617_v33, %v614_v28  ;;  %v4424_v28 = vpack.c.bf16 %v546_v19, %v543_v18  ;;  %v549_v38 = vld [vmem:[#allocation6 + $0xd0] sm:$0xff] }
  0x3c   :  { %2971 = vmatprep.subr.bf16.mxu1 %v4239_v9  ;;  %2574 = vmatmul.mubr.msk.f32.gmra.mrb[14].mxu0 %vm111_vm0, %v4217_v61  ;;  %v593_v61 = vld [vmem:[#allocation6 + $0x230] sm:$0xff]  ;;  %5352 = vst [vmem:[#allocation32_spill] sm:$0xff] %v4382_v45  ;;  %v4427_v33 = vpack.c.bf16 %v600_v26, %v597_v20  ;;  %v567_v20 = vld [vmem:[#allocation6 + $0x160] sm:$0xff]  ;;  %v570_v26 = vld [vmem:[#allocation6 + $0x178] sm:$0xff] }
  0x3d   :  { %450 = vmatprep.mubr.f32.mxu0 %v5261_v0  ;;  %3159 = vmatprep.subr.bf16.mxu0 %v4229_v3  ;;  %5351 = vst [vmem:[#allocation31_spill] sm:$0xff] %v4377_v37 }
  0x3e   :  { %2567 = vmatmul.mubr.msk.f32.gmra.mrb[16].mxu1 %vm111_vm0, %v4115_v21  ;;  %1495 = vperm.xlu0 %3780, %v2595_v41   ;;  %v573_v41 = vld [vmem:[#allocation6 + $0x190] sm:$0xff] }
  0x3f   :  { %2973 = vmatpush1.bf16.msra.mxu1 %v4249_v14  ;;  %343 = vmatprep.mubr.f32.mxu1 %v5261_v0  ;;  %v4385_v47 = vpack.c.bf16 %v576_v44, %v573_v41  ;;  %v603_v41 = vld [vmem:[#allocation6 + $0x280] sm:$0xff]  ;;  %v606_v44 = vld [vmem:[#allocation6 + $0x298] sm:$0xff] }
  0x40   :  { %2975 = vmatprep.subr.bf16.mxu1 %v4253_v15  ;;  %2575 = vmatmul.mubr.msk.f32.gmra.mrb[16].mxu0 %vm111_vm0, %v4115_v21  ;;  %v2601_v21 = vld [vmem:[%s5252_s1 + $0x20] sm:$0xff]  ;;  %v4438_v51 = vpack.c.bf16 %v606_v44, %v603_v41 }
  0x41   :  { %456 = vmatprep.mubr.f32.mxu0 %v5261_v0  ;;  %3161 = vmatpush1.bf16.msra.mxu0 %v4235_v8 }
  0x42   :  { %2568 = vmatmul.mubr.msk.f32.gmra.mrb[18].mxu1 %vm111_vm0, %v4136_v29  ;;  %1717 = vperm.xlu0 %3780, %v2601_v21   ;;  %v528_v21 = vld [vmem:[#allocation6 + $0x28] sm:$0xff] }
  0x43   :  { %2977 = vmatpush1.bf16.msra.mxu1 %v4265_v22  ;;  %349 = vmatprep.mubr.f32.mxu1 %v5261_v0  ;;  %v4390_v53 = vpack.c.bf16 %v528_v21, %v525_v48  ;;  %v2620_v48 = vld [vmem:[%s5253_s2 + $0x38] sm:$0xff]  ;;  %v4435_v21 = vpack.c.bf16 %v552_v39, %v549_v38 }
  0x44   :  { %2979 = vmatprep.subr.bf16.mxu1 %v4272_v24  ;;  %2576 = vmatmul.mubr.msk.f32.gmra.mrb[18].mxu0 %vm111_vm0, %v4136_v29  ;;  %v590_v29 = vld [vmem:[#allocation6 + $0x218] sm:$0xff] }
  0x45   :  { %462 = vmatprep.mubr.f32.mxu0 %v5261_v0  ;;  %3163 = vmatprep.subr.bf16.mxu0 %v4239_v9  ;;  %v4342_v63 = vpack.c.bf16 %v593_v61, %v590_v29  ;;  %v585_v29 = vld [vmem:[#allocation6 + $0x1f0] sm:$0xff]  ;;  %v588_v61 = vld [vmem:[#allocation6 + $0x208] sm:$0xff] }
  0x46   :  { %2569 = vmatmul.mubr.msk.f32.gmra.mrb[20].mxu1 %vm111_vm0, %v4147_v32  ;;  %3165 = vmatpush1.bf16.msra.mxu0 %v4249_v14  ;;  %v4403_v4 = vpack.c.bf16 %v588_v61, %v585_v29  ;;  %v612_v29 = vld [vmem:[#allocation6 + $0x2c8] sm:$0xff]  ;;  %v4443_v61 = vpack.c.bf16 %v558_v59, %v555_v52 }
  0x47   :  { %2981 = vmatpush1.bf16.msra.mxu1 %v4281_v30  ;;  %355 = vmatprep.mubr.f32.mxu1 %v5261_v0  ;;  %5343 = vst [vmem:[#allocation23_spill] sm:$0xff] %v4342_v63 }
  0x48   :  { %2983 = vmatprep.subr.bf16.mxu1 %v4288_v35  ;;  %2577 = vmatmul.mubr.msk.f32.gmra.mrb[20].mxu0 %vm111_vm0, %v4147_v32  ;;  %v596_v32 = vld [vmem:[#allocation6 + $0x248] sm:$0xff] }
  0x49   :  { %468 = vmatprep.mubr.f32.mxu0 %v5261_v0  ;;  %3167 = vmatprep.subr.bf16.mxu0 %v4253_v15  ;;  %v4353_v7 = vpack.c.bf16 %v599_v5, %v596_v32  ;;  %v537_v32 = vld [vmem:[#allocation6 + $0x70] sm:$0xff]  ;;  %v540_v5 = vld [vmem:[#allocation6 + $0x88] sm:$0xff] }
  0x4a   :  { %2570 = vmatmul.mubr.msk.f32.gmra.mrb[22].mxu1 %vm111_vm0, %v4161_v34  ;;  %3169 = vmatpush1.bf16.msra.mxu0 %v4265_v22 }
  0x4b   :  { %2985 = vmatpush1.bf16.msra.mxu1 %v4297_v40  ;;  %689 = vmatprep.mubr.f32.mxu1 %v5261_v0  ;;  %5345 = vst [vmem:[#allocation25_spill] sm:$0xff] %v4353_v7 }
  0x4c   :  { %2987 = vmatprep.subr.bf16.mxu1 %v4304_v43  ;;  %2578 = vmatmul.mubr.msk.f32.gmra.mrb[22].mxu0 %vm111_vm0, %v4161_v34  ;;  %v605_v34 = vld [vmem:[#allocation6 + $0x290] sm:$0xff] }
  0x4d   :  { %1129 = vmatprep.mubr.f32.mxu0 %v5261_v0  ;;  %3171 = vmatprep.subr.bf16.mxu0 %v4272_v24  ;;  %v4361_v16 = vpack.c.bf16 %v605_v34, %v602_v12  ;;  %v2607_v12 = vld [vmem:[%s5252_s1 + $0x28] sm:$0xff]  ;;  %v4411_v34 = vpack.c.bf16 %v540_v5, %v537_v32  ;;  %v4446_v32 = vpack.c.bf16 %v612_v29, %v609_v60  ;;  %v561_v5 = vld [vmem:[#allocation6 + $0x130] sm:$0xff] }
  0x4e   :  { %3173 = vmatpush1.bf16.msra.mxu0 %v4281_v30  ;;  %1939 = vperm.xlu0 %3780, %v2607_v12   ;;  %v618_v12 = vld [vmem:[#allocation6 + $0x2f8] sm:$0xff]  ;;  %v4449_v18 = vpack.c.bf16 %v564_v10, %v561_v5 }
  0x4f   :  { %2989 = vmatpush1.bf16.msra.mxu1 %v4313_v49  ;;  %3175 = vmatprep.subr.bf16.mxu0 %v4288_v35  ;;  %5347 = vst [vmem:[#allocation27_spill] sm:$0xff] %v4361_v16  ;;  %v4452_v19 = vpack.c.bf16 %v618_v12, %v615_v11 }
  0x50   :  { %2991 = vmatprep.subr.bf16.mxu1 %v4320_v50 }
  0x52   :  { %3177 = vmatpush1.bf16.msra.mxu0 %v4297_v40  ;;  %2161 = vperm.xlu0 %3780, %v2613_v27   ;;  %v4455_v27 = vpack.c.bf16 %v570_v26, %v567_v20  ;;  %v4525_v26 = vld [vmem:[%s5257_s6] sm:$0x3f] }
  0x53   :  { %2993 = vmatpush1.bf16.msra.mxu1 %v4328_v55  ;;  %3179 = vmatprep.subr.bf16.mxu0 %v4304_v43 }
  0x54   :  { %2995 = vmatprep.subr.bf16.mxu1 %v4331_v56 }
  0x56   :  { %3181 = vmatpush1.bf16.msra.mxu0 %v4313_v49  ;;  %2387 = vperm.xlu0 %3780, %v2620_v48   ;;  %v5263_v48 = vlaneseq }
  0x57   :  { %2997 = vmatpush1.bf16.msra.mxu1 %v4339_v62  ;;  %3183 = vmatprep.subr.bf16.mxu0 %v4320_v50 }
  0x58   :  { %2999 = vmatprep.subr.bf16.mxu1 %v4342_v63  ;;  %v4509_v60 = vshrl.u32 %v5263_v48, 7 }
  0x5a   :  { %3185 = vmatpush1.bf16.msra.mxu0 %v4328_v55  ;;  %5357 = vst [vmem:[#allocation37_spill] sm:$0xff] %v4509_v60  ;;  %v95_v11 = vsub.s32 3, %v4509_v60 }
  0x5b   :  { %3001 = vmatpush1.bf16.msra.mxu1 %v4350_v6  ;;  %3187 = vmatprep.subr.bf16.mxu0 %v4331_v56 }
  0x5c   :  { %3003 = vmatprep.subr.bf16.mxu1 %v4353_v7  ;;  %v4530_v48 = vrot.slane %v4525_v26, %v95_v11 }
  0x5e   :  { %3189 = vmatpush1.bf16.msra.mxu0 %v4339_v62 }
  0x5f   :  { %3005 = vmatpush1.bf16.msra.mxu1 %v4358_v13  ;;  %3191 = vmatprep.subr.bf16.mxu0 %v4342_v63 }
  0x60   :  { %3007 = vmatprep.subr.bf16.mxu1 %v4361_v16 }
  0x62   :  { %3193 = vmatpush1.bf16.msra.mxu0 %v4350_v6 }
  0x63   :  { %3009 = vmatpush1.bf16.msra.mxu1 %v4366_v23  ;;  %3195 = vmatprep.subr.bf16.mxu0 %v4353_v7 }
  0x64   :  { %3011 = vmatprep.subr.bf16.mxu1 %v4369_v25 }
  0x66   :  { %3197 = vmatpush1.bf16.msra.mxu0 %v4358_v13 }
  0x67   :  { %3013 = vmatpush1.bf16.msra.mxu1 %v4374_v36  ;;  %3199 = vmatprep.subr.bf16.mxu0 %v4361_v16 }
  0x68   :  { %3015 = vmatprep.subr.bf16.mxu1 %v4377_v37 }
  0x6a   :  { %3201 = vmatpush1.bf16.msra.mxu0 %v4366_v23 }
  0x6b   :  { %3017 = vmatpush1.bf16.msra.mxu1 %v4382_v45  ;;  %3203 = vmatprep.subr.bf16.mxu0 %v4369_v25 }
  0x6c   :  { %3019 = vmatprep.subr.bf16.mxu1 %v4385_v47 }
  0x6e   :  { %690 = vmatmul.mubr.f32.vlgmr.msra.gmra.mrb[24].mxu1 %v5261_v0  ;;  %3205 = vmatpush1.bf16.msra.mxu0 %v4374_v36 }
  0x6f   :  { %3021 = vmatpush3.bf16.msra.mxu1 %v4390_v53  ;;  %695 = vmatprep.mubr.f32.mxu1 %v5261_v0 }
  0x70   :  { %3023 = vmatprep.subr.bf16.mxu1 %v4393_v54  ;;  %3207 = vmatprep.subr.bf16.mxu0 %v4377_v37 }
  0x72   :  { %696 = vmatmul.mubr.f32.gmra.mrb[26].mxu1 %v5261_v0  ;;  %3209 = vmatpush1.bf16.msra.mxu0 %v4382_v45 }
  0x73   :  { %3025 = vmatpush3.bf16.msra.mxu1 %v4400_v1  ;;  %766 = vmatprep.mubr.f32.mxu1 %v5261_v0 }
  0x74   :  { %3027 = vmatprep.subr.bf16.mxu1 %v4403_v4  ;;  %3243 = vmatprep.subr.bf16.mxu0 %v4138_v31 }
  0x77   :  { %3029 = vmatpush3.bf16.msra.mxu1 %v4411_v34 }
  0x78   :  { %3031 = vmatprep.subr.bf16.mxu1 %v4415_v17 }
  0x7b   :  { %3033 = vmatpush3.bf16.msra.mxu1 %v4424_v28 }
  0x7c   :  { %3035 = vmatprep.subr.bf16.mxu1 %v4427_v33 }
  0x7f   :  { %3037 = vmatpush3.bf16.msra.mxu1 %v4435_v21 }
  0x80   :  { %3039 = vmatprep.subr.bf16.mxu1 %v4438_v51 }
  0x83   :  { %3041 = vmatpush3.bf16.msra.mxu1 %v4443_v61 }
  0x84   :  { %3043 = vmatprep.subr.bf16.mxu1 %v4446_v32 }
  0x87   :  { %3045 = vmatpush3.bf16.msra.mxu1 %v4449_v18 }
  0x88   :  { %3047 = vmatprep.subr.bf16.mxu1 %v4452_v19 }
  0x8b   :  { %3049 = vmatpush3.bf16.msra.mxu1 %v4455_v27 }
  0x8c   :  { %3051 = vmatprep.subr.bf16.mxu1 %v4138_v31  ;;  %v103_v31 = vsub.s32 5, %v4509_v60 }
  0x8e   :  { %767 = vmatmul.mubr.f32.vlgmr.msra.gmra.mrb[28].mxu1 %v5261_v0 }
  0x8f   :  { %771 = vmatprep.mubr.f32.mxu1 %v5261_v0  ;;  %3053 = vmatpush1.bf16.msra.mxu1 %v4180_v42 }
  0x90   :  { %3055 = vmatprep.subr.bf16.mxu1 %v4187_v46 }
  0x92   :  { %772 = vmatmul.mubr.f32.gmra.mrb[30].mxu1 %v5261_v0 }
  0x93   :  { %3057 = vmatpush1.bf16.msra.mxu1 %v4208_v57  ;;  %907 = vmatprep.mubr.f32.mxu1 %v5261_v0 }
  0x94   :  { %3059 = vmatprep.subr.bf16.mxu1 %v4212_v58 }
  0x97   :  { %3061 = vmatpush1.bf16.msra.mxu1 %v4225_v2 }
  0x98   :  { %3063 = vmatprep.subr.bf16.mxu1 %v4229_v3 }
  0x9b   :  { %3065 = vmatpush1.bf16.msra.mxu1 %v4235_v8 }
  0x9c   :  { %3067 = vmatprep.subr.bf16.mxu1 %v4239_v9 }
  0x9f   :  { %3069 = vmatpush1.bf16.msra.mxu1 %v4249_v14 }
  0xa0   :  { %3071 = vmatprep.subr.bf16.mxu1 %v4253_v15 }
  0xa3   :  { %3073 = vmatpush1.bf16.msra.mxu1 %v4265_v22 }
  0xa4   :  { %3075 = vmatprep.subr.bf16.mxu1 %v4272_v24 }
  0xa7   :  { %3077 = vmatpush1.bf16.msra.mxu1 %v4281_v30 }
  0xa8   :  { %3079 = vmatprep.subr.bf16.mxu1 %v4288_v35 }
  0xab   :  { %3081 = vmatpush1.bf16.msra.mxu1 %v4297_v40 }
  0xac   :  { %3083 = vmatprep.subr.bf16.mxu1 %v4304_v43 }
  0xaf   :  { %3085 = vmatpush1.bf16.msra.mxu1 %v4313_v49 }
  0xb0   :  { %3087 = vmatprep.subr.bf16.mxu1 %v4320_v50 }
  0xb3   :  { %3089 = vmatpush1.bf16.msra.mxu1 %v4328_v55 }
  0xb4   :  { %3091 = vmatprep.subr.bf16.mxu1 %v4331_v56 }
  0xb7   :  { %3093 = vmatpush1.bf16.msra.mxu1 %v4339_v62 }
  0xb8   :  { %3095 = vmatprep.subr.bf16.mxu1 %v4342_v63 }
  0xbb   :  { %3097 = vmatpush1.bf16.msra.mxu1 %v4350_v6 }
  0xbc   :  { %3099 = vmatprep.subr.bf16.mxu1 %v4353_v7 }
  0xbf   :  { %3101 = vmatpush1.bf16.msra.mxu1 %v4358_v13 }
  0xc0   :  { %3103 = vmatprep.subr.bf16.mxu1 %v4361_v16 }
  0xc3   :  { %3105 = vmatpush1.bf16.msra.mxu1 %v4366_v23 }
  0xc4   :  { %3107 = vmatprep.subr.bf16.mxu1 %v4369_v25 }
  0xc7   :  { %3109 = vmatpush1.bf16.msra.mxu1 %v4374_v36 }
  0xc8   :  { %3111 = vmatprep.subr.bf16.mxu1 %v4377_v37 }
  0xcb   :  { %3113 = vmatpush1.bf16.msra.mxu1 %v4382_v45 }
  0xcc   :  { %3115 = vmatprep.subr.bf16.mxu1 %v4385_v47 }
  0xf1   :  { %v4496_v38 = vpop.f32.mrb[0].mxu1  ;;  %v4498_v39 = vpop.f32.mrb[0].mxu0 }
  0xf2   :  { %5353 = vst [vmem:[#allocation33_spill] sm:$0xff] %v4496_v38  ;;  %v4500_v41 = vpop.f32.mrb[1].mxu1  ;;  %v4502_v44 = vpop.f32.mrb[1].mxu0 }
  0xf3   :  { %5354 = vst [vmem:[#allocation34_spill] sm:$0xff] %v4500_v41  ;;  %v99_v41 = vsub.s32 4, %v4509_v60 }
  0xf5   :  { %v4504_v52 = vpop.f32.mrb[2].mxu1  ;;  %v4515_v10 = vpop.f32.mrb[2].mxu0  ;;  %v4550_v37 = vrot.slane %v4525_v26, %v99_v41 }
  0xf6   :  { %5355 = vst [vmem:[#allocation35_spill] sm:$0xff] %v4504_v52  ;;  %v4506_v59 = vpop.f32.mrb[3].mxu1  ;;  %v4518_v12 = vpop.f32.mrb[3].mxu0 }
  0xf7   :  { %5356 = vst [vmem:[#allocation36_spill] sm:$0xff] %v4506_v59 }
  0xf9   :  { %v4511_v29 = vpop.f32.mrb[4].mxu1 }
  0xfa   :  { %5358 = vst [vmem:[#allocation38_spill] sm:$0xff] %v4511_v29  ;;  %v4513_v5 = vpop.f32.mrb[5].mxu1 }
  0xfb   :  { %5359 = vst [vmem:[#allocation39_spill] sm:$0xff] %v4513_v5  ;;  %v91_v5 = vsub.s32 2, %v4509_v60 }
  0xfd   :  { %v4520_v20 = vpop.f32.mrb[6].mxu1 }
  0xfe   :  { %5360 = vst [vmem:[#allocation40_spill] sm:$0xff] %v4520_v20  ;;  %v4527_v0 = vpop.f32.mrb[7].mxu1  ;;  %v4539_v20 = vrot.slane %v4525_v26, %v91_v5 }
  0xff   :  { %5361 = vst [vmem:[#allocation41_spill] sm:$0xff] %v4527_v0 }
 0x101   :  { %v4533_v29 = vpop.f32.mrb[8].mxu1 }
 0x102   :  { %v317_v59 = vpop.f32.mrb[9].mxu1 }
 0x103   :  { %v4536_v52 = vadd.f32 %v317_v59, %v4530_v48 }
 0x105   :  { %5362 = vst [vmem:[#allocation42_spill] sm:$0xff] %v4536_v52  ;;  %v321_v38 = vpop.f32.mrb[10].mxu1  ;;  %v4553_v52 = vrot.slane %v4525_v26, %v103_v31 }
 0x106   :  { %v4544_v0 = vadd.f32 %v321_v38, %v4539_v20  ;;  %v323_v11 = vpop.f32.mrb[11].mxu1  ;;  %v428_v38 = vpop.f32.mrb[8].mxu0 }
 0x107   :  { %v4547_v45 = vadd.f32 %v323_v11, %v4530_v48  ;;  %v4562_v23 = vadd.f32 %v428_v38, %v4550_v37  ;;  %v430_v11 = vpop.f32.mrb[9].mxu0 }
 0x108   :  { %v4565_v41 = vadd.f32 %v430_v11, %v4553_v52 }
 0x109   :  { %5363 = vst [vmem:[#allocation43_spill] sm:$0xff] %v4547_v45  ;;  %v327_v59 = vpop.f32.mrb[12].mxu1  ;;  %5366 = vst [vmem:[#allocation46_spill] sm:$0xff] %v4562_v23 }
 0x10a   :  { %v4556_v5 = vadd.f32 %v327_v59, %v4539_v20  ;;  %v329_v36 = vpop.f32.mrb[13].mxu1  ;;  %5367 = vst [vmem:[#allocation47_spill] sm:$0xff] %v4565_v41 }
 0x10b   :  { %v4559_v25 = vadd.f32 %v329_v36, %v4530_v48 }
 0x10c   :  { %5364 = vst [vmem:[#allocation44_spill] sm:$0xff] %v4556_v5  ;;  %v434_v5 = vpop.f32.mrb[10].mxu0 }
 0x10d   :  { %5365 = vst [vmem:[#allocation45_spill] sm:$0xff] %v4559_v25  ;;  %v333_v45 = vpop.f32.mrb[14].mxu1  ;;  %v4574_v36 = vadd.f32 %v434_v5, %v4550_v37  ;;  %v436_v25 = vpop.f32.mrb[11].mxu0 }
 0x10e   :  { %v4568_v16 = vadd.f32 %v333_v45, %v4539_v20  ;;  %v335_v31 = vpop.f32.mrb[15].mxu1  ;;  %v4577_v38 = vadd.f32 %v436_v25, %v4553_v52  ;;  %v440_v41 = vpop.f32.mrb[12].mxu0 }
 0x10f   :  { %v4571_v59 = vadd.f32 %v335_v31, %v4530_v48  ;;  %5370 = vst [vmem:[#allocation50_spill] sm:$0xff] %v4574_v36  ;;  %v4586_v31 = vadd.f32 %v440_v41, %v4550_v37 }
 0x110   :  { %5368 = vst [vmem:[#allocation48_spill] sm:$0xff] %v4568_v16  ;;  %5371 = vst [vmem:[#allocation51_spill] sm:$0xff] %v4577_v38 }
 0x111   :  { %5369 = vst [vmem:[#allocation49_spill] sm:$0xff] %v4571_v59  ;;  %v339_v13 = vpop.f32.mrb[16].mxu1  ;;  %5374 = vst [vmem:[#allocation54_spill] sm:$0xff] %v4586_v31  ;;  %v442_v59 = vpop.f32.mrb[13].mxu0 }
 0x112   :  { %v4580_v23 = vadd.f32 %v339_v13, %v4539_v20  ;;  %v341_v11 = vpop.f32.mrb[17].mxu1  ;;  %v4589_v5 = vadd.f32 %v442_v59, %v4553_v52  ;;  %v446_v38 = vpop.f32.mrb[14].mxu0 }
 0x113   :  { %v4583_v45 = vadd.f32 %v341_v11, %v4530_v48  ;;  %v4598_v11 = vadd.f32 %v446_v38, %v4550_v37 }
 0x114   :  { %5372 = vst [vmem:[#allocation52_spill] sm:$0xff] %v4580_v23  ;;  %5375 = vst [vmem:[#allocation55_spill] sm:$0xff] %v4589_v5  ;;  %v448_v23 = vpop.f32.mrb[15].mxu0 }
 0x115   :  { %5373 = vst [vmem:[#allocation53_spill] sm:$0xff] %v4583_v45  ;;  %v345_v16 = vpop.f32.mrb[18].mxu1  ;;  %5378 = vst [vmem:[#allocation58_spill] sm:$0xff] %v4598_v11  ;;  %v4601_v41 = vadd.f32 %v448_v23, %v4553_v52  ;;  %v452_v5 = vpop.f32.mrb[16].mxu0 }
 0x116   :  { %v4592_v36 = vadd.f32 %v345_v16, %v4539_v20  ;;  %v347_v25 = vpop.f32.mrb[19].mxu1 }
 0x117   :  { %v4595_v13 = vadd.f32 %v347_v25, %v4530_v48  ;;  %5379 = vst [vmem:[#allocation59_spill] sm:$0xff] %v4601_v41  ;;  %v4610_v25 = vadd.f32 %v452_v5, %v4550_v37 }
 0x118   :  { %5376 = vst [vmem:[#allocation56_spill] sm:$0xff] %v4592_v36  ;;  %v454_v36 = vpop.f32.mrb[17].mxu0 }
 0x119   :  { %5377 = vst [vmem:[#allocation57_spill] sm:$0xff] %v4595_v13  ;;  %v351_v45 = vpop.f32.mrb[20].mxu1  ;;  %5381 = vst [vmem:[#allocation61_spill] sm:$0xff] %v4610_v25  ;;  %v4613_v38 = vadd.f32 %v454_v36, %v4553_v52  ;;  %v458_v41 = vpop.f32.mrb[18].mxu0  ;;  %v2584_v36 = vld [vmem:[%s5253_s2 + $0x8] sm:$0xff]  ;;  %v2590_v25 = vld [vmem:[%s5253_s2 + $0x10] sm:$0xff] }
 0x11a   :  { %v4604_v31 = vadd.f32 %v351_v45, %v4539_v20  ;;  %v353_v59 = vpop.f32.mrb[21].mxu1  ;;  %v4619_v45 = vadd.f32 %v458_v41, %v4550_v37 }
 0x11b   :  { %v4607_v16 = vadd.f32 %v353_v59, %v4530_v48  ;;  %5382 = vst [vmem:[#allocation62_spill] sm:$0xff] %v4613_v38  ;;  %v2583_v59 = vld [vmem:[%s5252_s1 + $0x8] sm:$0xff] }
 0x11c   :  { %5380 = vst [vmem:[#allocation60_spill] sm:$0xff] %v4604_v31  ;;  %5384 = vst [vmem:[#allocation64_spill] sm:$0xff] %v4619_v45  ;;  %v460_v31 = vpop.f32.mrb[19].mxu0  ;;  %1051 = vperm.xlu1 %3781, %v2583_v59   ;;  %v2596_v59 = vld [vmem:[%s5253_s2 + $0x18] sm:$0xff]  ;;  %v87_v45 = vsub.s32 1, %v4509_v60 }
 0x11d   :  { %v357_v13 = vpop.f32.mrb[22].mxu1  ;;  %v4625_v5 = vadd.f32 %v460_v31, %v4553_v52 }
 0x11e   :  { %v4616_v11 = vadd.f32 %v357_v13, %v4539_v20  ;;  %v359_v23 = vpop.f32.mrb[23].mxu1  ;;  %v464_v13 = vpop.f32.mrb[20].mxu0  ;;  %v4662_v7 = vrot.slane %v4525_v26, %v87_v45 }
 0x11f   :  { %5385 = vst [vmem:[#allocation65_spill] sm:$0xff] %v4625_v5  ;;  %v466_v38 = vpop.f32.mrb[21].mxu0  ;;  %v360_v55 = vadd.f32 %v359_v23, %v4530_v48 }
 0x120   :  { %5383 = vst [vmem:[#allocation63_spill] sm:$0xff] %v4616_v11  ;;  %v4631_v11 = vadd.f32 %v464_v13, %v4550_v37  ;;  %v4634_v41 = vadd.f32 %v466_v38, %v4553_v52  ;;  %1056 = vperm.xlu1 %3781, %v2584_v36   ;;  %v470_v31 = vpop.f32.mrb[22].mxu0  ;;  %v2602_v13 = vld [vmem:[%s5253_s2 + $0x20] sm:$0xff]  ;;  %v2608_v38 = vld [vmem:[%s5253_s2 + $0x28] sm:$0xff]  ;;  %v83_v36 = vsub.s32 0, %v4509_v60  ;;  %5387 = vst [vmem:[#allocation67_spill] sm:$0xff] %v4662_v7 }
 0x121   :  { %v4639_v5 = vpop.f32.mrb[23].mxu0  ;;  %v205_v6 = vadd.f32 %v4502_v44, %v4662_v7  ;;  %v4677_v60 = vld [vmem:[%s5258_s7 + $0x8] sm:$0xff]  ;;  %v4683_v44 = vld [vmem:[%s5258_s7 + $0x18] sm:$0xff]  ;;  %v471_v56 = vadd.f32 %v470_v31, %v4550_v37 }
 0x122   :  { %5389 = vst [vmem:[#allocation69_spill] sm:$0xff] %v4677_v60  ;;  %5390 = vst [vmem:[#allocation70_spill] sm:$0xff] %v4683_v44 }
 0x123   :  { %v3730_v45 = vadd.f32 %v4677_v60, %v205_v6 }
 0x124   :  { %1278 = vperm.xlu1 %3781, %v2590_v25   ;;  %v2614_v25 = vld [vmem:[%s5253_s2 + $0x30] sm:$0xff] }
 0x128   :  { %1500 = vperm.xlu1 %3781, %v2596_v59   ;;  %v4656_v59 = vrot.slane %v4525_v26, %v83_v36 }
 0x12a   :  { %5386 = vst [vmem:[#allocation66_spill] sm:$0xff] %v4656_v59 }
 0x12c   :  { %1722 = vperm.xlu1 %3781, %v2602_v13   ;;  %v2619_v13 = vld [vmem:[%s5252_s1 + $0x38] sm:$0xff] }
 0x130   :  { %1944 = vperm.xlu1 %3781, %v2608_v38   ;;  %v203_v38 = vadd.f32 %v4498_v39, %v4656_v59 }
 0x134   :  { %2166 = vperm.xlu1 %3781, %v2614_v25   ;;  %v4671_v25 = vld [vmem:[%s5258_s7] sm:$0xff] }
 0x135   :  { %5388 = vst [vmem:[#allocation68_spill] sm:$0xff] %v4671_v25  ;;  %v3727_v36 = vadd.f32 %v4671_v25, %v203_v38 }
 0x138   :  { %2382 = vperm.xlu1 %3781, %v2619_v13   ;;  %v4688_v13 = vld [vmem:[%s5258_s7 + $0x20] sm:$0xff] }
 0x141   :  { %v691_v26 = vpop.f32.mrb[24].mxu1 }
 0x142   :  { %v3728_v39 = vadd.f32 %v3727_v36, %v691_v26  ;;  %v693_v63 = vpop.f32.mrb[25].mxu1 }
 0x143   :  { %v3731_v62 = vadd.f32 %v3730_v45, %v693_v63 }
 0x144   :  { %v2579_v26 = vmul.f32 -1.442695, %v3728_v39 }
 0x145   :  { %v697_v38 = vpop.f32.mrb[26].mxu1  ;;  %v2581_v43 = vmul.f32 -1.442695, %v3731_v62 }
 0x146   :  { %v698_v6 = vadd.f32 %v697_v38, %v4683_v44  ;;  %v699_v36 = vpop.f32.mrb[27].mxu1  ;;  %3782 = vpow2.f32 %v2579_v26 }
 0x147   :  { %v700_v63 = vadd.f32 %v699_v36, %v4688_v13 }
 0x148   :  { %v787_v45 = vadd.f32 %v698_v6, %v360_v55  ;;  %v4697_v55 = vld [vmem:[%s5258_s7 + $0x10] sm:$0xff] }
 0x149   :  { %v801_v50 = vadd.f32 %v700_v63, %v471_v56 }
 0x14a   :  { %v2580_v49 = vmul.f32 -1.442695, %v787_v45  ;;  %v473_v45 = vadd.f32 %v4639_v5, %v4553_v52 }
 0x14b   :  { %v2582_v35 = vmul.f32 -1.442695, %v801_v50 }
 0x14c   :  { %3784 = vpow2.f32 %v2580_v49 }
 0x14d   :  { %3786 = vpow2.f32 %v2581_v43 }
 0x14e   :  { %3788 = vpow2.f32 %v2582_v35  ;;  %v316_v35 = vadd.f32 %v4533_v29, %v4539_v20 }
 0x150   :  { %v3783_v40 = vpop.eup %3782 }
 0x151   :  { %v794_v30 = vadd.f32 1.0, %v3783_v40 }
 0x153   :  { %3790 = vrcp.f32 %v794_v30 }
 0x156   :  { %v3785_v24 = vpop.eup %3784 }
 0x157   :  { %v795_v37 = vadd.f32 1.0, %v3785_v24  ;;  %v3787_v48 = vpop.eup %3786  ;;  %v4703_v24 = vld [vmem:[%s5258_s7 + $0x28] sm:$0xff] }
 0x158   :  { %v3789_v31 = vpop.eup %3788  ;;  %v808_v49 = vadd.f32 1.0, %v3787_v48 }
 0x159   :  { %3792 = vrcp.f32 %v795_v37  ;;  %v809_v39 = vadd.f32 1.0, %v3789_v31 }
 0x15a   :  { %3794 = vrcp.f32 %v808_v49  ;;  %v831_v49 = vpop.permute.xlu0 %830 }
 0x15b   :  { %3796 = vrcp.f32 %v809_v39 }
 0x15d   :  { %v3791_v40 = vpop.eup %3790 }
 0x15e   :  { %v836_v5 = vpop.permute.xlu0 %835 }
 0x161   :  { %v2658_v23 = vpop.f32.mrb[28].mxu1 }
 0x162   :  { %v2659_v56 = vpop.f32.mrb[29].mxu1 }
 0x163   :  { %v2660_v62 = vadd.f32 %v2659_v56, %v2658_v23  ;;  %v3793_v63 = vpop.eup %3792 }
 0x164   :  { %v3795_v23 = vpop.eup %3794 }
 0x165   :  { %v769_v50 = vadd.f32 %v2660_v62, %v4697_v55  ;;  %v2661_v43 = vpop.f32.mrb[30].mxu1  ;;  %v3797_v56 = vpop.eup %3796  ;;  %v820_v31 = vsub.f32 1.0, %v3795_v23  ;;  %v824_v29 = vmul.f32 0.0, %v3795_v23 }
 0x166   :  { %v2662_v30 = vpop.f32.mrb[31].mxu1 }
 0x167   :  { %v814_v38 = vmul.f32 %v3791_v40, %v769_v50  ;;  %v2663_v6 = vadd.f32 %v2662_v30, %v2661_v43  ;;  %v821_v43 = vsub.f32 1.0, %v3797_v56 }
 0x169   :  { %v816_v36 = vadd.f32 %v814_v38, %v316_v35  ;;  %v774_v26 = vadd.f32 %v2663_v6, %v4703_v24  ;;  %v825_v35 = vmul.f32 0.0, %v3797_v56  ;;  %v5393_v6 = vmov 0.0  }
 0x16b   :  { %3798 = vtanh.f32 %v816_v36  ;;  %v815_v37 = vmul.f32 %v3793_v63, %v774_v26  ;;  %v209_v36 = vadd.f32 %v4515_v10, %v4656_v59  ;;  %v211_v26 = vadd.f32 %v4518_v12, %v4662_v7 }
 0x16d   :  { %v817_v48 = vadd.f32 %v815_v37, %v473_v45  ;;  %v3733_v63 = vadd.f32 %v4671_v25, %v209_v36  ;;  %v3736_v37 = vadd.f32 %v4677_v60, %v211_v26 }
 0x16f   :  { %3800 = vtanh.f32 %v817_v48 }
 0x175   :  { %v3799_v62 = vpop.eup %3798 }
 0x176   :  { %v822_v20 = vmul.f32 %v3799_v62, %v820_v31 }
 0x178   :  { %v826_v50 = vadd.f32 %v824_v29, %v822_v20 }
 0x179   :  { %v3801_v40 = vpop.eup %3800 }
 0x17a   :  { %v4710_v30 = vmul.f32 %v831_v49, %v826_v50  ;;  %v823_v39 = vmul.f32 %v3801_v40, %v821_v43 }
 0x17c   :  { %5391 = vst [vmem:[#allocation71_spill] sm:$0xff] %v4710_v30  ;;  %908 = vmatmul.mubr.f32.vlgmr.msra.gmra.mrb[32].mxu1 %v4710_v30  ;;  %v827_v52 = vadd.f32 %v825_v35, %v823_v39 }
 0x17d   :  { %3117 = vmatpush3.bf16.msra.mxu1 %v4390_v53 }
 0x17e   :  { %3119 = vmatprep.subr.bf16.mxu1 %v4393_v54  ;;  %v4715_v38 = vmul.f32 %v836_v5, %v827_v52 }
 0x180   :  { %5392 = vst [vmem:[#allocation72_spill] sm:$0xff] %v4715_v38  ;;  %913 = vmatprep.mubr.f32.mxu1 %v4715_v38 }
 0x181   :  { %3121 = vmatpush3.bf16.msra.mxu1 %v4400_v1 }
 0x182   :  { %914 = vmatmul.mubr.f32.gmra.mrb[34].mxu1 %v5393_v6  ;;  %3123 = vmatprep.subr.bf16.mxu1 %v4403_v4 }
 0x183   :  { %984 = vmatprep.mubr.f32.mxu1 %v5393_v6 }
 0x185   :  { %3125 = vmatpush3.bf16.msra.mxu1 %v4411_v34 }
 0x186   :  { %3127 = vmatprep.subr.bf16.mxu1 %v4415_v17 }
 0x189   :  { %3129 = vmatpush3.bf16.msra.mxu1 %v4424_v28 }
 0x18a   :  { %3131 = vmatprep.subr.bf16.mxu1 %v4427_v33 }
 0x18d   :  { %3133 = vmatpush3.bf16.msra.mxu1 %v4435_v21 }
 0x18e   :  { %3135 = vmatprep.subr.bf16.mxu1 %v4438_v51 }
 0x191   :  { %3137 = vmatpush3.bf16.msra.mxu1 %v4443_v61 }
 0x192   :  { %3139 = vmatprep.subr.bf16.mxu1 %v4446_v32 }
 0x195   :  { %3141 = vmatpush3.bf16.msra.mxu1 %v4449_v18 }
 0x196   :  { %3143 = vmatprep.subr.bf16.mxu1 %v4452_v19 }
 0x199   :  { %3145 = vmatpush3.bf16.msra.mxu1 %v4455_v27 }
 0x19a   :  { %3211 = vmatprep.subr.bf16.mxu1 %v4385_v47 }
 0x19c   :  { %985 = vmatmul.mubr.f32.vlgmr.msra.gmra.mrb[36].mxu1 %v4710_v30 }
 0x19d   :  { %989 = vmatprep.mubr.f32.mxu1 %v4715_v38  ;;  %3213 = vmatpush3.bf16.msra.mxu1 %v4390_v53 }
 0x19e   :  { %3215 = vmatprep.subr.bf16.mxu1 %v4393_v54 }
 0x1a0   :  { %990 = vmatmul.mubr.f32.gmra.mrb[38].mxu1 %v5393_v6 }
 0x1a1   :  { %3217 = vmatpush3.bf16.msra.mxu1 %v4400_v1  ;;  %1206 = vmatprep.mubr.f32.mxu1 %v5393_v6 }
 0x1a2   :  { %3219 = vmatprep.subr.bf16.mxu1 %v4403_v4 }
 0x1a5   :  { %3221 = vmatpush3.bf16.msra.mxu1 %v4411_v34 }
 0x1a6   :  { %3223 = vmatprep.subr.bf16.mxu1 %v4415_v17 }
 0x1a9   :  { %3225 = vmatpush3.bf16.msra.mxu1 %v4424_v28 }
 0x1aa   :  { %3227 = vmatprep.subr.bf16.mxu1 %v4427_v33 }
 0x1ad   :  { %3229 = vmatpush3.bf16.msra.mxu1 %v4435_v21 }
 0x1ae   :  { %3231 = vmatprep.subr.bf16.mxu1 %v4438_v51 }
 0x1b1   :  { %3233 = vmatpush3.bf16.msra.mxu1 %v4443_v61 }
 0x1b2   :  { %3235 = vmatprep.subr.bf16.mxu1 %v4446_v32 }
 0x1b5   :  { %3237 = vmatpush3.bf16.msra.mxu1 %v4449_v18 }
 0x1b6   :  { %3239 = vmatprep.subr.bf16.mxu1 %v4452_v19 }
 0x1b9   :  { %3241 = vmatpush3.bf16.msra.mxu1 %v4455_v27 }
 0x1ba   :  { %3307 = vmatprep.subr.bf16.mxu1 %v4385_v47 }
 0x24f   :  { %v909_v45 = vpop.f32.mrb[32].mxu1 }
 0x250   :  { %v3734_v48 = vadd.f32 %v3733_v63, %v909_v45  ;;  %v911_v23 = vpop.f32.mrb[33].mxu1 }
 0x251   :  { %v3737_v56 = vadd.f32 %v3736_v37, %v911_v23 }
 0x252   :  { %v2585_v31 = vmul.f32 -1.442695, %v3734_v48 }
 0x253   :  { %v2587_v43 = vmul.f32 -1.442695, %v3737_v56 }
 0x254   :  { %3802 = vpow2.f32 %v2585_v31 }
 0x255   :  { %v915_v62 = vpop.f32.mrb[34].mxu1 }
 0x256   :  { %v916_v29 = vadd.f32 %v915_v62, %v4683_v44  ;;  %v917_v20 = vpop.f32.mrb[35].mxu1 }
 0x257   :  { %v918_v49 = vadd.f32 %v917_v20, %v4688_v13 }
 0x258   :  { %v1008_v10 = vadd.f32 %v916_v29, %v4607_v16 }
 0x259   :  { %v1022_v12 = vadd.f32 %v918_v49, %v4631_v11 }
 0x25a   :  { %v2586_v50 = vmul.f32 -1.442695, %v1008_v10 }
 0x25b   :  { %v2588_v39 = vmul.f32 -1.442695, %v1022_v12 }
 0x25c   :  { %3804 = vpow2.f32 %v2586_v50 }
 0x25d   :  { %3806 = vpow2.f32 %v2587_v43 }
 0x25e   :  { %v3803_v40 = vpop.eup %3802  ;;  %3808 = vpow2.f32 %v2588_v39 }
 0x25f   :  { %v1015_v35 = vadd.f32 1.0, %v3803_v40 }
 0x261   :  { %3810 = vrcp.f32 %v1015_v35 }
 0x266   :  { %v3805_v52 = vpop.eup %3804 }
 0x267   :  { %v1016_v5 = vadd.f32 1.0, %v3805_v52  ;;  %v3807_v36 = vpop.eup %3806 }
 0x268   :  { %v3809_v45 = vpop.eup %3808  ;;  %v1029_v16 = vadd.f32 1.0, %v3807_v36  ;;  %v1052_v36 = vpop.permute.xlu1 %1051 }
 0x269   :  { %3812 = vrcp.f32 %v1016_v5  ;;  %v1030_v56 = vadd.f32 1.0, %v3809_v45 }
 0x26a   :  { %3814 = vrcp.f32 %v1029_v16 }
 0x26b   :  { %v3811_v23 = vpop.eup %3810  ;;  %3816 = vrcp.f32 %v1030_v56  ;;  %v5397_v56 = vld [vmem:[#allocation14_spill] sm:$0xff] }
 0x26f   :  { %v2696_v26 = vpop.f32.mrb[36].mxu1 }
 0x270   :  { %v2697_v63 = vpop.f32.mrb[37].mxu1 }
 0x271   :  { %v2698_v37 = vadd.f32 %v2697_v63, %v2696_v26 }
 0x273   :  { %v987_v11 = vadd.f32 %v2698_v37, %v4697_v55  ;;  %v2699_v48 = vpop.f32.mrb[38].mxu1  ;;  %v3813_v10 = vpop.eup %3812 }
 0x274   :  { %v2700_v31 = vpop.f32.mrb[39].mxu1  ;;  %v3815_v43 = vpop.eup %3814 }
 0x275   :  { %v1035_v62 = vmul.f32 %v3811_v23, %v987_v11  ;;  %v2701_v29 = vadd.f32 %v2700_v31, %v2699_v48  ;;  %v3817_v40 = vpop.eup %3816  ;;  %v1041_v39 = vsub.f32 1.0, %v3815_v43  ;;  %v1045_v52 = vmul.f32 %v3815_v43, %v4710_v30  ;;  %v1057_v11 = vpop.permute.xlu1 %1056  ;;  %v5396_v23 = vld [vmem:[#allocation13_spill] sm:$0xff]  ;;  %v5398_v31 = vld [vmem:[#allocation15_spill] sm:$0xff] }
 0x276   :  { %v1042_v63 = vsub.f32 1.0, %v3817_v40  ;;  %v1046_v37 = vmul.f32 %v3817_v40, %v4715_v38  ;;  %v5406_v43 = vld [vmem:[#allocation23_spill] sm:$0xff]  ;;  %v5407_v40 = vld [vmem:[#allocation24_spill] sm:$0xff] }
 0x277   :  { %v1037_v20 = vadd.f32 %v1035_v62, %v4544_v0  ;;  %v992_v49 = vadd.f32 %v2701_v29, %v4703_v24  ;;  %v5399_v62 = vld [vmem:[#allocation16_spill] sm:$0xff]  ;;  %v5400_v29 = vld [vmem:[#allocation17_spill] sm:$0xff] }
 0x279   :  { %3818 = vtanh.f32 %v1037_v20  ;;  %v1036_v12 = vmul.f32 %v3813_v10, %v992_v49  ;;  %v5401_v20 = vld [vmem:[#allocation18_spill] sm:$0xff]  ;;  %v5402_v49 = vld [vmem:[#allocation19_spill] sm:$0xff]  ;;  %v5403_v10 = vld [vmem:[#allocation20_spill] sm:$0xff] }
 0x27b   :  { %v1038_v50 = vadd.f32 %v1036_v12, %v4634_v41  ;;  %v5404_v12 = vld [vmem:[#allocation21_spill] sm:$0xff] }
 0x27d   :  { %3820 = vtanh.f32 %v1038_v50  ;;  %v5405_v50 = vld [vmem:[#allocation22_spill] sm:$0xff] }
 0x283   :  { %v3819_v35 = vpop.eup %3818 }
 0x284   :  { %v1043_v5 = vmul.f32 %v3819_v35, %v1041_v39  ;;  %v5408_v39 = vld [vmem:[#allocation25_spill] sm:$0xff]  ;;  %v5409_v35 = vld [vmem:[#allocation26_spill] sm:$0xff] }
 0x286   :  { %v1047_v26 = vadd.f32 %v1045_v52, %v1043_v5  ;;  %v5410_v52 = vld [vmem:[#allocation27_spill] sm:$0xff]  ;;  %v5411_v5 = vld [vmem:[#allocation28_spill] sm:$0xff] }
 0x287   :  { %v3821_v0 = vpop.eup %3820 }
 0x288   :  { %v4769_v45 = vmul.f32 %v1052_v36, %v1047_v26  ;;  %v1044_v16 = vmul.f32 %v3821_v0, %v1042_v63  ;;  %v5412_v36 = vld [vmem:[#allocation29_spill] sm:$0xff]  ;;  %v5413_v26 = vld [vmem:[#allocation30_spill] sm:$0xff]  ;;  %v5414_v63 = vld [vmem:[#allocation31_spill] sm:$0xff] }
 0x289   :  { %v5415_v0 = vld [vmem:[#allocation32_spill] sm:$0xff] }
 0x28a   :  { %5394 = vst [vmem:[#allocation73_spill] sm:$0xff] %v4769_v45  ;;  %1130 = vmatmul.mubr.f32.vlgmr.msra.gmra.mrb[4].mxu0 %v4769_v45  ;;  %1207 = vmatmul.mubr.f32.vlgmr.msra.gmra.mrb[40].mxu1 %v4769_v45  ;;  %v1048_v41 = vadd.f32 %v1046_v37, %v1044_v16  ;;  %v5416_v16 = vld [vmem:[#allocation12_spill] sm:$0xff]  ;;  %v4832_v37 = vadd.f32 %v4671_v25, %v4656_v59 }
 0x28b   :  { %3245 = vmatpush1.bf16.msra.mxu0 %v4180_v42  ;;  %3309 = vmatpush3.bf16.msra.mxu1 %v4390_v53 }
 0x28c   :  { %v4776_v48 = vmul.f32 %v1057_v11, %v1048_v41  ;;  %3247 = vmatprep.subr.bf16.mxu0 %v4187_v46  ;;  %3311 = vmatprep.subr.bf16.mxu1 %v4393_v54  ;;  %5417 = vst [vmem:[#allocation13_spill] sm:$0xff] %v4832_v37  ;;  %v4836_v41 = vadd.f32 %v4677_v60, %v4662_v7 }
 0x28e   :  { %5395 = vst [vmem:[#allocation74_spill] sm:$0xff] %v4776_v48  ;;  %1135 = vmatprep.mubr.f32.mxu0 %v4776_v48  ;;  %1211 = vmatprep.mubr.f32.mxu1 %v4776_v48 }
 0x28f   :  { %1136 = vmatmul.mubr.f32.gmra.mrb[24].mxu0 %v5393_v6  ;;  %1212 = vmatmul.mubr.f32.gmra.mrb[42].mxu1 %v5393_v6 }
 0x290   :  { %3249 = vmatpush1.bf16.msra.mxu0 %v4208_v57  ;;  %3313 = vmatpush3.bf16.msra.mxu1 %v4400_v1 }
 0x291   :  { %3251 = vmatprep.subr.bf16.mxu0 %v4212_v58  ;;  %3315 = vmatprep.subr.bf16.mxu1 %v4403_v4 }
 0x292   :  { %1351 = vmatprep.mubr.f32.mxu0 %v5393_v6  ;;  %1428 = vmatprep.mubr.f32.mxu1 %v5393_v6 }
 0x294   :  { %3253 = vmatpush1.bf16.msra.mxu0 %v4225_v2  ;;  %3317 = vmatpush3.bf16.msra.mxu1 %v4411_v34 }
 0x295   :  { %3255 = vmatprep.subr.bf16.mxu0 %v4229_v3  ;;  %3319 = vmatprep.subr.bf16.mxu1 %v4415_v17 }
 0x298   :  { %3257 = vmatpush1.bf16.msra.mxu0 %v4235_v8  ;;  %3321 = vmatpush3.bf16.msra.mxu1 %v4424_v28 }
 0x299   :  { %3259 = vmatprep.subr.bf16.mxu0 %v4239_v9  ;;  %3323 = vmatprep.subr.bf16.mxu1 %v4427_v33 }
 0x29c   :  { %3261 = vmatpush1.bf16.msra.mxu0 %v4249_v14  ;;  %3325 = vmatpush3.bf16.msra.mxu1 %v4435_v21 }
 0x29d   :  { %3263 = vmatprep.subr.bf16.mxu0 %v4253_v15  ;;  %3327 = vmatprep.subr.bf16.mxu1 %v4438_v51 }
 0x2a0   :  { %3265 = vmatpush1.bf16.msra.mxu0 %v4265_v22  ;;  %3329 = vmatpush3.bf16.msra.mxu1 %v4443_v61 }
 0x2a1   :  { %3267 = vmatprep.subr.bf16.mxu0 %v5396_v23  ;;  %3331 = vmatprep.subr.bf16.mxu1 %v4446_v32 }
 0x2a4   :  { %3269 = vmatpush1.bf16.msra.mxu0 %v5397_v56  ;;  %3333 = vmatpush3.bf16.msra.mxu1 %v4449_v18 }
 0x2a5   :  { %3271 = vmatprep.subr.bf16.mxu0 %v5398_v31  ;;  %3335 = vmatprep.subr.bf16.mxu1 %v4452_v19 }
 0x2a8   :  { %3273 = vmatpush1.bf16.msra.mxu0 %v5399_v62  ;;  %3337 = vmatpush3.bf16.msra.mxu1 %v4455_v27 }
 0x2a9   :  { %3275 = vmatprep.subr.bf16.mxu0 %v5400_v29  ;;  %3403 = vmatprep.subr.bf16.mxu1 %v4385_v47 }
 0x2ac   :  { %3277 = vmatpush1.bf16.msra.mxu0 %v5401_v20 }
 0x2ad   :  { %3279 = vmatprep.subr.bf16.mxu0 %v5402_v49 }
 0x2b0   :  { %3281 = vmatpush1.bf16.msra.mxu0 %v5403_v10 }
 0x2b1   :  { %3283 = vmatprep.subr.bf16.mxu0 %v5404_v12 }
 0x2b4   :  { %3285 = vmatpush1.bf16.msra.mxu0 %v5405_v50 }
 0x2b5   :  { %3287 = vmatprep.subr.bf16.mxu0 %v5406_v43 }
 0x2b8   :  { %3289 = vmatpush1.bf16.msra.mxu0 %v5407_v40  ;;  %v5418_v40 = vld [vmem:[#allocation57_spill] sm:$0xff] }
 0x2b9   :  { %3291 = vmatprep.subr.bf16.mxu0 %v5408_v39 }
 0x2bc   :  { %3293 = vmatpush1.bf16.msra.mxu0 %v5409_v35 }
 0x2bd   :  { %3295 = vmatprep.subr.bf16.mxu0 %v5410_v52 }
 0x2c0   :  { %3297 = vmatpush1.bf16.msra.mxu0 %v5411_v5 }
 0x2c1   :  { %3299 = vmatprep.subr.bf16.mxu0 %v5412_v36 }
 0x2c4   :  { %3301 = vmatpush1.bf16.msra.mxu0 %v5413_v26 }
 0x2c5   :  { %3303 = vmatprep.subr.bf16.mxu0 %v5414_v63 }
 0x2c8   :  { %3305 = vmatpush1.bf16.msra.mxu0 %v5415_v0 }
 0x2c9   :  { %3339 = vmatprep.subr.bf16.mxu0 %v5416_v16 }
 0x35d   :  { %v1131_v11 = vpop.f32.mrb[4].mxu0  ;;  %v2734_v38 = vpop.f32.mrb[40].mxu1 }
 0x35e   :  { %v3739_v30 = vadd.f32 %v4832_v37, %v1131_v11  ;;  %v1133_v36 = vpop.f32.mrb[5].mxu0  ;;  %v2735_v26 = vpop.f32.mrb[41].mxu1  ;;  %v5419_v11 = vld [vmem:[#allocation64_spill] sm:$0xff] }
 0x35f   :  { %v2736_v5 = vadd.f32 %v2735_v26, %v2734_v38  ;;  %v3741_v0 = vadd.f32 %v4836_v41, %v1133_v36 }
 0x360   :  { %v2591_v63 = vmul.f32 -1.442695, %v3739_v30 }
 0x361   :  { %v2593_v39 = vmul.f32 -1.442695, %v3741_v0 }
 0x362   :  { %3822 = vpow2.f32 %v2591_v63  ;;  %v1137_v16 = vpop.f32.mrb[24].mxu0  ;;  %v2737_v52 = vpop.f32.mrb[42].mxu1 }
 0x363   :  { %v1138_v25 = vadd.f32 %v1137_v16, %v4683_v44  ;;  %v1139_v59 = vpop.f32.mrb[25].mxu0  ;;  %v2738_v35 = vpop.f32.mrb[43].mxu1  ;;  %3824 = vpow2.f32 %v2593_v39 }
 0x364   :  { %v1140_v60 = vadd.f32 %v1139_v59, %v4688_v13  ;;  %v2739_v7 = vadd.f32 %v2738_v35, %v2737_v52  ;;  %v1209_v59 = vadd.f32 %v2736_v5, %v4697_v55 }
 0x365   :  { %v1230_v43 = vadd.f32 %v1138_v25, %v5418_v40 }
 0x366   :  { %v1244_v37 = vadd.f32 %v1140_v60, %v5419_v11  ;;  %v5420_v60 = vld [vmem:[#allocation44_spill] sm:$0xff] }
 0x367   :  { %v2592_v50 = vmul.f32 -1.442695, %v1230_v43 }
 0x368   :  { %v2594_v38 = vmul.f32 -1.442695, %v1244_v37  ;;  %v5421_v37 = vld [vmem:[#allocation65_spill] sm:$0xff] }
 0x369   :  { %3826 = vpow2.f32 %v2592_v50  ;;  %v1214_v50 = vadd.f32 %v2739_v7, %v4703_v24 }
 0x36c   :  { %v3823_v30 = vpop.eup %3822 }
 0x36d   :  { %v1237_v36 = vadd.f32 1.0, %v3823_v30  ;;  %v3825_v26 = vpop.eup %3824 }
 0x36e   :  { %v1251_v44 = vadd.f32 1.0, %v3825_v26 }
 0x36f   :  { %3828 = vrcp.f32 %v1237_v36 }
 0x370   :  { %3830 = vpow2.f32 %v2594_v38 }
 0x373   :  { %v3827_v63 = vpop.eup %3826 }
 0x374   :  { %v1238_v16 = vadd.f32 1.0, %v3827_v63 }
 0x376   :  { %3832 = vrcp.f32 %v1238_v16  ;;  %v1274_v16 = vpop.permute.xlu0 %1273 }
 0x377   :  { %3834 = vrcp.f32 %v1251_v44 }
 0x379   :  { %v3829_v35 = vpop.eup %3828 }
 0x37a   :  { %v3831_v52 = vpop.eup %3830  ;;  %v1257_v25 = vmul.f32 %v3829_v35, %v1209_v59 }
 0x37b   :  { %v1252_v40 = vadd.f32 1.0, %v3831_v52 }
 0x37c   :  { %v1259_v43 = vadd.f32 %v1257_v25, %v5420_v60 }
 0x37e   :  { %3836 = vtanh.f32 %v1259_v43  ;;  %v1279_v43 = vpop.permute.xlu1 %1278 }
 0x37f   :  { %3838 = vrcp.f32 %v1252_v40 }
 0x380   :  { %v3833_v39 = vpop.eup %3832 }
 0x381   :  { %v1258_v0 = vmul.f32 %v3833_v39, %v1214_v50  ;;  %v3835_v30 = vpop.eup %3834  ;;  %v5424_v50 = vld [vmem:[#allocation22_spill] sm:$0xff]  ;;  %v5425_v39 = vld [vmem:[#allocation23_spill] sm:$0xff] }
 0x382   :  { %v1263_v38 = vsub.f32 1.0, %v3835_v30  ;;  %v1267_v5 = vmul.f32 %v3835_v30, %v4769_v45  ;;  %v5429_v30 = vld [vmem:[#allocation27_spill] sm:$0xff] }
 0x383   :  { %v1260_v11 = vadd.f32 %v1258_v0, %v5421_v37  ;;  %v5426_v0 = vld [vmem:[#allocation24_spill] sm:$0xff]  ;;  %v5427_v37 = vld [vmem:[#allocation25_spill] sm:$0xff] }
 0x385   :  { %3840 = vtanh.f32 %v1260_v11  ;;  %v5428_v11 = vld [vmem:[#allocation26_spill] sm:$0xff] }
 0x388   :  { %v3837_v36 = vpop.eup %3836 }
 0x389   :  { %v1265_v26 = vmul.f32 %v3837_v36, %v1263_v38  ;;  %v3839_v44 = vpop.eup %3838  ;;  %v5430_v38 = vld [vmem:[#allocation28_spill] sm:$0xff]  ;;  %v5431_v36 = vld [vmem:[#allocation29_spill] sm:$0xff] }
 0x38a   :  { %v1264_v35 = vsub.f32 1.0, %v3839_v44  ;;  %v1268_v25 = vmul.f32 %v3839_v44, %v4776_v48  ;;  %v5434_v44 = vld [vmem:[#allocation32_spill] sm:$0xff] }
 0x38b   :  { %v1269_v63 = vadd.f32 %v1267_v5, %v1265_v26  ;;  %v5432_v5 = vld [vmem:[#allocation30_spill] sm:$0xff]  ;;  %v5433_v26 = vld [vmem:[#allocation31_spill] sm:$0xff] }
 0x38d   :  { %v4849_v59 = vmul.f32 %v1274_v16, %v1269_v63  ;;  %v5435_v63 = vld [vmem:[#allocation12_spill] sm:$0xff] }
 0x38f   :  { %5422 = vst [vmem:[#allocation14_spill] sm:$0xff] %v4849_v59  ;;  %v3841_v7 = vpop.eup %3840  ;;  %1352 = vmatmul.mubr.f32.vlgmr.msra.gmra.mrb[6].mxu0 %v4849_v59  ;;  %1429 = vmatmul.mubr.f32.vlgmr.msra.gmra.mrb[44].mxu1 %v4849_v59 }
 0x390   :  { %v1266_v52 = vmul.f32 %v3841_v7, %v1264_v35  ;;  %3341 = vmatpush1.bf16.msra.mxu0 %v4180_v42  ;;  %3405 = vmatpush3.bf16.msra.mxu1 %v4390_v53  ;;  %v5436_v7 = vld [vmem:[#allocation13_spill] sm:$0xff] }
 0x391   :  { %3343 = vmatprep.subr.bf16.mxu0 %v4187_v46  ;;  %3407 = vmatprep.subr.bf16.mxu1 %v4393_v54 }
 0x392   :  { %v1270_v60 = vadd.f32 %v1268_v25, %v1266_v52 }
 0x394   :  { %v4858_v40 = vmul.f32 %v1279_v43, %v1270_v60  ;;  %3345 = vmatpush1.bf16.msra.mxu0 %v4208_v57  ;;  %3409 = vmatpush3.bf16.msra.mxu1 %v4400_v1 }
 0x395   :  { %3347 = vmatprep.subr.bf16.mxu0 %v4212_v58  ;;  %3411 = vmatprep.subr.bf16.mxu1 %v4403_v4 }
 0x396   :  { %5423 = vst [vmem:[#allocation15_spill] sm:$0xff] %v4858_v40  ;;  %1357 = vmatprep.mubr.f32.mxu0 %v4858_v40  ;;  %1433 = vmatprep.mubr.f32.mxu1 %v4858_v40 }
 0x397   :  { %1358 = vmatmul.mubr.f32.gmra.mrb[26].mxu0 %v5393_v6  ;;  %1434 = vmatmul.mubr.f32.gmra.mrb[46].mxu1 %v5393_v6 }
 0x398   :  { %3349 = vmatpush1.bf16.msra.mxu0 %v4225_v2  ;;  %3413 = vmatpush3.bf16.msra.mxu1 %v4411_v34 }
 0x399   :  { %3351 = vmatprep.subr.bf16.mxu0 %v4229_v3  ;;  %3415 = vmatprep.subr.bf16.mxu1 %v4415_v17 }
 0x39a   :  { %1573 = vmatprep.mubr.f32.mxu0 %v5393_v6  ;;  %1650 = vmatprep.mubr.f32.mxu1 %v5393_v6 }
 0x39c   :  { %3353 = vmatpush1.bf16.msra.mxu0 %v4235_v8  ;;  %3417 = vmatpush3.bf16.msra.mxu1 %v4424_v28 }
 0x39d   :  { %3355 = vmatprep.subr.bf16.mxu0 %v4239_v9  ;;  %3419 = vmatprep.subr.bf16.mxu1 %v4427_v33 }
 0x3a0   :  { %3357 = vmatpush1.bf16.msra.mxu0 %v4249_v14  ;;  %3421 = vmatpush3.bf16.msra.mxu1 %v4435_v21 }
 0x3a1   :  { %3359 = vmatprep.subr.bf16.mxu0 %v4253_v15  ;;  %3423 = vmatprep.subr.bf16.mxu1 %v4438_v51 }
 0x3a4   :  { %3361 = vmatpush1.bf16.msra.mxu0 %v4265_v22  ;;  %3425 = vmatpush3.bf16.msra.mxu1 %v4443_v61 }
 0x3a5   :  { %3363 = vmatprep.subr.bf16.mxu0 %v5396_v23  ;;  %3427 = vmatprep.subr.bf16.mxu1 %v4446_v32 }
 0x3a8   :  { %3365 = vmatpush1.bf16.msra.mxu0 %v5397_v56  ;;  %3429 = vmatpush3.bf16.msra.mxu1 %v4449_v18 }
 0x3a9   :  { %3367 = vmatprep.subr.bf16.mxu0 %v5398_v31  ;;  %3431 = vmatprep.subr.bf16.mxu1 %v4452_v19 }
 0x3ac   :  { %3369 = vmatpush1.bf16.msra.mxu0 %v5399_v62  ;;  %3433 = vmatpush3.bf16.msra.mxu1 %v4455_v27 }
 0x3ad   :  { %3371 = vmatprep.subr.bf16.mxu0 %v5400_v29  ;;  %3499 = vmatprep.subr.bf16.mxu1 %v4385_v47 }
 0x3b0   :  { %3373 = vmatpush1.bf16.msra.mxu0 %v5401_v20 }
 0x3b1   :  { %3375 = vmatprep.subr.bf16.mxu0 %v5402_v49 }
 0x3b4   :  { %3377 = vmatpush1.bf16.msra.mxu0 %v5403_v10 }
 0x3b5   :  { %3379 = vmatprep.subr.bf16.mxu0 %v5404_v12 }
 0x3b8   :  { %3381 = vmatpush1.bf16.msra.mxu0 %v5424_v50 }
 0x3b9   :  { %3383 = vmatprep.subr.bf16.mxu0 %v5425_v39 }
 0x3bc   :  { %3385 = vmatpush1.bf16.msra.mxu0 %v5426_v0  ;;  %v5438_v0 = vld [vmem:[#allocation53_spill] sm:$0xff] }
 0x3bd   :  { %3387 = vmatprep.subr.bf16.mxu0 %v5427_v37 }
 0x3c0   :  { %3389 = vmatpush1.bf16.msra.mxu0 %v5428_v11 }
 0x3c1   :  { %3391 = vmatprep.subr.bf16.mxu0 %v5429_v30  ;;  %v5437_v30 = vld [vmem:[#allocation70_spill] sm:$0xff] }
 0x3c4   :  { %3393 = vmatpush1.bf16.msra.mxu0 %v5430_v38 }
 0x3c5   :  { %3395 = vmatprep.subr.bf16.mxu0 %v5431_v36 }
 0x3c8   :  { %3397 = vmatpush1.bf16.msra.mxu0 %v5432_v5 }
 0x3c9   :  { %3399 = vmatprep.subr.bf16.mxu0 %v5433_v26 }
 0x3cc   :  { %3401 = vmatpush1.bf16.msra.mxu0 %v5434_v44 }
 0x3cd   :  { %3435 = vmatprep.subr.bf16.mxu0 %v5435_v63 }
 0x462   :  { %v1353_v16 = vpop.f32.mrb[6].mxu0  ;;  %v2772_v35 = vpop.f32.mrb[44].mxu1 }
 0x463   :  { %v3743_v52 = vadd.f32 %v5436_v7, %v1353_v16  ;;  %v1355_v25 = vpop.f32.mrb[7].mxu0  ;;  %v2773_v60 = vpop.f32.mrb[45].mxu1  ;;  %v5439_v16 = vld [vmem:[#allocation61_spill] sm:$0xff] }
 0x464   :  { %v2774_v43 = vadd.f32 %v2773_v60, %v2772_v35  ;;  %v3745_v45 = vadd.f32 %v4836_v41, %v1355_v25 }
 0x465   :  { %v2597_v48 = vmul.f32 -1.442695, %v3743_v52 }
 0x466   :  { %v2599_v36 = vmul.f32 -1.442695, %v3745_v45 }
 0x467   :  { %3842 = vpow2.f32 %v2597_v48 }
 0x468   :  { %3844 = vpow2.f32 %v2599_v36  ;;  %v5440_v36 = vld [vmem:[#allocation48_spill] sm:$0xff] }
 0x46a   :  { %v1359_v38 = vpop.f32.mrb[26].mxu0  ;;  %v2775_v5 = vpop.f32.mrb[46].mxu1 }
 0x46b   :  { %v1360_v26 = vadd.f32 %v1359_v38, %v5437_v30  ;;  %v1361_v11 = vpop.f32.mrb[27].mxu0  ;;  %v2776_v44 = vpop.f32.mrb[47].mxu1  ;;  %v1431_v30 = vadd.f32 %v2774_v43, %v4697_v55 }
 0x46c   :  { %v1362_v63 = vadd.f32 %v1361_v11, %v4688_v13  ;;  %v2777_v37 = vadd.f32 %v2776_v44, %v2775_v5 }
 0x46d   :  { %v1452_v39 = vadd.f32 %v1360_v26, %v5438_v0 }
 0x46e   :  { %v1466_v7 = vadd.f32 %v1362_v63, %v5439_v16  ;;  %v1436_v44 = vadd.f32 %v2777_v37, %v4703_v24 }
 0x46f   :  { %v2598_v35 = vmul.f32 -1.442695, %v1452_v39 }
 0x470   :  { %v2600_v45 = vmul.f32 -1.442695, %v1466_v7 }
 0x471   :  { %v3843_v52 = vpop.eup %3842  ;;  %3846 = vpow2.f32 %v2598_v35  ;;  %v5441_v35 = vld [vmem:[#allocation62_spill] sm:$0xff] }
 0x472   :  { %v1459_v41 = vadd.f32 1.0, %v3843_v52  ;;  %v3845_v48 = vpop.eup %3844 }
 0x473   :  { %v1473_v38 = vadd.f32 1.0, %v3845_v48 }
 0x474   :  { %3848 = vrcp.f32 %v1459_v41 }
 0x475   :  { %3850 = vpow2.f32 %v2600_v45 }
 0x47b   :  { %v3847_v25 = vpop.eup %3846 }
 0x47c   :  { %v1460_v60 = vadd.f32 1.0, %v3847_v25  ;;  %v1496_v25 = vpop.permute.xlu0 %1495 }
 0x47e   :  { %v3849_v11 = vpop.eup %3848  ;;  %3852 = vrcp.f32 %v1460_v60 }
 0x47f   :  { %3854 = vrcp.f32 %v1473_v38  ;;  %v1479_v0 = vmul.f32 %v3849_v11, %v1431_v30  ;;  %v3851_v26 = vpop.eup %3850 }
 0x480   :  { %v1474_v39 = vadd.f32 1.0, %v3851_v26  ;;  %v1501_v26 = vpop.permute.xlu1 %1500 }
 0x481   :  { %v1481_v5 = vadd.f32 %v1479_v0, %v5440_v36 }
 0x483   :  { %3856 = vtanh.f32 %v1481_v5 }
 0x484   :  { %3858 = vrcp.f32 %v1474_v39 }
 0x488   :  { %v3853_v63 = vpop.eup %3852 }
 0x489   :  { %v3855_v16 = vpop.eup %3854  ;;  %v1480_v7 = vmul.f32 %v3853_v63, %v1436_v44  ;;  %v5443_v44 = vld [vmem:[#allocation23_spill] sm:$0xff]  ;;  %v5444_v63 = vld [vmem:[#allocation24_spill] sm:$0xff] }
 0x48a   :  { %v1485_v41 = vsub.f32 1.0, %v3855_v16  ;;  %v1489_v43 = vmul.f32 %v3855_v16, %v4849_v59  ;;  %v5445_v16 = vld [vmem:[#allocation25_spill] sm:$0xff] }
 0x48b   :  { %v1482_v52 = vadd.f32 %v1480_v7, %v5441_v35  ;;  %v5446_v7 = vld [vmem:[#allocation26_spill] sm:$0xff]  ;;  %v5447_v35 = vld [vmem:[#allocation27_spill] sm:$0xff] }
 0x48d   :  { %v3857_v45 = vpop.eup %3856  ;;  %3860 = vtanh.f32 %v1482_v52  ;;  %v5448_v52 = vld [vmem:[#allocation28_spill] sm:$0xff] }
 0x48e   :  { %v1487_v48 = vmul.f32 %v3857_v45, %v1485_v41  ;;  %v3859_v60 = vpop.eup %3858  ;;  %v5449_v41 = vld [vmem:[#allocation29_spill] sm:$0xff]  ;;  %v5450_v45 = vld [vmem:[#allocation30_spill] sm:$0xff] }
 0x48f   :  { %v1486_v37 = vsub.f32 1.0, %v3859_v60  ;;  %v1490_v36 = vmul.f32 %v3859_v60, %v4858_v40  ;;  %v5455_v60 = vld [vmem:[#allocation33_spill] sm:$0xff] }
 0x490   :  { %v1491_v30 = vadd.f32 %v1489_v43, %v1487_v48  ;;  %v5451_v43 = vld [vmem:[#allocation31_spill] sm:$0xff]  ;;  %v5452_v48 = vld [vmem:[#allocation32_spill] sm:$0xff] }
 0x492   :  { %v4921_v38 = vmul.f32 %v1496_v25, %v1491_v30  ;;  %v5453_v30 = vld [vmem:[#allocation12_spill] sm:$0xff]  ;;  %v5454_v25 = vld [vmem:[#allocation66_spill] sm:$0xff] }
 0x494   :  { %1574 = vmatmul.mubr.f32.vlgmr.msra.gmra.mrb[28].mxu0 %v4921_v38  ;;  %1651 = vmatmul.mubr.f32.vlgmr.msra.gmra.mrb[48].mxu1 %v4921_v38 }
 0x495   :  { %3437 = vmatpush1.bf16.msra.mxu0 %v4180_v42  ;;  %3501 = vmatpush3.bf16.msra.mxu1 %v4390_v53 }
 0x496   :  { %3439 = vmatprep.subr.bf16.mxu0 %v4187_v46  ;;  %3503 = vmatprep.subr.bf16.mxu1 %v4393_v54 }
 0x497   :  { %v3861_v11 = vpop.eup %3860 }
 0x498   :  { %v1488_v0 = vmul.f32 %v3861_v11, %v1486_v37  ;;  %v227_v37 = vadd.f32 %v5455_v60, %v5454_v25  ;;  %v5456_v11 = vld [vmem:[#allocation67_spill] sm:$0xff]  ;;  %v5460_v60 = vld [vmem:[#allocation70_spill] sm:$0xff] }
 0x499   :  { %3441 = vmatpush1.bf16.msra.mxu0 %v4208_v57  ;;  %3505 = vmatpush3.bf16.msra.mxu1 %v4400_v1 }
 0x49a   :  { %v1492_v5 = vadd.f32 %v1490_v36, %v1488_v0  ;;  %3443 = vmatprep.subr.bf16.mxu0 %v4212_v58  ;;  %3507 = vmatprep.subr.bf16.mxu1 %v4403_v4  ;;  %v5457_v0 = vld [vmem:[#allocation34_spill] sm:$0xff] }
 0x49b   :  { %v229_v36 = vadd.f32 %v5457_v0, %v5456_v11 }
 0x49c   :  { %v4934_v39 = vmul.f32 %v1501_v26, %v1492_v5  ;;  %v5458_v5 = vld [vmem:[#allocation68_spill] sm:$0xff] }
 0x49d   :  { %3445 = vmatpush1.bf16.msra.mxu0 %v4225_v2  ;;  %3509 = vmatpush3.bf16.msra.mxu1 %v4411_v34  ;;  %v3747_v26 = vadd.f32 %v5458_v5, %v227_v37 }
 0x49e   :  { %5442 = vst [vmem:[#allocation16_spill] sm:$0xff] %v4934_v39  ;;  %1579 = vmatprep.mubr.f32.mxu0 %v4934_v39  ;;  %1655 = vmatprep.mubr.f32.mxu1 %v4934_v39 }
 0x49f   :  { %1580 = vmatmul.mubr.f32.gmra.mrb[30].mxu0 %v5393_v6  ;;  %1656 = vmatmul.mubr.f32.gmra.mrb[50].mxu1 %v5393_v6 }
 0x4a0   :  { %3447 = vmatprep.subr.bf16.mxu0 %v4229_v3  ;;  %3511 = vmatprep.subr.bf16.mxu1 %v4415_v17 }
 0x4a1   :  { %3449 = vmatpush1.bf16.msra.mxu0 %v4235_v8  ;;  %3513 = vmatpush3.bf16.msra.mxu1 %v4424_v28 }
 0x4a2   :  { %3451 = vmatprep.subr.bf16.mxu0 %v4239_v9  ;;  %3515 = vmatprep.subr.bf16.mxu1 %v4427_v33 }
 0x4a3   :  { %1795 = vmatprep.mubr.f32.mxu0 %v5393_v6  ;;  %1872 = vmatprep.mubr.f32.mxu1 %v5393_v6 }
 0x4a5   :  { %3453 = vmatpush1.bf16.msra.mxu0 %v4249_v14  ;;  %3517 = vmatpush3.bf16.msra.mxu1 %v4435_v21 }
 0x4a6   :  { %3455 = vmatprep.subr.bf16.mxu0 %v4253_v15  ;;  %3519 = vmatprep.subr.bf16.mxu1 %v4438_v51 }
 0x4a9   :  { %3457 = vmatpush1.bf16.msra.mxu0 %v4265_v22  ;;  %3521 = vmatpush3.bf16.msra.mxu1 %v4443_v61 }
 0x4aa   :  { %3459 = vmatprep.subr.bf16.mxu0 %v5396_v23  ;;  %3523 = vmatprep.subr.bf16.mxu1 %v4446_v32 }
 0x4ad   :  { %3461 = vmatpush1.bf16.msra.mxu0 %v5397_v56  ;;  %3525 = vmatpush3.bf16.msra.mxu1 %v4449_v18 }
 0x4ae   :  { %3463 = vmatprep.subr.bf16.mxu0 %v5398_v31  ;;  %3527 = vmatprep.subr.bf16.mxu1 %v4452_v19 }
 0x4b1   :  { %3465 = vmatpush1.bf16.msra.mxu0 %v5399_v62  ;;  %3529 = vmatpush3.bf16.msra.mxu1 %v4455_v27 }
 0x4b2   :  { %3467 = vmatprep.subr.bf16.mxu0 %v5400_v29  ;;  %3595 = vmatprep.subr.bf16.mxu1 %v4385_v47 }
 0x4b5   :  { %3469 = vmatpush1.bf16.msra.mxu0 %v5401_v20 }
 0x4b6   :  { %3471 = vmatprep.subr.bf16.mxu0 %v5402_v49 }
 0x4b9   :  { %3473 = vmatpush1.bf16.msra.mxu0 %v5403_v10 }
 0x4ba   :  { %3475 = vmatprep.subr.bf16.mxu0 %v5404_v12 }
 0x4bd   :  { %3477 = vmatpush1.bf16.msra.mxu0 %v5424_v50  ;;  %v5461_v50 = vld [vmem:[#allocation49_spill] sm:$0xff] }
 0x4be   :  { %3479 = vmatprep.subr.bf16.mxu0 %v5443_v44 }
 0x4c1   :  { %3481 = vmatpush1.bf16.msra.mxu0 %v5444_v63 }
 0x4c2   :  { %3483 = vmatprep.subr.bf16.mxu0 %v5445_v16 }
 0x4c5   :  { %3485 = vmatpush1.bf16.msra.mxu0 %v5446_v7 }
 0x4c6   :  { %3487 = vmatprep.subr.bf16.mxu0 %v5447_v35 }
 0x4c9   :  { %3489 = vmatpush1.bf16.msra.mxu0 %v5448_v52  ;;  %v5459_v52 = vld [vmem:[#allocation69_spill] sm:$0xff] }
 0x4ca   :  { %3491 = vmatprep.subr.bf16.mxu0 %v5449_v41  ;;  %v3750_v41 = vadd.f32 %v5459_v52, %v229_v36  ;;  %v5462_v36 = vld [vmem:[#allocation58_spill] sm:$0xff] }
 0x4cd   :  { %3493 = vmatpush1.bf16.msra.mxu0 %v5450_v45 }
 0x4ce   :  { %3495 = vmatprep.subr.bf16.mxu0 %v5451_v43 }
 0x4d1   :  { %3497 = vmatpush1.bf16.msra.mxu0 %v5452_v48 }
 0x4d2   :  { %3531 = vmatprep.subr.bf16.mxu0 %v5453_v30 }
 0x567   :  { %v1575_v40 = vpop.f32.mrb[28].mxu0  ;;  %v2810_v59 = vpop.f32.mrb[48].mxu1 }
 0x568   :  { %v3748_v35 = vadd.f32 %v3747_v26, %v1575_v40  ;;  %v1577_v45 = vpop.f32.mrb[29].mxu0  ;;  %v2811_v7 = vpop.f32.mrb[49].mxu1 }
 0x569   :  { %v3751_v43 = vadd.f32 %v3750_v41, %v1577_v45  ;;  %v2812_v16 = vadd.f32 %v2811_v7, %v2810_v59 }
 0x56a   :  { %v2603_v48 = vmul.f32 -1.442695, %v3748_v35 }
 0x56b   :  { %v2605_v30 = vmul.f32 -1.442695, %v3751_v43  ;;  %v1653_v43 = vadd.f32 %v2812_v16, %v4697_v55 }
 0x56c   :  { %3862 = vpow2.f32 %v2603_v48 }
 0x56d   :  { %3864 = vpow2.f32 %v2605_v30 }
 0x572   :  { %v1581_v63 = vpop.f32.mrb[30].mxu0  ;;  %v2813_v44 = vpop.f32.mrb[50].mxu1 }
 0x573   :  { %v1582_v25 = vadd.f32 %v1581_v63, %v5460_v60  ;;  %v1583_v0 = vpop.f32.mrb[31].mxu0  ;;  %v2814_v11 = vpop.f32.mrb[51].mxu1 }
 0x574   :  { %v1584_v37 = vadd.f32 %v1583_v0, %v4688_v13  ;;  %v2815_v5 = vadd.f32 %v2814_v11, %v2813_v44  ;;  %v5463_v44 = vld [vmem:[#allocation52_spill] sm:$0xff] }
 0x575   :  { %v1674_v52 = vadd.f32 %v1582_v25, %v5461_v50 }
 0x576   :  { %v3863_v40 = vpop.eup %3862  ;;  %v1688_v26 = vadd.f32 %v1584_v37, %v5462_v36  ;;  %v1658_v0 = vadd.f32 %v2815_v5, %v4703_v24 }
 0x577   :  { %v1681_v41 = vadd.f32 1.0, %v3863_v40  ;;  %v2604_v59 = vmul.f32 -1.442695, %v1674_v52  ;;  %v3865_v7 = vpop.eup %3864 }
 0x578   :  { %v2606_v35 = vmul.f32 -1.442695, %v1688_v26  ;;  %v1695_v45 = vadd.f32 1.0, %v3865_v7 }
 0x579   :  { %3866 = vrcp.f32 %v1681_v41  ;;  %v1718_v41 = vpop.permute.xlu0 %1717 }
 0x57a   :  { %3868 = vpow2.f32 %v2604_v59  ;;  %v5464_v59 = vld [vmem:[#allocation59_spill] sm:$0xff] }
 0x57b   :  { %3870 = vpow2.f32 %v2606_v35 }
 0x57c   :  { %3872 = vrcp.f32 %v1695_v45 }
 0x583   :  { %v3867_v63 = vpop.eup %3866 }
 0x584   :  { %v1701_v48 = vmul.f32 %v3867_v63, %v1653_v43  ;;  %v3869_v13 = vpop.eup %3868 }
 0x585   :  { %v1682_v50 = vadd.f32 1.0, %v3869_v13  ;;  %v3871_v25 = vpop.eup %3870  ;;  %v1723_v13 = vpop.permute.xlu1 %1722 }
 0x586   :  { %v1703_v30 = vadd.f32 %v1701_v48, %v5463_v44  ;;  %v3873_v11 = vpop.eup %3872  ;;  %v1696_v60 = vadd.f32 1.0, %v3871_v25  ;;  %v5031_v25 = vld [vmem:[%s5259_s8] ss:$0 sm:$0xff] }
 0x587   :  { %v1707_v37 = vsub.f32 1.0, %v3873_v11  ;;  %v1711_v55 = vmul.f32 %v3873_v11, %v4921_v38  ;;  %v5465_v11 = vld [vmem:[#allocation22_spill] sm:$0xff] }
 0x588   :  { %3874 = vtanh.f32 %v1703_v30 }
 0x589   :  { %3876 = vrcp.f32 %v1682_v50 }
 0x58a   :  { %3878 = vrcp.f32 %v1696_v60  ;;  %v5466_v60 = vld [vmem:[#allocation23_spill] sm:$0xff] }
 0x592   :  { %v3875_v52 = vpop.eup %3874 }
 0x593   :  { %v3877_v40 = vpop.eup %3876  ;;  %v1709_v16 = vmul.f32 %v3875_v52, %v1707_v37  ;;  %v5468_v37 = vld [vmem:[#allocation25_spill] sm:$0xff]  ;;  %v5469_v52 = vld [vmem:[#allocation26_spill] sm:$0xff] }
 0x594   :  { %v1702_v36 = vmul.f32 %v3877_v40, %v1658_v0  ;;  %v3879_v24 = vpop.eup %3878  ;;  %v5467_v0 = vld [vmem:[#allocation24_spill] sm:$0xff]  ;;  %v5470_v40 = vld [vmem:[#allocation27_spill] sm:$0xff] }
 0x595   :  { %v1713_v26 = vadd.f32 %v1711_v55, %v1709_v16  ;;  %v1708_v5 = vsub.f32 1.0, %v3879_v24  ;;  %v1712_v63 = vmul.f32 %v3879_v24, %v4934_v39  ;;  %v5472_v55 = vld [vmem:[#allocation29_spill] sm:$0xff]  ;;  %v5473_v16 = vld [vmem:[#allocation30_spill] sm:$0xff] }
 0x596   :  { %v1704_v7 = vadd.f32 %v1702_v36, %v5464_v59  ;;  %v5474_v36 = vld [vmem:[#allocation31_spill] sm:$0xff]  ;;  %v5477_v59 = vld [vmem:[#allocation66_spill] sm:$0xff] }
 0x597   :  { %v4997_v35 = vmul.f32 %v1718_v41, %v1713_v26  ;;  %v5475_v26 = vld [vmem:[#allocation32_spill] sm:$0xff] }
 0x598   :  { %3880 = vtanh.f32 %v1704_v7  ;;  %v5476_v41 = vld [vmem:[#allocation12_spill] sm:$0xff]  ;;  %v5478_v7 = vld [vmem:[#allocation35_spill] sm:$0xff] }
 0x599   :  { %1796 = vmatmul.mubr.f32.vlgmr.msra.gmra.mrb[32].mxu0 %v4997_v35  ;;  %1873 = vmatmul.mubr.f32.vlgmr.msra.gmra.mrb[52].mxu1 %v4997_v35  ;;  %v233_v24 = vadd.f32 %v5478_v7, %v5477_v59 }
 0x59a   :  { %3533 = vmatpush1.bf16.msra.mxu0 %v4180_v42  ;;  %3597 = vmatpush3.bf16.msra.mxu1 %v4390_v53 }
 0x59b   :  { %3535 = vmatprep.subr.bf16.mxu0 %v4187_v46  ;;  %3599 = vmatprep.subr.bf16.mxu1 %v4393_v54 }
 0x59e   :  { %3537 = vmatpush1.bf16.msra.mxu0 %v4208_v57  ;;  %3601 = vmatpush3.bf16.msra.mxu1 %v4400_v1 }
 0x59f   :  { %3539 = vmatprep.subr.bf16.mxu0 %v4212_v58  ;;  %3603 = vmatprep.subr.bf16.mxu1 %v4403_v4 }
 0x5a2   :  { %v3881_v45 = vpop.eup %3880  ;;  %3541 = vmatpush1.bf16.msra.mxu0 %v4225_v2  ;;  %3605 = vmatpush3.bf16.msra.mxu1 %v4411_v34 }
 0x5a3   :  { %v1710_v43 = vmul.f32 %v3881_v45, %v1708_v5  ;;  %3543 = vmatprep.subr.bf16.mxu0 %v4229_v3  ;;  %3607 = vmatprep.subr.bf16.mxu1 %v4415_v17  ;;  %v5479_v5 = vld [vmem:[#allocation67_spill] sm:$0xff]  ;;  %v5480_v45 = vld [vmem:[#allocation36_spill] sm:$0xff] }
 0x5a5   :  { %v1714_v48 = vadd.f32 %v1712_v63, %v1710_v43  ;;  %v235_v43 = vadd.f32 %v5480_v45, %v5479_v5  ;;  %v5073_v63 = vld [vmem:[%s5258_s7] sm:$0xff] }
 0x5a6   :  { %3545 = vmatpush1.bf16.msra.mxu0 %v4235_v8  ;;  %3609 = vmatpush3.bf16.msra.mxu1 %v4424_v28  ;;  %5481 = vst [vmem:[#allocation17_spill] sm:$0xff] %v5073_v63 }
 0x5a7   :  { %v5016_v44 = vmul.f32 %v1723_v13, %v1714_v48  ;;  %3547 = vmatprep.subr.bf16.mxu0 %v4239_v9  ;;  %3611 = vmatprep.subr.bf16.mxu1 %v4427_v33  ;;  %v3753_v48 = vadd.f32 %v5073_v63, %v233_v24 }
 0x5a9   :  { %1801 = vmatprep.mubr.f32.mxu0 %v5016_v44  ;;  %1877 = vmatprep.mubr.f32.mxu1 %v5016_v44  ;;  %v2414_v30 = vadd.f32 %v5016_v44, %v4921_v38 }
 0x5aa   :  { %1802 = vmatmul.mubr.f32.gmra.mrb[34].mxu0 %v5393_v6  ;;  %1878 = vmatmul.mubr.f32.gmra.mrb[54].mxu1 %v5393_v6 }
 0x5ab   :  { %v2422_v50 = vmul.f32 0.5, %v2414_v30  ;;  %3549 = vmatpush1.bf16.msra.mxu0 %v4249_v14  ;;  %3613 = vmatpush3.bf16.msra.mxu1 %v4435_v21 }
 0x5ac   :  { %3551 = vmatprep.subr.bf16.mxu0 %v4253_v15  ;;  %3615 = vmatprep.subr.bf16.mxu1 %v4438_v51 }
 0x5ad   :  { %v2437_v38 = vmul.f32 %v5031_v25, %v2422_v50  ;;  %2017 = vmatprep.mubr.f32.mxu0 %v5393_v6  ;;  %2094 = vmatprep.mubr.f32.mxu1 %v5393_v6  ;;  %v5079_v50 = vld [vmem:[%s5258_s7 + $0x8] sm:$0xff] }
 0x5ae   :  { %5482 = vst [vmem:[#allocation18_spill] sm:$0xff] %v5079_v50 }
 0x5af   :  { %2448 = vadd.xlane.f32.xlu0 %v2437_v38  ;;  %3553 = vmatpush1.bf16.msra.mxu0 %v4265_v22  ;;  %v3756_v38 = vadd.f32 %v5079_v50, %v235_v43 }
 0x5b0   :  { %3555 = vmatprep.subr.bf16.mxu0 %v5396_v23  ;;  %3617 = vmatpush3.bf16.msra.mxu1 %v4443_v61 }
 0x5b1   :  { %3619 = vmatprep.subr.bf16.mxu1 %v4446_v32 }
 0x5b3   :  { %3557 = vmatpush1.bf16.msra.mxu0 %v5397_v56 }
 0x5b4   :  { %3559 = vmatprep.subr.bf16.mxu0 %v5398_v31  ;;  %3621 = vmatpush3.bf16.msra.mxu1 %v4449_v18 }
 0x5b5   :  { %3623 = vmatprep.subr.bf16.mxu1 %v4452_v19 }
 0x5b7   :  { %3561 = vmatpush1.bf16.msra.mxu0 %v5399_v62 }
 0x5b8   :  { %3563 = vmatprep.subr.bf16.mxu0 %v5400_v29  ;;  %3625 = vmatpush3.bf16.msra.mxu1 %v4455_v27 }
 0x5b9   :  { %3691 = vmatprep.subr.bf16.mxu1 %v4385_v47  ;;  %v5471_v47 = vld [vmem:[#allocation28_spill] sm:$0xff] }
 0x5bb   :  { %3565 = vmatpush1.bf16.msra.mxu0 %v5401_v20 }
 0x5bc   :  { %3567 = vmatprep.subr.bf16.mxu0 %v5402_v49 }
 0x5bf   :  { %3569 = vmatpush1.bf16.msra.mxu0 %v5403_v10 }
 0x5c0   :  { %3571 = vmatprep.subr.bf16.mxu0 %v5404_v12 }
 0x5c3   :  { %3573 = vmatpush1.bf16.msra.mxu0 %v5465_v11 }
 0x5c4   :  { %3575 = vmatprep.subr.bf16.mxu0 %v5466_v60 }
 0x5c7   :  { %3577 = vmatpush1.bf16.msra.mxu0 %v5467_v0 }
 0x5c8   :  { %3579 = vmatprep.subr.bf16.mxu0 %v5468_v37 }
 0x5cb   :  { %3581 = vmatpush1.bf16.msra.mxu0 %v5469_v52 }
 0x5cc   :  { %3583 = vmatprep.subr.bf16.mxu0 %v5470_v40 }
 0x5cf   :  { %3585 = vmatpush1.bf16.msra.mxu0 %v5471_v47 }
 0x5d0   :  { %3587 = vmatprep.subr.bf16.mxu0 %v5472_v55  ;;  %v5085_v55 = vld [vmem:[%s5258_s7 + $0x18] sm:$0xff] }
 0x5d1   :  { %5483 = vst [vmem:[#allocation19_spill] sm:$0xff] %v5085_v55 }
 0x5d3   :  { %3589 = vmatpush1.bf16.msra.mxu0 %v5473_v16 }
 0x5d4   :  { %3591 = vmatprep.subr.bf16.mxu0 %v5474_v36 }
 0x5d7   :  { %3593 = vmatpush1.bf16.msra.mxu0 %v5475_v26 }
 0x5d8   :  { %3627 = vmatprep.subr.bf16.mxu0 %v5476_v41 }
 0x66c   :  { %v1797_v13 = vpop.f32.mrb[32].mxu0  ;;  %v2848_v30 = vpop.f32.mrb[52].mxu1 }
 0x66d   :  { %v3754_v41 = vadd.f32 %v3753_v48, %v1797_v13  ;;  %v1799_v7 = vpop.f32.mrb[33].mxu0  ;;  %v2849_v39 = vpop.f32.mrb[53].mxu1 }
 0x66e   :  { %v3757_v45 = vadd.f32 %v3756_v38, %v1799_v7  ;;  %v2850_v5 = vadd.f32 %v2849_v39, %v2848_v30  ;;  %v5091_v39 = vld [vmem:[%s5258_s7 + $0x20] sm:$0xff]  ;;  %v5486_v38 = vld [vmem:[#allocation54_spill] sm:$0xff] }
 0x66f   :  { %v2609_v59 = vmul.f32 -1.442695, %v3754_v41  ;;  %5484 = vst [vmem:[#allocation20_spill] sm:$0xff] %v5091_v39 }
 0x670   :  { %v2611_v26 = vmul.f32 -1.442695, %v3757_v45 }
 0x671   :  { %3882 = vpow2.f32 %v2609_v59  ;;  %v5485_v59 = vld [vmem:[#allocation45_spill] sm:$0xff] }
 0x672   :  { %3884 = vpow2.f32 %v2611_v26 }
 0x67b   :  { %v3883_v36 = vpop.eup %3882 }
 0x67c   :  { %v1903_v24 = vadd.f32 1.0, %v3883_v36  ;;  %v3885_v7 = vpop.eup %3884 }
 0x67d   :  { %v1803_v63 = vpop.f32.mrb[34].mxu0  ;;  %v2851_v16 = vpop.f32.mrb[54].mxu1 }
 0x67e   :  { %3886 = vrcp.f32 %v1903_v24  ;;  %v1804_v43 = vadd.f32 %v5085_v55, %v1803_v63  ;;  %v1805_v48 = vpop.f32.mrb[35].mxu0  ;;  %v2852_v13 = vpop.f32.mrb[55].mxu1  ;;  %v1917_v24 = vadd.f32 1.0, %v3885_v7  ;;  %v5099_v63 = vld [vmem:[%s5258_s7 + $0x10] sm:$0xff] }
 0x67f   :  { %v1806_v26 = vadd.f32 %v5091_v39, %v1805_v48  ;;  %v2853_v36 = vadd.f32 %v2852_v13, %v2851_v16  ;;  %v1875_v55 = vadd.f32 %v5099_v63, %v2850_v5  ;;  %v5487_v16 = vld [vmem:[#allocation56_spill] sm:$0xff] }
 0x680   :  { %v1896_v30 = vadd.f32 %v1804_v43, %v5485_v59  ;;  %v5107_v5 = vld [vmem:[%s5258_s7 + $0x28] sm:$0xff] }
 0x681   :  { %v1910_v41 = vadd.f32 %v1806_v26, %v5486_v38 }
 0x682   :  { %v2610_v45 = vmul.f32 -1.442695, %v1896_v30 }
 0x683   :  { %v2612_v50 = vmul.f32 -1.442695, %v1910_v41 }
 0x684   :  { %3888 = vpow2.f32 %v2610_v45 }
 0x685   :  { %3890 = vrcp.f32 %v1917_v24  ;;  %v1940_v24 = vpop.permute.xlu0 %1939 }
 0x686   :  { %3892 = vpow2.f32 %v2612_v50 }
 0x688   :  { %v3887_v47 = vpop.eup %3886 }
 0x689   :  { %v1923_v48 = vmul.f32 %v3887_v47, %v1875_v55  ;;  %v1880_v47 = vadd.f32 %v5107_v5, %v2853_v36 }
 0x68b   :  { %v1925_v13 = vadd.f32 %v1923_v48, %v5487_v16 }
 0x68d   :  { %3894 = vtanh.f32 %v1925_v13  ;;  %v5488_v13 = vld [vmem:[#allocation55_spill] sm:$0xff] }
 0x68e   :  { %v3889_v43 = vpop.eup %3888 }
 0x68f   :  { %v1904_v26 = vadd.f32 1.0, %v3889_v43  ;;  %v3891_v59 = vpop.eup %3890 }
 0x690   :  { %v3893_v30 = vpop.eup %3892  ;;  %v1929_v38 = vsub.f32 1.0, %v3891_v59  ;;  %v1933_v45 = vmul.f32 %v3891_v59, %v4997_v35  ;;  %v5502_v59 = vld [vmem:[#allocation20_spill] sm:$0xff] }
 0x691   :  { %3896 = vrcp.f32 %v1904_v26  ;;  %v1918_v39 = vadd.f32 1.0, %v3893_v30 }
 0x693   :  { %3898 = vrcp.f32 %v1918_v39 }
 0x697   :  { %v3895_v7 = vpop.eup %3894 }
 0x698   :  { %v1931_v55 = vmul.f32 %v3895_v7, %v1929_v38  ;;  %v5503_v7 = vld [vmem:[#allocation43_spill] sm:$0xff] }
 0x69a   :  { %v1935_v50 = vadd.f32 %v1933_v45, %v1931_v55 }
 0x69b   :  { %v3897_v41 = vpop.eup %3896 }
 0x69c   :  { %v1924_v48 = vmul.f32 %v3897_v41, %v1880_v47  ;;  %v5110_v16 = vmul.f32 %v1940_v24, %v1935_v50  ;;  %v5504_v47 = vld [vmem:[#allocation50_spill] sm:$0xff] }
 0x69d   :  { %v3899_v39 = vpop.eup %3898 }
 0x69e   :  { %v1926_v43 = vadd.f32 %v1924_v48, %v5488_v13  ;;  %2018 = vmatmul.mubr.f32.vlgmr.msra.gmra.mrb[36].mxu0 %v5110_v16  ;;  %2095 = vmatmul.mubr.f32.vlgmr.msra.gmra.mrb[56].mxu1 %v5110_v16 }
 0x69f   :  { %3629 = vmatpush1.bf16.msra.mxu0 %v4180_v42  ;;  %3693 = vmatpush3.bf16.msra.mxu1 %v4390_v53  ;;  %v1930_v42 = vsub.f32 1.0, %v3899_v39 }
 0x6a0   :  { %3900 = vtanh.f32 %v1926_v43  ;;  %3631 = vmatprep.subr.bf16.mxu0 %v4187_v46  ;;  %3695 = vmatprep.subr.bf16.mxu1 %v4393_v54 }
 0x6a3   :  { %3633 = vmatpush1.bf16.msra.mxu0 %v4208_v57  ;;  %3697 = vmatpush3.bf16.msra.mxu1 %v4400_v1  ;;  %v1934_v57 = vmul.f32 %v3899_v39, %v5016_v44  ;;  %v5492_v1 = vld [vmem:[#allocation30_spill] sm:$0xff]  ;;  %v5505_v39 = vld [vmem:[#allocation60_spill] sm:$0xff] }
 0x6a4   :  { %3635 = vmatprep.subr.bf16.mxu0 %v4212_v58  ;;  %3699 = vmatprep.subr.bf16.mxu1 %v4403_v4  ;;  %v5493_v4 = vld [vmem:[#allocation31_spill] sm:$0xff] }
 0x6a7   :  { %3637 = vmatpush1.bf16.msra.mxu0 %v4225_v2  ;;  %3701 = vmatpush3.bf16.msra.mxu1 %v4411_v34  ;;  %v1945_v2 = vpop.permute.xlu1 %1944  ;;  %v5494_v34 = vld [vmem:[#allocation32_spill] sm:$0xff] }
 0x6a8   :  { %3639 = vmatprep.subr.bf16.mxu0 %v4229_v3  ;;  %3703 = vmatprep.subr.bf16.mxu1 %v4415_v17  ;;  %v5489_v3 = vld [vmem:[#allocation14_spill] sm:$0xff] }
 0x6a9   :  { %v5495_v17 = vld [vmem:[#allocation66_spill] sm:$0xff] }
 0x6aa   :  { %v3901_v46 = vpop.eup %3900 }
 0x6ab   :  { %v1932_v53 = vmul.f32 %v3901_v46, %v1930_v42  ;;  %3641 = vmatpush1.bf16.msra.mxu0 %v4235_v8  ;;  %3705 = vmatpush3.bf16.msra.mxu1 %v4424_v28  ;;  %v5496_v28 = vld [vmem:[#allocation38_spill] sm:$0xff] }
 0x6ac   :  { %3643 = vmatprep.subr.bf16.mxu0 %v4239_v9  ;;  %3707 = vmatprep.subr.bf16.mxu1 %v4427_v33  ;;  %v239_v33 = vadd.f32 %v5496_v28, %v5495_v17 }
 0x6ad   :  { %v1936_v58 = vadd.f32 %v1934_v57, %v1932_v53 }
 0x6af   :  { %v5132_v54 = vmul.f32 %v1945_v2, %v1936_v58  ;;  %3645 = vmatpush1.bf16.msra.mxu0 %v4249_v14  ;;  %3709 = vmatpush3.bf16.msra.mxu1 %v4435_v21  ;;  %v5497_v21 = vld [vmem:[#allocation67_spill] sm:$0xff] }
 0x6b0   :  { %3647 = vmatprep.subr.bf16.mxu0 %v4253_v15  ;;  %3711 = vmatprep.subr.bf16.mxu1 %v4438_v51  ;;  %v5490_v15 = vld [vmem:[#allocation28_spill] sm:$0xff]  ;;  %v5498_v51 = vld [vmem:[#allocation39_spill] sm:$0xff] }
 0x6b1   :  { %2023 = vmatprep.mubr.f32.mxu0 %v5132_v54  ;;  %2099 = vmatprep.mubr.f32.mxu1 %v5132_v54  ;;  %v2413_v8 = vadd.f32 %v5132_v54, %v5489_v3 }
 0x6b2   :  { %2024 = vmatmul.mubr.f32.gmra.mrb[38].mxu0 %v5393_v6  ;;  %2100 = vmatmul.mubr.f32.gmra.mrb[58].mxu1 %v5393_v6 }
 0x6b3   :  { %v2421_v9 = vmul.f32 0.5, %v2413_v8  ;;  %3649 = vmatpush1.bf16.msra.mxu0 %v4265_v22  ;;  %3713 = vmatpush3.bf16.msra.mxu1 %v4443_v61  ;;  %v5491_v22 = vld [vmem:[#allocation29_spill] sm:$0xff]  ;;  %v241_v61 = vadd.f32 %v5498_v51, %v5497_v21 }
 0x6b4   :  { %3651 = vmatprep.subr.bf16.mxu0 %v5396_v23  ;;  %3715 = vmatprep.subr.bf16.mxu1 %v4446_v32  ;;  %v5499_v32 = vld [vmem:[#allocation17_spill] sm:$0xff]  ;;  %v5500_v23 = vld [vmem:[#allocation18_spill] sm:$0xff] }
 0x6b5   :  { %v2436_v14 = vmul.f32 %v5031_v25, %v2421_v9  ;;  %2239 = vmatprep.mubr.f32.mxu0 %v5393_v6  ;;  %2316 = vmatprep.mubr.f32.mxu1 %v5393_v6 }
 0x6b7   :  { %2446 = vadd.xlane.f32.xlu0 %v2436_v14  ;;  %3653 = vmatpush1.bf16.msra.mxu0 %v5397_v56  ;;  %v3762_v56 = vadd.f32 %v5500_v23, %v241_v61 }
 0x6b8   :  { %3655 = vmatprep.subr.bf16.mxu0 %v5398_v31  ;;  %3717 = vmatpush3.bf16.msra.mxu1 %v4449_v18  ;;  %v3759_v18 = vadd.f32 %v5499_v32, %v239_v33  ;;  %v5506_v33 = vld [vmem:[#allocation51_spill] sm:$0xff] }
 0x6b9   :  { %3719 = vmatprep.subr.bf16.mxu1 %v4452_v19 }
 0x6bb   :  { %3657 = vmatpush1.bf16.msra.mxu0 %v5399_v62 }
 0x6bc   :  { %3659 = vmatprep.subr.bf16.mxu0 %v5400_v29  ;;  %3721 = vmatpush3.bf16.msra.mxu1 %v4455_v27 }
 0x6bf   :  { %3661 = vmatpush1.bf16.msra.mxu0 %v5401_v20 }
 0x6c0   :  { %3663 = vmatprep.subr.bf16.mxu0 %v5402_v49 }
 0x6c3   :  { %3665 = vmatpush1.bf16.msra.mxu0 %v5403_v10 }
 0x6c4   :  { %3667 = vmatprep.subr.bf16.mxu0 %v5404_v12 }
 0x6c7   :  { %3669 = vmatpush1.bf16.msra.mxu0 %v5465_v11 }
 0x6c8   :  { %3671 = vmatprep.subr.bf16.mxu0 %v5466_v60 }
 0x6cb   :  { %3673 = vmatpush1.bf16.msra.mxu0 %v5467_v0 }
 0x6cc   :  { %3675 = vmatprep.subr.bf16.mxu0 %v5468_v37  ;;  %v5501_v37 = vld [vmem:[#allocation19_spill] sm:$0xff] }
 0x6cf   :  { %3677 = vmatpush1.bf16.msra.mxu0 %v5469_v52 }
 0x6d0   :  { %3679 = vmatprep.subr.bf16.mxu0 %v5470_v40 }
 0x6d3   :  { %3681 = vmatpush1.bf16.msra.mxu0 %v5490_v15  ;;  %v2162_v15 = vpop.permute.xlu0 %2161 }
 0x6d4   :  { %3683 = vmatprep.subr.bf16.mxu0 %v5491_v22 }
 0x6d7   :  { %3685 = vmatpush1.bf16.msra.mxu0 %v5492_v1 }
 0x6d8   :  { %3687 = vmatprep.subr.bf16.mxu0 %v5493_v4 }
 0x6db   :  { %3689 = vmatpush1.bf16.msra.mxu0 %v5494_v34 }
 0x771   :  { %v2019_v19 = vpop.f32.mrb[36].mxu0  ;;  %v2886_v27 = vpop.f32.mrb[56].mxu1 }
 0x772   :  { %v3760_v31 = vadd.f32 %v3759_v18, %v2019_v19  ;;  %v2021_v62 = vpop.f32.mrb[37].mxu0  ;;  %v2887_v29 = vpop.f32.mrb[57].mxu1 }
 0x773   :  { %v3763_v20 = vadd.f32 %v3762_v56, %v2021_v62  ;;  %v2888_v49 = vadd.f32 %v2887_v29, %v2886_v27  ;;  %v2167_v62 = vpop.permute.xlu1 %2166 }
 0x774   :  { %v2615_v10 = vmul.f32 -1.442695, %v3760_v31 }
 0x775   :  { %v2617_v12 = vmul.f32 -1.442695, %v3763_v20  ;;  %v2097_v24 = vadd.f32 %v5099_v63, %v2888_v49  ;;  %v5507_v20 = vld [vmem:[#allocation73_spill] sm:$0xff] }
 0x776   :  { %3902 = vpow2.f32 %v2615_v10  ;;  %v5508_v10 = vld [vmem:[#allocation16_spill] sm:$0xff] }
 0x777   :  { %3904 = vpow2.f32 %v2617_v12  ;;  %v2415_v12 = vadd.f32 %v4997_v35, %v5508_v10  ;;  %v5510_v35 = vld [vmem:[#allocation40_spill] sm:$0xff] }
 0x780   :  { %v3903_v44 = vpop.eup %3902 }
 0x781   :  { %v2125_v11 = vadd.f32 1.0, %v3903_v44  ;;  %v3905_v26 = vpop.eup %3904 }
 0x782   :  { %v2139_v50 = vadd.f32 1.0, %v3905_v26  ;;  %v245_v26 = vadd.f32 %v5510_v35, %v5495_v17  ;;  %v2383_v35 = vpop.permute.xlu1 %2382 }
 0x783   :  { %3906 = vrcp.f32 %v2125_v11  ;;  %v2423_v11 = vmul.f32 0.5, %v2415_v12  ;;  %v5515_v12 = vld [vmem:[#allocation47_spill] sm:$0xff] }
 0x785   :  { %v2025_v60 = vpop.f32.mrb[38].mxu0  ;;  %v2889_v0 = vpop.f32.mrb[58].mxu1 }
 0x786   :  { %v2026_v52 = vadd.f32 %v5501_v37, %v2025_v60  ;;  %v2027_v40 = vpop.f32.mrb[39].mxu0  ;;  %v2890_v36 = vpop.f32.mrb[59].mxu1  ;;  %v5509_v60 = vld [vmem:[#allocation74_spill] sm:$0xff] }
 0x787   :  { %v2028_v30 = vadd.f32 %v5502_v59, %v2027_v40  ;;  %v2891_v38 = vadd.f32 %v2890_v36, %v2889_v0 }
 0x788   :  { %v2118_v45 = vadd.f32 %v2026_v52, %v5503_v7  ;;  %v2438_v52 = vmul.f32 %v5031_v25, %v2423_v11 }
 0x789   :  { %v2132_v55 = vadd.f32 %v2028_v30, %v5504_v47  ;;  %v2102_v1 = vadd.f32 %v5107_v5, %v2891_v38  ;;  %v3765_v38 = vadd.f32 %v5499_v32, %v245_v26  ;;  %v5516_v26 = vld [vmem:[#allocation71_spill] sm:$0xff] }
 0x78a   :  { %v2616_v41 = vmul.f32 -1.442695, %v2118_v45 }
 0x78b   :  { %v2618_v43 = vmul.f32 -1.442695, %v2132_v55 }
 0x78c   :  { %3908 = vpow2.f32 %v2616_v41 }
 0x78d   :  { %v3907_v48 = vpop.eup %3906  ;;  %3910 = vrcp.f32 %v2139_v50 }
 0x78e   :  { %v2145_v13 = vmul.f32 %v3907_v48, %v2097_v24 }
 0x790   :  { %v2147_v42 = vadd.f32 %v2145_v13, %v5505_v39 }
 0x792   :  { %3912 = vtanh.f32 %v2147_v42 }
 0x793   :  { %3914 = vpow2.f32 %v2618_v43 }
 0x796   :  { %v3909_v46 = vpop.eup %3908 }
 0x797   :  { %v2126_v53 = vadd.f32 1.0, %v3909_v46  ;;  %v3911_v57 = vpop.eup %3910 }
 0x798   :  { %v2151_v58 = vsub.f32 1.0, %v3911_v57  ;;  %v2155_v8 = vmul.f32 %v3911_v57, %v5110_v16 }
 0x799   :  { %3916 = vrcp.f32 %v2126_v53 }
 0x79c   :  { %v3913_v2 = vpop.eup %3912 }
 0x79d   :  { %v3915_v3 = vpop.eup %3914  ;;  %v2153_v9 = vmul.f32 %v3913_v2, %v2151_v58 }
 0x79e   :  { %v2140_v22 = vadd.f32 1.0, %v3915_v3  ;;  %v5512_v3 = vld [vmem:[#allocation42_spill] sm:$0xff] }
 0x79f   :  { %v2157_v14 = vadd.f32 %v2155_v8, %v2153_v9 }
 0x7a0   :  { %3918 = vrcp.f32 %v2140_v22 }
 0x7a1   :  { %v5187_v4 = vmul.f32 %v2162_v15, %v2157_v14  ;;  %v5513_v14 = vld [vmem:[#allocation46_spill] sm:$0xff] }
 0x7a3   :  { %v3917_v34 = vpop.eup %3916  ;;  %2240 = vmatmul.mubr.f32.vlgmr.msra.gmra.mrb[40].mxu0 %v5187_v4  ;;  %2317 = vmatmul.mubr.f32.vlgmr.msra.gmra.mrb[60].mxu1 %v5187_v4  ;;  %v2417_v0 = vadd.f32 %v5187_v4, %v5509_v60 }
 0x7a4   :  { %v2146_v28 = vmul.f32 %v3917_v34, %v2102_v1 }
 0x7a5   :  { %v2425_v40 = vmul.f32 0.5, %v2417_v0 }
 0x7a6   :  { %v2148_v51 = vadd.f32 %v2146_v28, %v5506_v33  ;;  %v5514_v28 = vld [vmem:[#allocation63_spill] sm:$0xff] }
 0x7a7   :  { %v2440_v36 = vmul.f32 %v5031_v25, %v2425_v40 }
 0x7a8   :  { %3920 = vtanh.f32 %v2148_v51 }
 0x7aa   :  { %v3919_v61 = vpop.eup %3918 }
 0x7ab   :  { %v2152_v18 = vsub.f32 1.0, %v3919_v61  ;;  %v2156_v56 = vmul.f32 %v3919_v61, %v5132_v54 }
 0x7b2   :  { %v3921_v19 = vpop.eup %3920 }
 0x7b3   :  { %v2154_v27 = vmul.f32 %v3921_v19, %v2152_v18 }
 0x7b5   :  { %v2158_v31 = vadd.f32 %v2156_v56, %v2154_v27 }
 0x7b7   :  { %v5193_v29 = vmul.f32 %v2167_v62, %v2158_v31 }
 0x7b9   :  { %2245 = vmatprep.mubr.f32.mxu0 %v5193_v29  ;;  %2321 = vmatprep.mubr.f32.mxu1 %v5193_v29  ;;  %v2412_v49 = vadd.f32 %v5193_v29, %v5507_v20 }
 0x7ba   :  { %2246 = vmatmul.mubr.f32.gmra.mrb[42].mxu0 %v5393_v6  ;;  %2322 = vmatmul.mubr.f32.gmra.mrb[62].mxu1 %v5393_v6  ;;  %v5511_v6 = vld [vmem:[#allocation41_spill] sm:$0xff] }
 0x7bb   :  { %v2420_v44 = vmul.f32 0.5, %v2412_v49  ;;  %v247_v30 = vadd.f32 %v5511_v6, %v5497_v21 }
 0x7bd   :  { %v2435_v54 = vmul.f32 %v5031_v25, %v2420_v44  ;;  %v3768_v47 = vadd.f32 %v5500_v23, %v247_v30  ;;  %v5517_v30 = vld [vmem:[#allocation15_spill] sm:$0xff] }
 0x7bf   :  { %2444 = vadd.xlane.f32.xlu1 %v2435_v54 }
 0x7c3   :  { %2450 = vadd.xlane.f32.xlu1 %v2438_v52 }
 0x7c7   :  { %2454 = vadd.xlane.f32.xlu1 %v2440_v36  ;;  %v2388_v36 = vpop.permute.xlu0 %2387 }
 0x876   :  { %v2241_v7 = vpop.f32.mrb[40].mxu0  ;;  %v2924_v45 = vpop.f32.mrb[60].mxu1 }
 0x877   :  { %v3766_v55 = vadd.f32 %v3765_v38, %v2241_v7  ;;  %v2243_v50 = vpop.f32.mrb[41].mxu0  ;;  %v2925_v41 = vpop.f32.mrb[61].mxu1 }
 0x878   :  { %v3769_v24 = vadd.f32 %v3768_v47, %v2243_v50  ;;  %v2926_v48 = vadd.f32 %v2925_v41, %v2924_v45 }
 0x879   :  { %v2621_v13 = vmul.f32 -1.442695, %v3766_v55  ;;  %v5518_v55 = vld [vmem:[#allocation72_spill] sm:$0xff] }
 0x87a   :  { %v2623_v43 = vmul.f32 -1.442695, %v3769_v24  ;;  %v2319_v9 = vadd.f32 %v5099_v63, %v2926_v48  ;;  %v2449_v48 = vpop.xlane.xlu0 %2448 }
 0x87b   :  { %3922 = vpow2.f32 %v2621_v13  ;;  %v2445_v13 = vpop.xlane.xlu1 %2444 }
 0x87c   :  { %3924 = vpow2.f32 %v2623_v43  ;;  %v5519_v43 = vlaneseq }
 0x885   :  { %v3923_v39 = vpop.eup %3922 }
 0x886   :  { %v2346_v17 = vadd.f32 1.0, %v3923_v39  ;;  %v3925_v42 = vpop.eup %3924  ;;  %v2469_v39 = vand.u32 127, %v5519_v43 }
 0x887   :  { %v2360_v23 = vadd.f32 1.0, %v3925_v42 }
 0x888   :  { %3926 = vrcp.f32 %v2346_v17  ;;  %v5520_v17 = vld [vmem:[#allocation37_spill] sm:$0xff] }
 0x889   :  { %3928 = vrcp.f32 %v2360_v23  ;;  %v2472_v42 = vsub.s32 %v2469_v39, %v5520_v17 }
 0x88b   :  { %v2485_v23 = vrot.slane %v2449_v48, %v2472_v42 }
 0x88d   :  { %v2247_v21 = vpop.f32.mrb[42].mxu0  ;;  %v2927_v46 = vpop.f32.mrb[62].mxu1 }
 0x88e   :  { %v2248_v32 = vadd.f32 %v5501_v37, %v2247_v21  ;;  %v2249_v53 = vpop.f32.mrb[43].mxu0  ;;  %v2928_v57 = vpop.f32.mrb[63].mxu1 }
 0x88f   :  { %v2250_v58 = vadd.f32 %v5502_v59, %v2249_v53  ;;  %v2929_v2 = vadd.f32 %v2928_v57, %v2927_v46  ;;  %v2451_v21 = vpop.xlane.xlu1 %2450 }
 0x890   :  { %v2339_v8 = vadd.f32 %v2248_v32, %v5512_v3  ;;  %v2477_v32 = vrot.slane %v2445_v13, %v2472_v42 }
 0x891   :  { %v2353_v15 = vadd.f32 %v2250_v58, %v5513_v14  ;;  %v2324_v20 = vadd.f32 %v5107_v5, %v2929_v2  ;;  %v2416_v5 = vadd.f32 %v5110_v16, %v5517_v30  ;;  %v2447_v16 = vpop.xlane.xlu0 %2446 }
 0x892   :  { %v3927_v22 = vpop.eup %3926  ;;  %v2622_v1 = vmul.f32 -1.442695, %v2339_v8  ;;  %v2481_v57 = vrot.slane %v2447_v16, %v2472_v42 }
 0x893   :  { %v2366_v34 = vmul.f32 %v3927_v22, %v2319_v9  ;;  %v2624_v37 = vmul.f32 -1.442695, %v2353_v15  ;;  %v3929_v51 = vpop.eup %3928  ;;  %v2424_v47 = vmul.f32 0.5, %v2416_v5  ;;  %v2455_v8 = vpop.xlane.xlu1 %2454  ;;  %v2458_v22 = vld [vmem:[%s5254_s3] sm:$0xff]  ;;  %s4005_s3 = smov [#allocation9]  }
 0x894   :  { %3930 = vpow2.f32 %v2622_v1  ;;  %v2372_v18 = vsub.f32 1.0, %v3929_v51  ;;  %v2376_v63 = vmul.f32 %v3929_v51, %v5187_v4  ;;  %vm2459_vm8 = vcmp.gt.f32.partialorder %v2458_v22, 0.0  ;;  %s2546_s27 = sshll.u32 %s4005_s3, 4  ;;  %s2547_s27 = int_to_ptr.vmem [resolvable:$true] %s2546_s27 }
 0x895   :  { %v2368_v33 = vadd.f32 %v2366_v34, %v5514_v28  ;;  %v2439_v41 = vmul.f32 %v5031_v25, %v2424_v47  ;;  %v2497_v34 = vrot.slane %v2455_v8, %v2472_v42  ;;  %s3974_s2 = scalar_lea.vmem %s2547_s27, 128  ;;  %p3979_p9 = scmp.lt.s32.totalorder %s2547_s27, %s2547_s27 }
 0x896   :  { %p3975_p8 = scmp.ne.s32.totalorder %s2547_s27, %s3974_s2  ;;  %p3980_p10 = scmp.lt.s32.totalorder %s3974_s2, %s3974_s2 }
 0x897   :  { %3932 = vtanh.f32 %v2368_v33 }
 0x898   :  { %3934 = vpow2.f32 %v2624_v37  ;;  %p3981_p11 = por %p3980_p10, %p3979_p9 }
 0x89a   :  { %p3982_p12 = pnand %p3981_p11, %p3975_p8 }
 0x89e   :  { %v3931_v61 = vpop.eup %3930 }
 0x89f   :  { %v2347_v59 = vadd.f32 1.0, %v3931_v61 }
 0x8a1   :  { %v3933_v19 = vpop.eup %3932  ;;  %3936 = vrcp.f32 %v2347_v59 }
 0x8a2   :  { %v2374_v27 = vmul.f32 %v3933_v19, %v2372_v18  ;;  %v3935_v31 = vpop.eup %3934 }
 0x8a3   :  { %v2361_v62 = vadd.f32 1.0, %v3935_v31 }
 0x8a4   :  { %v2378_v56 = vadd.f32 %v2376_v63, %v2374_v27 }
 0x8a5   :  { %3938 = vrcp.f32 %v2361_v62 }
 0x8a6   :  { %v2390_v38 = vmul.f32 %v2383_v35, %v2378_v56 }
 0x8a8   :  { %v2418_v50 = vadd.f32 %v2390_v38, %v5518_v55 }
 0x8ab   :  { %v3937_v49 = vpop.eup %3936 }
 0x8ac   :  { %v2367_v10 = vmul.f32 %v3937_v49, %v2324_v20 }
 0x8ae   :  { %v2369_v44 = vadd.f32 %v2367_v10, %v5515_v12 }
 0x8af   :  { %v3939_v54 = vpop.eup %3938 }
 0x8b0   :  { %3940 = vtanh.f32 %v2369_v44  ;;  %v2373_v11 = vsub.f32 1.0, %v3939_v54  ;;  %v2377_v52 = vmul.f32 %v3939_v54, %v5193_v29  ;;  %v2426_v29 = vmul.f32 0.5, %v2418_v50 }
 0x8b2   :  { %v2441_v24 = vmul.f32 %v5031_v25, %v2426_v29 }
 0x8ba   :  { %v3941_v60 = vpop.eup %3940 }
 0x8bb   :  { %v2375_v0 = vmul.f32 %v3941_v60, %v2373_v11 }
 0x8bd   :  { %v2379_v40 = vadd.f32 %v2377_v52, %v2375_v0 }
 0x8bf   :  { %v2391_v4 = vmul.f32 %v2388_v36, %v2379_v40 }
 0x8c1   :  { %v2411_v6 = vadd.f32 %v2391_v4, %v5516_v26 }
 0x8c3   :  { %v2419_v7 = vmul.f32 0.5, %v2411_v6 }
 0x8c5   :  { %v2434_v45 = vmul.f32 %v5031_v25, %v2419_v7  ;;  %v2489_v25 = vrot.slane %v2451_v21, %v2472_v42 }
 0x8c7   :  { %2442 = vadd.xlane.f32.xlu0 %v2434_v45 }
 0x8cb   :  { %2452 = vadd.xlane.f32.xlu0 %v2439_v41 }
 0x8cf   :  { %2456 = vadd.xlane.f32.xlu0 %v2441_v24 }
 0x954   :  { %v2443_v46 = vpop.xlane.xlu0 %2442 }
 0x955   :  { %v2473_v53 = vrot.slane %v2443_v46, %v2472_v42 }
 0x957   :  { %v2503_v58 = vsel %vm2502_vm1, %v2477_v32, %v2473_v53 }
 0x958   :  { %v2505_v2 = vsel %vm2504_vm2, %v2481_v57, %v2503_v58  ;;  %v2453_v3 = vpop.xlane.xlu0 %2452 }
 0x959   :  { %v2507_v9 = vsel %vm2506_vm3, %v2485_v23, %v2505_v2  ;;  %v2493_v14 = vrot.slane %v2453_v3, %v2472_v42 }
 0x95a   :  { %v2509_v15 = vsel %vm2508_vm4, %v2489_v25, %v2507_v9 }
 0x95b   :  { %v2511_v1 = vsel %vm2510_vm5, %v2493_v14, %v2509_v15 }
 0x95c   :  { %v2457_v28 = vpop.xlane.xlu0 %2456  ;;  %v2513_v37 = vsel %vm2512_vm6, %v2497_v34, %v2511_v1 }
 0x95d   :  { %v2501_v33 = vrot.slane %v2457_v28, %v2472_v42 }
 0x95f   :  { %v2515_v51 = vsel %vm2514_vm7, %v2501_v33, %v2513_v37 }
 0x960   :  { %v2517_v61 = vsel %vm2459_vm8, %v2515_v51, -10000.0 }
 0x961   :  { %v2518_v59 = vmul.f32 10.0, %v2517_v61 }
 0x963   :  { %v2520_v18 = vsel %vm2519_vm9, %v2518_v59, -inf }
 0x964   :  { %v2521_v19 = vrot.slane %v2520_v18, 4 }
 0x966   :  { %v2522_v27 = vmax.f32 %v2520_v18, %v2521_v19 }
 0x968   :  { %v2523_v63 = vrot.slane %v2522_v27, 2 }
 0x96a   :  { %v2524_v56 = vmax.f32 %v2522_v27, %v2523_v63 }
 0x96c   :  { %v2525_v31 = vrot.slane %v2524_v56, 1 }
 0x96e   :  { %v2526_v62 = vmax.f32 %v2524_v56, %v2525_v31 }
 0x970   :  { %v2527_v20 = vsub.f32 %v2518_v59, %v2526_v62 }
 0x972   :  { %v2528_v49 = vmul.f32 1.442695, %v2527_v20 }
 0x974   :  { %3942 = vpow2.f32 %v2528_v49 }
 0x97e   :  { %v3943_v10 = vpop.eup %3942 }
 0x97f   :  { %v2530_v12 = vsel %vm2519_vm9, %v3943_v10, 0.0 }
 0x980   :  { %v2531_v44 = vrot.slane %v2530_v12, 4 }
 0x982   :  { %v2532_v54 = vadd.f32 %v2531_v44, %v2530_v12 }
 0x984   :  { %v2533_v11 = vrot.slane %v2532_v54, 2 }
 0x986   :  { %v2534_v60 = vadd.f32 %v2533_v11, %v2532_v54 }
 0x988   :  { %v2535_v0 = vrot.slane %v2534_v60, 1 }
 0x98a   :  { %v2536_v52 = vadd.f32 %v2535_v0, %v2534_v60 }
 0x98c   :  { %3944 = vrcp.f32 %v2536_v52 }
 0x996   :  { %v3945_v40 = vpop.eup %3944 }
 0x997   :  { %v2538_v36 = vmul.f32 %v3945_v40, %v3943_v10 }
 0x999   :  { %2539 = vst.msk [vmem:[#allocation9] sm:$0xff] %vm2519_vm9, %v2538_v36 }
 0x99a   :  { %3985 = shalt.err (!%p3982_p12)
}
 0x99b   :  { %s3986_s29 = scalar_lea.hbm %s5260_s9, 128 }
 0x99c   :  { %p3987_p13 = scmp.ne.s32.totalorder %s5260_s9, %s3986_s29  ;;  %p3990_p0 = scmp.lt.u32.totalorder %s3986_s29, %s5260_s9 }
 0x99e   :  { %p3992_p1 = pnand %p3990_p0, %p3987_p13 }
 0x9a0   :  { %3995 = shalt.err (!%p3992_p1)
}
 0x9a1   :  { %2549 = dma.vmem_to_hbm [thread:$0]  %s2547_s27, 128, %s5260_s9, [#allocation8]  }
 0x9a2   :  { %3998 = dma.done.wait [#allocation8], 128  }
 0x9a3   :  { %3999 = vsyncadd [#allocation8], 4294967168 }
 0x9a4   :  { %2553 = vsyncpa [#allocation7], 1 }
 0x9a5   :  { %2554 = vsyncpa [#allocation8], 1 }

</bundles_post_ra>
